<compile_context>
chip_gen: v7x
topology: tpu7x:2x2x1
jax: 0.10.0
libtpu: 0.0.40
codegen_flags: <defaults>
</compile_context>

<pallas_src>
import functools

import numpy as np

import jax
import jax.numpy as jnp
from jax.experimental import pallas as pl
from jax.experimental.pallas import tpu as pltpu


# ---------------------------------------------------------------------------
# Host-side layout / weight preparation (pure numpy, done once per param set).
# ---------------------------------------------------------------------------
def _build_shift_matrices(G, B):
    """SH[k]: (L, L) 0/1 matrix; (act @ SH[k])[:, dst] = act[:, dst + (dY,dX)]
    (same batch, zero if the source coarse position is out of range).
    k = (dY+1)*3 + (dX+1), dY,dX in {-1,0,1}.  L = G*G*B, lane = (Y*G+X)*B+b."""
    L = G * G * B

    def lane(Y, X, b):
        return (Y * G + X) * B + b

    sh = np.zeros((9, L, L), np.float32)
    for dY in (-1, 0, 1):
        for dX in (-1, 0, 1):
            k = (dY + 1) * 3 + (dX + 1)
            for Yd in range(G):
                for Xd in range(G):
                    Ys, Xs = Yd + dY, Xd + dX
                    if 0 <= Ys < G and 0 <= Xs < G:
                        for b in range(B):
                            sh[k, lane(Ys, Xs, b), lane(Yd, Xd, b)] = 1.0
    return sh


def _remap_conv(w, *, f_in, f_out, stride, upsample):
    """Remap a torch-layout (Cout, Cin, 3, 3) conv (pad=1, given stride, with an
    optional preceding nearest `upsample`) into per-coarse-offset blocks acting
    on phase-split activations:  out = sum_t  Wr_t @ act @ SH_{sid_t}.

    Activation channel layout: (py*f + px)*C + c  <->  fine pos (f*Y+py, f*X+px).
    Returns (w_stack: (T, f_out^2*Cout, f_in^2*Cin), shift_ids: tuple of T ints)."""
    cout, cin, kh, kw = w.shape
    assert kh == 3 and kw == 3
    assert stride * f_out == upsample * f_in
    cout_tot = f_out * f_out * cout
    cin_tot = f_in * f_in * cin
    taps = {}
    for pyo in range(f_out):
        for pxo in range(f_out):
            for ki in range(kh):
                for kj in range(kw):
                    ty = stride * pyo + ki - 1        # pad = 1
                    tx = stride * pxo + kj - 1
                    qy, qx = ty // upsample, tx // upsample   # fold upsample
                    dY, pyi = qy // f_in, qy % f_in
                    dX, pxi = qx // f_in, qx % f_in
                    blk = taps.setdefault(
                        (dY, dX), np.zeros((cout_tot, cin_tot), np.float32))
                    ro = (pyo * f_out + pxo) * cout
                    co = (pyi * f_in + pxi) * cin
                    blk[ro:ro + cout, co:co + cin] += w[:, :, ki, kj]
    keys = sorted(taps.keys())
    w_stack = np.stack([taps[k] for k in keys], axis=0)
    sids = tuple((dY + 1) * 3 + (dX + 1) for (dY, dX) in keys)
    return w_stack, sids


# ---------------------------------------------------------------------------
# The fused Pallas kernel: whole VAE forward, everything VMEM resident.
# ---------------------------------------------------------------------------
def _vae_fused_kernel(x_ref, sh_ref, sel_ref, selT_ref,
                      w1_ref, b1_ref, w2_ref, b2_ref,
                      wfe_ref, bfe_ref, wfd_ref, bfd_ref,
                      wd1_ref, bd1_ref, wd2_ref, bd2_ref,
                      zs_ref, rec_ref,
                      *, sids, G, B, C, hid1, hid2, z_dim):
    f32, bf16 = jnp.float32, jnp.bfloat16
    L = G * G * B
    npos = G * G

    def conv_block(a, w_ref, b_ref, tap_sids, cout_tot, act):
        # a: (cin_tot, L) f32.  One stacked bf16 MXU matmul for all taps,
        # then one (cout_tot, L) @ (L, L) shift matmul per coarse offset.
        a16 = a.astype(bf16)
        ball = jnp.dot(w_ref[...], a16, preferred_element_type=f32)
        ball = ball.astype(bf16)                       # (T*cout_tot, L)
        acc = jnp.zeros((cout_tot, L), f32)
        for t, sid in enumerate(tap_sids):
            acc = acc + jnp.dot(ball[t * cout_tot:(t + 1) * cout_tot, :],
                                sh_ref[sid],
                                preferred_element_type=f32)
        acc = acc + b_ref[...]                         # f32 epilogue
        if act == "relu":
            return jnp.maximum(acc, 0.0)
        if act == "sigmoid":
            return jax.nn.sigmoid(acc)
        return acc

    # -------- encoder: x -> z_suff_stat = {mu; logvar} --------
    e1 = conv_block(x_ref[...], w1_ref, b1_ref, sids[0], 4 * hid1, "relu")
    e2 = conv_block(e1, w2_ref, b2_ref, sids[1], hid2, "relu")

    e2b = e2.astype(bf16)
    zacc = jnp.zeros((2 * z_dim, B), f32)
    for s in range(npos):
        # 0/1 selection matmul picks the B lanes of coarse position s.
        e2s = jnp.dot(e2b, sel_ref[s], preferred_element_type=f32).astype(bf16)
        zacc = zacc + jnp.dot(wfe_ref[s], e2s, preferred_element_type=f32)
    z_suff_t = zacc + bfe_ref[...]                     # (2*z_dim, B)
    zs_ref[...] = z_suff_t

    # reparameterize, eval mode: z = mean (first z_dim rows)
    z_t = z_suff_t[:z_dim, :].astype(bf16)             # (z_dim, B)

    # -------- decoder: z -> x_shape, sigmoid fused --------
    d0 = jnp.zeros((hid2, L), f32)
    for s in range(npos):
        piece = jnp.dot(wfd_ref[s], z_t, preferred_element_type=f32) + bfd_ref[s]
        piece = jnp.maximum(piece, 0.0).astype(bf16)   # (hid2, B)
        d0 = d0 + jnp.dot(piece, selT_ref[s], preferred_element_type=f32)

    d1 = conv_block(d0, wd1_ref, bd1_ref, sids[2], 4 * hid1, "relu")
    rec = conv_block(d1, wd2_ref, bd2_ref, sids[3], 16 * C, "sigmoid")
    rec_ref[...] = rec


# ---------------------------------------------------------------------------
# Parameters.
# ---------------------------------------------------------------------------
def init_params(key, x_shape, z_dim, hid1=16, hid2=32):
    c, h, w = x_shape
    G = h // 4
    npos = G * G
    keys = jax.random.split(key, 8)

    def w_init(k, shape, fan_in):
        return jax.random.normal(k, shape, jnp.float32) * jnp.sqrt(2.0 / fan_in)

    return {
        # encoder (WideResNet stand-in): two stride-2 convs + linear head
        "e_conv1_w": w_init(keys[0], (hid1, c, 3, 3), c * 9),
        "e_conv1_b": jnp.zeros((hid1,), jnp.float32),
        "e_conv2_w": w_init(keys[1], (hid2, hid1, 3, 3), hid1 * 9),
        "e_conv2_b": jnp.zeros((hid2,), jnp.float32),
        # fc weights stored per coarse position: (npos, 2*z_dim, hid2)
        "e_fc_w": w_init(keys[2], (npos, 2 * z_dim, hid2), hid2 * npos),
        "e_fc_b": jnp.zeros((2 * z_dim,), jnp.float32),
        # decoder (ReversedSimpleCNN stand-in): linear + two upsample-convs
        "d_fc_w": w_init(keys[3], (npos, hid2, z_dim), z_dim),
        "d_fc_b": jnp.zeros((npos, hid2), jnp.float32),
        "d_conv1_w": w_init(keys[4], (hid1, hid2, 3, 3), hid2 * 9),
        "d_conv1_b": jnp.zeros((hid1,), jnp.float32),
        "d_conv2_w": w_init(keys[5], (c, hid1, 3, 3), hid1 * 9),
        "d_conv2_b": jnp.zeros((c,), jnp.float32),
    }


def prepare_kernel_params(params, x_shape, z_dim, batch, hid1=16, hid2=32):
    """One-time repack of the weights into the fused kernel's layout."""
    C, H, W = x_shape
    assert H == W and H % 4 == 0
    G = H // 4
    B = batch
    L = G * G * B
    npos = G * G

    sh = _build_shift_matrices(G, B)                         # (9, L, L)
    sel = np.zeros((npos, L, B), np.float32)                 # lane pickers
    for s in range(npos):
        for b in range(B):
            sel[s, s * B + b, b] = 1.0
    selT = np.ascontiguousarray(np.transpose(sel, (0, 2, 1)))

    w1, sid1 = _remap_conv(np.asarray(params["e_conv1_w"], np.float32),
                           f_in=4, f_out=2, stride=2, upsample=1)
    w2, sid2 = _remap_conv(np.asarray(params["e_conv2_w"], np.float32),
                           f_in=2, f_out=1, stride=2, upsample=1)
    w3, sid3 = _remap_conv(np.asarray(params["d_conv1_w"], np.float32),
                           f_in=1, f_out=2, stride=1, upsample=2)
    w4, sid4 = _remap_conv(np.asarray(params["d_conv2_w"], np.float32),
                           f_in=2, f_out=4, stride=1, upsample=2)

    def flat(wstack):
        return wstack.reshape(-1, wstack.shape[-1])

    def tile_bias(b, phases):
        return np.tile(np.asarray(b, np.float32), phases)[:, None]

    kp = {
        "sh": jnp.asarray(sh, jnp.bfloat16),
        "sel": jnp.asarray(sel, jnp.bfloat16),
        "selT": jnp.asarray(selT, jnp.bfloat16),
        "w1": jnp.asarray(flat(w1), jnp.bfloat16),
        "b1": jnp.asarray(tile_bias(params["e_conv1_b"], 4)),
        "w2": jnp.asarray(flat(w2), jnp.bfloat16),
        "b2": jnp.asarray(tile_bias(params["e_conv2_b"], 1)),
        "wfe": jnp.asarray(params["e_fc_w"], jnp.bfloat16),
        "bfe": jnp.asarray(np.asarray(params["e_fc_b"], np.float32)[:, None]),
        "wfd": jnp.asarray(params["d_fc_w"], jnp.bfloat16),
        "bfd": jnp.asarray(np.asarray(params["d_fc_b"], np.float32)[:, :, None]),
        "wd1": jnp.asarray(flat(w3), jnp.bfloat16),
        "bd1": jnp.asarray(tile_bias(params["d_conv1_b"], 4)),
        "wd2": jnp.asarray(flat(w4), jnp.bfloat16),
        "bd2": jnp.asarray(tile_bias(params["d_conv2_b"], 16)),
    }

    # advisory cost estimate for XLA scheduling
    def mm(m, k, n):
        return 2 * m * k * n

    flops = 0
    for wcat, sids_l, cout_tot in ((w1, sid1, 4 * hid1), (w2, sid2, hid2),
                                   (w3, sid3, 4 * hid1), (w4, sid4, 16 * C)):
        rows, cin = flat(wcat).shape
        flops += mm(rows, cin, L) + len(sids_l) * mm(cout_tot, L, L)
    flops += npos * (mm(hid2, L, B) + mm(2 * z_dim, hid2, B))   # encoder fc
    flops += npos * (mm(hid2, z_dim, B) + mm(hid2, B, L))       # decoder fc
    transc = 16 * C * L                                          # sigmoid
    bytes_accessed = (16 * C) * L * 4 + (2 * z_dim * B + 16 * C * L) * 4
    bytes_accessed += sum(int(np.prod(v.shape)) * v.dtype.itemsize
                          for v in kp.values())

    cfg = {
        "G": G, "B": B, "C": C, "hid1": hid1, "hid2": hid2, "z_dim": z_dim,
        "sids": (tuple(sid1), tuple(sid2), tuple(sid3), tuple(sid4)),
        "flops": int(flops), "transc": int(transc), "bytes": int(bytes_accessed),
    }
    return kp, cfg


# ---------------------------------------------------------------------------
# Forward wrapper (eval mode: reparameterize returns the mean).
# ---------------------------------------------------------------------------
def vae_forward(kp, X, *, cfg):
    G, B, C = cfg["G"], cfg["B"], cfg["C"]
    hid1, hid2, z_dim = cfg["hid1"], cfg["hid2"], cfg["z_dim"]
    L = G * G * B
    H = W = 4 * G

    # NCHW -> phase-split channel-major layout: (16*C, G*G*B)
    x16 = (X.reshape(B, C, G, 4, G, 4)
            .transpose(3, 5, 1, 2, 4, 0)
            .reshape(16 * C, L))

    kernel = functools.partial(
        _vae_fused_kernel, sids=cfg["sids"], G=G, B=B, C=C,
        hid1=hid1, hid2=hid2, z_dim=z_dim)

    z_suff_t, rec16 = pl.pallas_call(
        kernel,
        out_shape=(jax.ShapeDtypeStruct((2 * z_dim, B), jnp.float32),
                   jax.ShapeDtypeStruct((16 * C, L), jnp.float32)),
        cost_estimate=pl.CostEstimate(flops=cfg["flops"],
                                      transcendentals=cfg["transc"],
                                      bytes_accessed=cfg["bytes"]),
        compiler_params=pltpu.CompilerParams(vmem_limit_bytes=32 * 1024 * 1024),
    )(x16, kp["sh"], kp["sel"], kp["selT"],
      kp["w1"], kp["b1"], kp["w2"], kp["b2"],
      kp["wfe"], kp["bfe"], kp["wfd"], kp["bfd"],
      kp["wd1"], kp["bd1"], kp["wd2"], kp["bd2"])

    z_suff_stat = z_suff_t.T                       # (B, 2*z_dim) = {mu; logvar}
    z_sample = z_suff_stat[:, :z_dim]              # eval-mode reparameterize
    reconstruct = (rec16.reshape(4, 4, C, G, G, B)
                        .transpose(5, 2, 3, 0, 4, 1)
                        .reshape(B, C, H, W))
    return z_sample, z_suff_stat, reconstruct


if __name__ == "__main__":
    x_shape = (4, 16, 16)   # (C, H, W)
    z_dim = 64
    batch = 2

    key = jax.random.PRNGKey(0)
    k_param, k_data = jax.random.split(key)
    params = init_params(k_param, x_shape, z_dim)
    kparams, cfg = prepare_kernel_params(params, x_shape, z_dim, batch)
    X = jax.random.uniform(k_data, (batch,) + x_shape, jnp.float32)

    fwd = jax.jit(functools.partial(vae_forward, cfg=cfg))
    z_sample, z_suff_stat, reconstruct = fwd(kparams, X)
    jax.block_until_ready((z_sample, z_suff_stat, reconstruct))

    assert z_sample.shape == (batch, z_dim)
    assert z_suff_stat.shape == (batch, 2 * z_dim)
    assert reconstruct.shape == (batch,) + x_shape
    assert bool(jnp.all((reconstruct >= 0.0) & (reconstruct <= 1.0)))

    print("KERNEL_OK")
</pallas_src>

<mosaic_0001>
module attributes {stable_mosaic.version = 11 : i64} {
  func.func @_vae_fused_kernel(%arg0: memref<64x32xf32, #tpu.memory_space<vmem>>, %arg1: memref<9x32x32xbf16, #tpu.memory_space<vmem>>, %arg2: memref<16x32x2xbf16, #tpu.memory_space<vmem>>, %arg3: memref<16x2x32xbf16, #tpu.memory_space<vmem>>, %arg4: memref<256x64xbf16, #tpu.memory_space<vmem>>, %arg5: memref<64x1xf32, #tpu.memory_space<vmem>>, %arg6: memref<128x64xbf16, #tpu.memory_space<vmem>>, %arg7: memref<32x1xf32, #tpu.memory_space<vmem>>, %arg8: memref<16x128x32xbf16, #tpu.memory_space<vmem>>, %arg9: memref<128x1xf32, #tpu.memory_space<vmem>>, %arg10: memref<16x32x64xbf16, #tpu.memory_space<vmem>>, %arg11: memref<16x32x1xf32, #tpu.memory_space<vmem>>, %arg12: memref<576x32xbf16, #tpu.memory_space<vmem>>, %arg13: memref<64x1xf32, #tpu.memory_space<vmem>>, %arg14: memref<576x64xbf16, #tpu.memory_space<vmem>>, %arg15: memref<64x1xf32, #tpu.memory_space<vmem>>, %arg16: memref<128x2xf32, #tpu.memory_space<vmem>>, %arg17: memref<64x32xf32, #tpu.memory_space<vmem>>) attributes {dimension_semantics = [], scalar_prefetch = 0 : i64, scratch_operands = 0 : i64, tpu.core_type = #tpu.core_type<tc>} {
    %c0 = arith.constant 0 : index
    %c0_0 = arith.constant 0 : index
    %0 = vector.load %arg0[%c0, %c0_0] : memref<64x32xf32, #tpu.memory_space<vmem>>, vector<64x32xf32>
    %1 = arith.truncf %0 : vector<64x32xf32> to vector<64x32xbf16>
    %c0_1 = arith.constant 0 : index
    %c0_2 = arith.constant 0 : index
    %2 = vector.load %arg4[%c0_1, %c0_2] : memref<256x64xbf16, #tpu.memory_space<vmem>>, vector<256x64xbf16>
    %cst = arith.constant dense<0.000000e+00> : vector<256x32xf32>
    %3 = tpu.matmul %2, %1, %cst {dimension_numbers = #tpu.dot_dimension_numbers<[1], [0], [0], [1], [0, 0, 1, 1], [], []>} : vector<256x64xbf16>, vector<64x32xbf16>, vector<256x32xf32> -> vector<256x32xf32>
    %4 = arith.truncf %3 : vector<256x32xf32> to vector<256x32xbf16>
    %cst_3 = arith.constant 0.000000e+00 : f32
    %5 = vector.broadcast %cst_3 : f32 to vector<64x32xf32>
    %6 = vector.extract_strided_slice %4 {offsets = [0, 0], sizes = [64, 32], strides = [1, 1]} : vector<256x32xbf16> to vector<64x32xbf16>
    %c0_4 = arith.constant 0 : index
    %c0_5 = arith.constant 0 : index
    %c0_6 = arith.constant 0 : index
    %7 = vector.load %arg1[%c0_4, %c0_5, %c0_6] : memref<9x32x32xbf16, #tpu.memory_space<vmem>>, vector<1x32x32xbf16>
    %8 = vector.shape_cast %7 : vector<1x32x32xbf16> to vector<32x32xbf16>
    %cst_7 = arith.constant dense<0.000000e+00> : vector<64x32xf32>
    %9 = tpu.matmul %6, %8, %cst_7 {dimension_numbers = #tpu.dot_dimension_numbers<[1], [0], [0], [1], [0, 0, 1, 1], [], []>} : vector<64x32xbf16>, vector<32x32xbf16>, vector<64x32xf32> -> vector<64x32xf32>
    %10 = arith.addf %5, %9 : vector<64x32xf32>
    %11 = vector.extract_strided_slice %4 {offsets = [64, 0], sizes = [64, 32], strides = [1, 1]} : vector<256x32xbf16> to vector<64x32xbf16>
    %c1 = arith.constant 1 : index
    %c0_8 = arith.constant 0 : index
    %c0_9 = arith.constant 0 : index
    %12 = vector.load %arg1[%c1, %c0_8, %c0_9] : memref<9x32x32xbf16, #tpu.memory_space<vmem>>, vector<1x32x32xbf16>
    %13 = vector.shape_cast %12 : vector<1x32x32xbf16> to vector<32x32xbf16>
    %cst_10 = arith.constant dense<0.000000e+00> : vector<64x32xf32>
    %14 = tpu.matmul %11, %13, %cst_10 {dimension_numbers = #tpu.dot_dimension_numbers<[1], [0], [0], [1], [0, 0, 1, 1], [], []>} : vector<64x32xbf16>, vector<32x32xbf16>, vector<64x32xf32> -> vector<64x32xf32>
    %15 = arith.addf %10, %14 : vector<64x32xf32>
    %16 = vector.extract_strided_slice %4 {offsets = [128, 0], sizes = [64, 32], strides = [1, 1]} : vector<256x32xbf16> to vector<64x32xbf16>
    %c3 = arith.constant 3 : index
    %c0_11 = arith.constant 0 : index
    %c0_12 = arith.constant 0 : index
    %17 = vector.load %arg1[%c3, %c0_11, %c0_12] : memref<9x32x32xbf16, #tpu.memory_space<vmem>>, vector<1x32x32xbf16>
    %18 = vector.shape_cast %17 : vector<1x32x32xbf16> to vector<32x32xbf16>
    %cst_13 = arith.constant dense<0.000000e+00> : vector<64x32xf32>
    %19 = tpu.matmul %16, %18, %cst_13 {dimension_numbers = #tpu.dot_dimension_numbers<[1], [0], [0], [1], [0, 0, 1, 1], [], []>} : vector<64x32xbf16>, vector<32x32xbf16>, vector<64x32xf32> -> vector<64x32xf32>
    %20 = arith.addf %15, %19 : vector<64x32xf32>
    %21 = vector.extract_strided_slice %4 {offsets = [192, 0], sizes = [64, 32], strides = [1, 1]} : vector<256x32xbf16> to vector<64x32xbf16>
    %c4 = arith.constant 4 : index
    %c0_14 = arith.constant 0 : index
    %c0_15 = arith.constant 0 : index
    %22 = vector.load %arg1[%c4, %c0_14, %c0_15] : memref<9x32x32xbf16, #tpu.memory_space<vmem>>, vector<1x32x32xbf16>
    %23 = vector.shape_cast %22 : vector<1x32x32xbf16> to vector<32x32xbf16>
    %cst_16 = arith.constant dense<0.000000e+00> : vector<64x32xf32>
    %24 = tpu.matmul %21, %23, %cst_16 {dimension_numbers = #tpu.dot_dimension_numbers<[1], [0], [0], [1], [0, 0, 1, 1], [], []>} : vector<64x32xbf16>, vector<32x32xbf16>, vector<64x32xf32> -> vector<64x32xf32>
    %25 = arith.addf %20, %24 : vector<64x32xf32>
    %c0_17 = arith.constant 0 : index
    %c0_18 = arith.constant 0 : index
    %26 = vector.load %arg5[%c0_17, %c0_18] : memref<64x1xf32, #tpu.memory_space<vmem>>, vector<64x1xf32>
    %27 = vector.broadcast %26 : vector<64x1xf32> to vector<64x32xf32>
    %28 = arith.addf %25, %27 : vector<64x32xf32>
    %cst_19 = arith.constant 0.000000e+00 : f32
    %29 = vector.broadcast %cst_19 : f32 to vector<64x32xf32>
    %30 = arith.maximumf %28, %29 : vector<64x32xf32>
    %31 = arith.truncf %30 : vector<64x32xf32> to vector<64x32xbf16>
    %c0_20 = arith.constant 0 : index
    %c0_21 = arith.constant 0 : index
    %32 = vector.load %arg6[%c0_20, %c0_21] : memref<128x64xbf16, #tpu.memory_space<vmem>>, vector<128x64xbf16>
    %cst_22 = arith.constant dense<0.000000e+00> : vector<128x32xf32>
    %33 = tpu.matmul %32, %31, %cst_22 {dimension_numbers = #tpu.dot_dimension_numbers<[1], [0], [0], [1], [0, 0, 1, 1], [], []>} : vector<128x64xbf16>, vector<64x32xbf16>, vector<128x32xf32> -> vector<128x32xf32>
    %34 = arith.truncf %33 : vector<128x32xf32> to vector<128x32xbf16>
    %cst_23 = arith.constant 0.000000e+00 : f32
    %35 = vector.broadcast %cst_23 : f32 to vector<32x32xf32>
    %36 = vector.extract_strided_slice %34 {offsets = [0, 0], sizes = [32, 32], strides = [1, 1]} : vector<128x32xbf16> to vector<32x32xbf16>
    %c0_24 = arith.constant 0 : index
    %c0_25 = arith.constant 0 : index
    %c0_26 = arith.constant 0 : index
    %37 = vector.load %arg1[%c0_24, %c0_25, %c0_26] : memref<9x32x32xbf16, #tpu.memory_space<vmem>>, vector<1x32x32xbf16>
    %38 = vector.shape_cast %37 : vector<1x32x32xbf16> to vector<32x32xbf16>
    %cst_27 = arith.constant dense<0.000000e+00> : vector<32x32xf32>
    %39 = tpu.matmul %36, %38, %cst_27 {dimension_numbers = #tpu.dot_dimension_numbers<[1], [0], [0], [1], [0, 0, 1, 1], [], []>} : vector<32x32xbf16>, vector<32x32xbf16>, vector<32x32xf32> -> vector<32x32xf32>
    %40 = arith.addf %35, %39 : vector<32x32xf32>
    %41 = vector.extract_strided_slice %34 {offsets = [32, 0], sizes = [32, 32], strides = [1, 1]} : vector<128x32xbf16> to vector<32x32xbf16>
    %c1_28 = arith.constant 1 : index
    %c0_29 = arith.constant 0 : index
    %c0_30 = arith.constant 0 : index
    %42 = vector.load %arg1[%c1_28, %c0_29, %c0_30] : memref<9x32x32xbf16, #tpu.memory_space<vmem>>, vector<1x32x32xbf16>
    %43 = vector.shape_cast %42 : vector<1x32x32xbf16> to vector<32x32xbf16>
    %cst_31 = arith.constant dense<0.000000e+00> : vector<32x32xf32>
    %44 = tpu.matmul %41, %43, %cst_31 {dimension_numbers = #tpu.dot_dimension_numbers<[1], [0], [0], [1], [0, 0, 1, 1], [], []>} : vector<32x32xbf16>, vector<32x32xbf16>, vector<32x32xf32> -> vector<32x32xf32>
    %45 = arith.addf %40, %44 : vector<32x32xf32>
    %46 = vector.extract_strided_slice %34 {offsets = [64, 0], sizes = [32, 32], strides = [1, 1]} : vector<128x32xbf16> to vector<32x32xbf16>
    %c3_32 = arith.constant 3 : index
    %c0_33 = arith.constant 0 : index
    %c0_34 = arith.constant 0 : index
    %47 = vector.load %arg1[%c3_32, %c0_33, %c0_34] : memref<9x32x32xbf16, #tpu.memory_space<vmem>>, vector<1x32x32xbf16>
    %48 = vector.shape_cast %47 : vector<1x32x32xbf16> to vector<32x32xbf16>
    %cst_35 = arith.constant dense<0.000000e+00> : vector<32x32xf32>
    %49 = tpu.matmul %46, %48, %cst_35 {dimension_numbers = #tpu.dot_dimension_numbers<[1], [0], [0], [1], [0, 0, 1, 1], [], []>} : vector<32x32xbf16>, vector<32x32xbf16>, vector<32x32xf32> -> vector<32x32xf32>
    %50 = arith.addf %45, %49 : vector<32x32xf32>
    %51 = vector.extract_strided_slice %34 {offsets = [96, 0], sizes = [32, 32], strides = [1, 1]} : vector<128x32xbf16> to vector<32x32xbf16>
    %c4_36 = arith.constant 4 : index
    %c0_37 = arith.constant 0 : index
    %c0_38 = arith.constant 0 : index
    %52 = vector.load %arg1[%c4_36, %c0_37, %c0_38] : memref<9x32x32xbf16, #tpu.memory_space<vmem>>, vector<1x32x32xbf16>
    %53 = vector.shape_cast %52 : vector<1x32x32xbf16> to vector<32x32xbf16>
    %cst_39 = arith.constant dense<0.000000e+00> : vector<32x32xf32>
    %54 = tpu.matmul %51, %53, %cst_39 {dimension_numbers = #tpu.dot_dimension_numbers<[1], [0], [0], [1], [0, 0, 1, 1], [], []>} : vector<32x32xbf16>, vector<32x32xbf16>, vector<32x32xf32> -> vector<32x32xf32>
    %55 = arith.addf %50, %54 : vector<32x32xf32>
    %c0_40 = arith.constant 0 : index
    %c0_41 = arith.constant 0 : index
    %56 = vector.load %arg7[%c0_40, %c0_41] : memref<32x1xf32, #tpu.memory_space<vmem>>, vector<32x1xf32>
    %57 = vector.broadcast %56 : vector<32x1xf32> to vector<32x32xf32>
    %58 = arith.addf %55, %57 : vector<32x32xf32>
    %cst_42 = arith.constant 0.000000e+00 : f32
    %59 = vector.broadcast %cst_42 : f32 to vector<32x32xf32>
    %60 = arith.maximumf %58, %59 : vector<32x32xf32>
    %61 = arith.truncf %60 : vector<32x32xf32> to vector<32x32xbf16>
    %cst_43 = arith.constant 0.000000e+00 : f32
    %62 = vector.broadcast %cst_43 : f32 to vector<128x2xf32>
    %c0_44 = arith.constant 0 : index
    %c0_45 = arith.constant 0 : index
    %c0_46 = arith.constant 0 : index
    %63 = vector.load %arg2[%c0_44, %c0_45, %c0_46] : memref<16x32x2xbf16, #tpu.memory_space<vmem>>, vector<1x32x2xbf16>
    %64 = vector.shape_cast %63 : vector<1x32x2xbf16> to vector<32x2xbf16>
    %cst_47 = arith.constant dense<0.000000e+00> : vector<32x2xf32>
    %65 = tpu.matmul %61, %64, %cst_47 {dimension_numbers = #tpu.dot_dimension_numbers<[1], [0], [0], [1], [0, 0, 1, 1], [], []>} : vector<32x32xbf16>, vector<32x2xbf16>, vector<32x2xf32> -> vector<32x2xf32>
    %66 = arith.truncf %65 : vector<32x2xf32> to vector<32x2xbf16>
    %c0_48 = arith.constant 0 : index
    %c0_49 = arith.constant 0 : index
    %c0_50 = arith.constant 0 : index
    %67 = vector.load %arg8[%c0_48, %c0_49, %c0_50] : memref<16x128x32xbf16, #tpu.memory_space<vmem>>, vector<1x128x32xbf16>
    %68 = vector.shape_cast %67 : vector<1x128x32xbf16> to vector<128x32xbf16>
    %cst_51 = arith.constant dense<0.000000e+00> : vector<128x2xf32>
    %69 = tpu.matmul %68, %66, %cst_51 {dimension_numbers = #tpu.dot_dimension_numbers<[1], [0], [0], [1], [0, 0, 1, 1], [], []>} : vector<128x32xbf16>, vector<32x2xbf16>, vector<128x2xf32> -> vector<128x2xf32>
    %70 = arith.addf %62, %69 : vector<128x2xf32>
    %c1_52 = arith.constant 1 : index
    %c0_53 = arith.constant 0 : index
    %c0_54 = arith.constant 0 : index
    %71 = vector.load %arg2[%c1_52, %c0_53, %c0_54] : memref<16x32x2xbf16, #tpu.memory_space<vmem>>, vector<1x32x2xbf16>
    %72 = vector.shape_cast %71 : vector<1x32x2xbf16> to vector<32x2xbf16>
    %cst_55 = arith.constant dense<0.000000e+00> : vector<32x2xf32>
    %73 = tpu.matmul %61, %72, %cst_55 {dimension_numbers = #tpu.dot_dimension_numbers<[1], [0], [0], [1], [0, 0, 1, 1], [], []>} : vector<32x32xbf16>, vector<32x2xbf16>, vector<32x2xf32> -> vector<32x2xf32>
    %74 = arith.truncf %73 : vector<32x2xf32> to vector<32x2xbf16>
    %c1_56 = arith.constant 1 : index
    %c0_57 = arith.constant 0 : index
    %c0_58 = arith.constant 0 : index
    %75 = vector.load %arg8[%c1_56, %c0_57, %c0_58] : memref<16x128x32xbf16, #tpu.memory_space<vmem>>, vector<1x128x32xbf16>
    %76 = vector.shape_cast %75 : vector<1x128x32xbf16> to vector<128x32xbf16>
    %cst_59 = arith.constant dense<0.000000e+00> : vector<128x2xf32>
    %77 = tpu.matmul %76, %74, %cst_59 {dimension_numbers = #tpu.dot_dimension_numbers<[1], [0], [0], [1], [0, 0, 1, 1], [], []>} : vector<128x32xbf16>, vector<32x2xbf16>, vector<128x2xf32> -> vector<128x2xf32>
    %78 = arith.addf %70, %77 : vector<128x2xf32>
    %c2 = arith.constant 2 : index
    %c0_60 = arith.constant 0 : index
    %c0_61 = arith.constant 0 : index
    %79 = vector.load %arg2[%c2, %c0_60, %c0_61] : memref<16x32x2xbf16, #tpu.memory_space<vmem>>, vector<1x32x2xbf16>
    %80 = vector.shape_cast %79 : vector<1x32x2xbf16> to vector<32x2xbf16>
    %cst_62 = arith.constant dense<0.000000e+00> : vector<32x2xf32>
    %81 = tpu.matmul %61, %80, %cst_62 {dimension_numbers = #tpu.dot_dimension_numbers<[1], [0], [0], [1], [0, 0, 1, 1], [], []>} : vector<32x32xbf16>, vector<32x2xbf16>, vector<32x2xf32> -> vector<32x2xf32>
    %82 = arith.truncf %81 : vector<32x2xf32> to vector<32x2xbf16>
    %c2_63 = arith.constant 2 : index
    %c0_64 = arith.constant 0 : index
    %c0_65 = arith.constant 0 : index
    %83 = vector.load %arg8[%c2_63, %c0_64, %c0_65] : memref<16x128x32xbf16, #tpu.memory_space<vmem>>, vector<1x128x32xbf16>
    %84 = vector.shape_cast %83 : vector<1x128x32xbf16> to vector<128x32xbf16>
    %cst_66 = arith.constant dense<0.000000e+00> : vector<128x2xf32>
    %85 = tpu.matmul %84, %82, %cst_66 {dimension_numbers = #tpu.dot_dimension_numbers<[1], [0], [0], [1], [0, 0, 1, 1], [], []>} : vector<128x32xbf16>, vector<32x2xbf16>, vector<128x2xf32> -> vector<128x2xf32>
    %86 = arith.addf %78, %85 : vector<128x2xf32>
    %c3_67 = arith.constant 3 : index
    %c0_68 = arith.constant 0 : index
    %c0_69 = arith.constant 0 : index
    %87 = vector.load %arg2[%c3_67, %c0_68, %c0_69] : memref<16x32x2xbf16, #tpu.memory_space<vmem>>, vector<1x32x2xbf16>
    %88 = vector.shape_cast %87 : vector<1x32x2xbf16> to vector<32x2xbf16>
    %cst_70 = arith.constant dense<0.000000e+00> : vector<32x2xf32>
    %89 = tpu.matmul %61, %88, %cst_70 {dimension_numbers = #tpu.dot_dimension_numbers<[1], [0], [0], [1], [0, 0, 1, 1], [], []>} : vector<32x32xbf16>, vector<32x2xbf16>, vector<32x2xf32> -> vector<32x2xf32>
    %90 = arith.truncf %89 : vector<32x2xf32> to vector<32x2xbf16>
    %c3_71 = arith.constant 3 : index
    %c0_72 = arith.constant 0 : index
    %c0_73 = arith.constant 0 : index
    %91 = vector.load %arg8[%c3_71, %c0_72, %c0_73] : memref<16x128x32xbf16, #tpu.memory_space<vmem>>, vector<1x128x32xbf16>
    %92 = vector.shape_cast %91 : vector<1x128x32xbf16> to vector<128x32xbf16>
    %cst_74 = arith.constant dense<0.000000e+00> : vector<128x2xf32>
    %93 = tpu.matmul %92, %90, %cst_74 {dimension_numbers = #tpu.dot_dimension_numbers<[1], [0], [0], [1], [0, 0, 1, 1], [], []>} : vector<128x32xbf16>, vector<32x2xbf16>, vector<128x2xf32> -> vector<128x2xf32>
    %94 = arith.addf %86, %93 : vector<128x2xf32>
    %c4_75 = arith.constant 4 : index
    %c0_76 = arith.constant 0 : index
    %c0_77 = arith.constant 0 : index
    %95 = vector.load %arg2[%c4_75, %c0_76, %c0_77] : memref<16x32x2xbf16, #tpu.memory_space<vmem>>, vector<1x32x2xbf16>
    %96 = vector.shape_cast %95 : vector<1x32x2xbf16> to vector<32x2xbf16>
    %cst_78 = arith.constant dense<0.000000e+00> : vector<32x2xf32>
    %97 = tpu.matmul %61, %96, %cst_78 {dimension_numbers = #tpu.dot_dimension_numbers<[1], [0], [0], [1], [0, 0, 1, 1], [], []>} : vector<32x32xbf16>, vector<32x2xbf16>, vector<32x2xf32> -> vector<32x2xf32>
    %98 = arith.truncf %97 : vector<32x2xf32> to vector<32x2xbf16>
    %c4_79 = arith.constant 4 : index
    %c0_80 = arith.constant 0 : index
    %c0_81 = arith.constant 0 : index
    %99 = vector.load %arg8[%c4_79, %c0_80, %c0_81] : memref<16x128x32xbf16, #tpu.memory_space<vmem>>, vector<1x128x32xbf16>
    %100 = vector.shape_cast %99 : vector<1x128x32xbf16> to vector<128x32xbf16>
    %cst_82 = arith.constant dense<0.000000e+00> : vector<128x2xf32>
    %101 = tpu.matmul %100, %98, %cst_82 {dimension_numbers = #tpu.dot_dimension_numbers<[1], [0], [0], [1], [0, 0, 1, 1], [], []>} : vector<128x32xbf16>, vector<32x2xbf16>, vector<128x2xf32> -> vector<128x2xf32>
    %102 = arith.addf %94, %101 : vector<128x2xf32>
    %c5 = arith.constant 5 : index
    %c0_83 = arith.constant 0 : index
    %c0_84 = arith.constant 0 : index
    %103 = vector.load %arg2[%c5, %c0_83, %c0_84] : memref<16x32x2xbf16, #tpu.memory_space<vmem>>, vector<1x32x2xbf16>
    %104 = vector.shape_cast %103 : vector<1x32x2xbf16> to vector<32x2xbf16>
    %cst_85 = arith.constant dense<0.000000e+00> : vector<32x2xf32>
    %105 = tpu.matmul %61, %104, %cst_85 {dimension_numbers = #tpu.dot_dimension_numbers<[1], [0], [0], [1], [0, 0, 1, 1], [], []>} : vector<32x32xbf16>, vector<32x2xbf16>, vector<32x2xf32> -> vector<32x2xf32>
    %106 = arith.truncf %105 : vector<32x2xf32> to vector<32x2xbf16>
    %c5_86 = arith.constant 5 : index
    %c0_87 = arith.constant 0 : index
    %c0_88 = arith.constant 0 : index
    %107 = vector.load %arg8[%c5_86, %c0_87, %c0_88] : memref<16x128x32xbf16, #tpu.memory_space<vmem>>, vector<1x128x32xbf16>
    %108 = vector.shape_cast %107 : vector<1x128x32xbf16> to vector<128x32xbf16>
    %cst_89 = arith.constant dense<0.000000e+00> : vector<128x2xf32>
    %109 = tpu.matmul %108, %106, %cst_89 {dimension_numbers = #tpu.dot_dimension_numbers<[1], [0], [0], [1], [0, 0, 1, 1], [], []>} : vector<128x32xbf16>, vector<32x2xbf16>, vector<128x2xf32> -> vector<128x2xf32>
    %110 = arith.addf %102, %109 : vector<128x2xf32>
    %c6 = arith.constant 6 : index
    %c0_90 = arith.constant 0 : index
    %c0_91 = arith.constant 0 : index
    %111 = vector.load %arg2[%c6, %c0_90, %c0_91] : memref<16x32x2xbf16, #tpu.memory_space<vmem>>, vector<1x32x2xbf16>
    %112 = vector.shape_cast %111 : vector<1x32x2xbf16> to vector<32x2xbf16>
    %cst_92 = arith.constant dense<0.000000e+00> : vector<32x2xf32>
    %113 = tpu.matmul %61, %112, %cst_92 {dimension_numbers = #tpu.dot_dimension_numbers<[1], [0], [0], [1], [0, 0, 1, 1], [], []>} : vector<32x32xbf16>, vector<32x2xbf16>, vector<32x2xf32> -> vector<32x2xf32>
    %114 = arith.truncf %113 : vector<32x2xf32> to vector<32x2xbf16>
    %c6_93 = arith.constant 6 : index
    %c0_94 = arith.constant 0 : index
    %c0_95 = arith.constant 0 : index
    %115 = vector.load %arg8[%c6_93, %c0_94, %c0_95] : memref<16x128x32xbf16, #tpu.memory_space<vmem>>, vector<1x128x32xbf16>
    %116 = vector.shape_cast %115 : vector<1x128x32xbf16> to vector<128x32xbf16>
    %cst_96 = arith.constant dense<0.000000e+00> : vector<128x2xf32>
    %117 = tpu.matmul %116, %114, %cst_96 {dimension_numbers = #tpu.dot_dimension_numbers<[1], [0], [0], [1], [0, 0, 1, 1], [], []>} : vector<128x32xbf16>, vector<32x2xbf16>, vector<128x2xf32> -> vector<128x2xf32>
    %118 = arith.addf %110, %117 : vector<128x2xf32>
    %c7 = arith.constant 7 : index
    %c0_97 = arith.constant 0 : index
    %c0_98 = arith.constant 0 : index
    %119 = vector.load %arg2[%c7, %c0_97, %c0_98] : memref<16x32x2xbf16, #tpu.memory_space<vmem>>, vector<1x32x2xbf16>
    %120 = vector.shape_cast %119 : vector<1x32x2xbf16> to vector<32x2xbf16>
    %cst_99 = arith.constant dense<0.000000e+00> : vector<32x2xf32>
    %121 = tpu.matmul %61, %120, %cst_99 {dimension_numbers = #tpu.dot_dimension_numbers<[1], [0], [0], [1], [0, 0, 1, 1], [], []>} : vector<32x32xbf16>, vector<32x2xbf16>, vector<32x2xf32> -> vector<32x2xf32>
    %122 = arith.truncf %121 : vector<32x2xf32> to vector<32x2xbf16>
    %c7_100 = arith.constant 7 : index
    %c0_101 = arith.constant 0 : index
    %c0_102 = arith.constant 0 : index
    %123 = vector.load %arg8[%c7_100, %c0_101, %c0_102] : memref<16x128x32xbf16, #tpu.memory_space<vmem>>, vector<1x128x32xbf16>
    %124 = vector.shape_cast %123 : vector<1x128x32xbf16> to vector<128x32xbf16>
    %cst_103 = arith.constant dense<0.000000e+00> : vector<128x2xf32>
    %125 = tpu.matmul %124, %122, %cst_103 {dimension_numbers = #tpu.dot_dimension_numbers<[1], [0], [0], [1], [0, 0, 1, 1], [], []>} : vector<128x32xbf16>, vector<32x2xbf16>, vector<128x2xf32> -> vector<128x2xf32>
    %126 = arith.addf %118, %125 : vector<128x2xf32>
    %c8 = arith.constant 8 : index
    %c0_104 = arith.constant 0 : index
    %c0_105 = arith.constant 0 : index
    %127 = vector.load %arg2[%c8, %c0_104, %c0_105] : memref<16x32x2xbf16, #tpu.memory_space<vmem>>, vector<1x32x2xbf16>
    %128 = vector.shape_cast %127 : vector<1x32x2xbf16> to vector<32x2xbf16>
    %cst_106 = arith.constant dense<0.000000e+00> : vector<32x2xf32>
    %129 = tpu.matmul %61, %128, %cst_106 {dimension_numbers = #tpu.dot_dimension_numbers<[1], [0], [0], [1], [0, 0, 1, 1], [], []>} : vector<32x32xbf16>, vector<32x2xbf16>, vector<32x2xf32> -> vector<32x2xf32>
    %130 = arith.truncf %129 : vector<32x2xf32> to vector<32x2xbf16>
    %c8_107 = arith.constant 8 : index
    %c0_108 = arith.constant 0 : index
    %c0_109 = arith.constant 0 : index
    %131 = vector.load %arg8[%c8_107, %c0_108, %c0_109] : memref<16x128x32xbf16, #tpu.memory_space<vmem>>, vector<1x128x32xbf16>
    %132 = vector.shape_cast %131 : vector<1x128x32xbf16> to vector<128x32xbf16>
    %cst_110 = arith.constant dense<0.000000e+00> : vector<128x2xf32>
    %133 = tpu.matmul %132, %130, %cst_110 {dimension_numbers = #tpu.dot_dimension_numbers<[1], [0], [0], [1], [0, 0, 1, 1], [], []>} : vector<128x32xbf16>, vector<32x2xbf16>, vector<128x2xf32> -> vector<128x2xf32>
    %134 = arith.addf %126, %133 : vector<128x2xf32>
    %c9 = arith.constant 9 : index
    %c0_111 = arith.constant 0 : index
    %c0_112 = arith.constant 0 : index
    %135 = vector.load %arg2[%c9, %c0_111, %c0_112] : memref<16x32x2xbf16, #tpu.memory_space<vmem>>, vector<1x32x2xbf16>
    %136 = vector.shape_cast %135 : vector<1x32x2xbf16> to vector<32x2xbf16>
    %cst_113 = arith.constant dense<0.000000e+00> : vector<32x2xf32>
    %137 = tpu.matmul %61, %136, %cst_113 {dimension_numbers = #tpu.dot_dimension_numbers<[1], [0], [0], [1], [0, 0, 1, 1], [], []>} : vector<32x32xbf16>, vector<32x2xbf16>, vector<32x2xf32> -> vector<32x2xf32>
    %138 = arith.truncf %137 : vector<32x2xf32> to vector<32x2xbf16>
    %c9_114 = arith.constant 9 : index
    %c0_115 = arith.constant 0 : index
    %c0_116 = arith.constant 0 : index
    %139 = vector.load %arg8[%c9_114, %c0_115, %c0_116] : memref<16x128x32xbf16, #tpu.memory_space<vmem>>, vector<1x128x32xbf16>
    %140 = vector.shape_cast %139 : vector<1x128x32xbf16> to vector<128x32xbf16>
    %cst_117 = arith.constant dense<0.000000e+00> : vector<128x2xf32>
    %141 = tpu.matmul %140, %138, %cst_117 {dimension_numbers = #tpu.dot_dimension_numbers<[1], [0], [0], [1], [0, 0, 1, 1], [], []>} : vector<128x32xbf16>, vector<32x2xbf16>, vector<128x2xf32> -> vector<128x2xf32>
    %142 = arith.addf %134, %141 : vector<128x2xf32>
    %c10 = arith.constant 10 : index
    %c0_118 = arith.constant 0 : index
    %c0_119 = arith.constant 0 : index
    %143 = vector.load %arg2[%c10, %c0_118, %c0_119] : memref<16x32x2xbf16, #tpu.memory_space<vmem>>, vector<1x32x2xbf16>
    %144 = vector.shape_cast %143 : vector<1x32x2xbf16> to vector<32x2xbf16>
    %cst_120 = arith.constant dense<0.000000e+00> : vector<32x2xf32>
    %145 = tpu.matmul %61, %144, %cst_120 {dimension_numbers = #tpu.dot_dimension_numbers<[1], [0], [0], [1], [0, 0, 1, 1], [], []>} : vector<32x32xbf16>, vector<32x2xbf16>, vector<32x2xf32> -> vector<32x2xf32>
    %146 = arith.truncf %145 : vector<32x2xf32> to vector<32x2xbf16>
    %c10_121 = arith.constant 10 : index
    %c0_122 = arith.constant 0 : index
    %c0_123 = arith.constant 0 : index
    %147 = vector.load %arg8[%c10_121, %c0_122, %c0_123] : memref<16x128x32xbf16, #tpu.memory_space<vmem>>, vector<1x128x32xbf16>
    %148 = vector.shape_cast %147 : vector<1x128x32xbf16> to vector<128x32xbf16>
    %cst_124 = arith.constant dense<0.000000e+00> : vector<128x2xf32>
    %149 = tpu.matmul %148, %146, %cst_124 {dimension_numbers = #tpu.dot_dimension_numbers<[1], [0], [0], [1], [0, 0, 1, 1], [], []>} : vector<128x32xbf16>, vector<32x2xbf16>, vector<128x2xf32> -> vector<128x2xf32>
    %150 = arith.addf %142, %149 : vector<128x2xf32>
    %c11 = arith.constant 11 : index
    %c0_125 = arith.constant 0 : index
    %c0_126 = arith.constant 0 : index
    %151 = vector.load %arg2[%c11, %c0_125, %c0_126] : memref<16x32x2xbf16, #tpu.memory_space<vmem>>, vector<1x32x2xbf16>
    %152 = vector.shape_cast %151 : vector<1x32x2xbf16> to vector<32x2xbf16>
    %cst_127 = arith.constant dense<0.000000e+00> : vector<32x2xf32>
    %153 = tpu.matmul %61, %152, %cst_127 {dimension_numbers = #tpu.dot_dimension_numbers<[1], [0], [0], [1], [0, 0, 1, 1], [], []>} : vector<32x32xbf16>, vector<32x2xbf16>, vector<32x2xf32> -> vector<32x2xf32>
    %154 = arith.truncf %153 : vector<32x2xf32> to vector<32x2xbf16>
    %c11_128 = arith.constant 11 : index
    %c0_129 = arith.constant 0 : index
    %c0_130 = arith.constant 0 : index
    %155 = vector.load %arg8[%c11_128, %c0_129, %c0_130] : memref<16x128x32xbf16, #tpu.memory_space<vmem>>, vector<1x128x32xbf16>
    %156 = vector.shape_cast %155 : vector<1x128x32xbf16> to vector<128x32xbf16>
    %cst_131 = arith.constant dense<0.000000e+00> : vector<128x2xf32>
    %157 = tpu.matmul %156, %154, %cst_131 {dimension_numbers = #tpu.dot_dimension_numbers<[1], [0], [0], [1], [0, 0, 1, 1], [], []>} : vector<128x32xbf16>, vector<32x2xbf16>, vector<128x2xf32> -> vector<128x2xf32>
    %158 = arith.addf %150, %157 : vector<128x2xf32>
    %c12 = arith.constant 12 : index
    %c0_132 = arith.constant 0 : index
    %c0_133 = arith.constant 0 : index
    %159 = vector.load %arg2[%c12, %c0_132, %c0_133] : memref<16x32x2xbf16, #tpu.memory_space<vmem>>, vector<1x32x2xbf16>
    %160 = vector.shape_cast %159 : vector<1x32x2xbf16> to vector<32x2xbf16>
    %cst_134 = arith.constant dense<0.000000e+00> : vector<32x2xf32>
    %161 = tpu.matmul %61, %160, %cst_134 {dimension_numbers = #tpu.dot_dimension_numbers<[1], [0], [0], [1], [0, 0, 1, 1], [], []>} : vector<32x32xbf16>, vector<32x2xbf16>, vector<32x2xf32> -> vector<32x2xf32>
    %162 = arith.truncf %161 : vector<32x2xf32> to vector<32x2xbf16>
    %c12_135 = arith.constant 12 : index
    %c0_136 = arith.constant 0 : index
    %c0_137 = arith.constant 0 : index
    %163 = vector.load %arg8[%c12_135, %c0_136, %c0_137] : memref<16x128x32xbf16, #tpu.memory_space<vmem>>, vector<1x128x32xbf16>
    %164 = vector.shape_cast %163 : vector<1x128x32xbf16> to vector<128x32xbf16>
    %cst_138 = arith.constant dense<0.000000e+00> : vector<128x2xf32>
    %165 = tpu.matmul %164, %162, %cst_138 {dimension_numbers = #tpu.dot_dimension_numbers<[1], [0], [0], [1], [0, 0, 1, 1], [], []>} : vector<128x32xbf16>, vector<32x2xbf16>, vector<128x2xf32> -> vector<128x2xf32>
    %166 = arith.addf %158, %165 : vector<128x2xf32>
    %c13 = arith.constant 13 : index
    %c0_139 = arith.constant 0 : index
    %c0_140 = arith.constant 0 : index
    %167 = vector.load %arg2[%c13, %c0_139, %c0_140] : memref<16x32x2xbf16, #tpu.memory_space<vmem>>, vector<1x32x2xbf16>
    %168 = vector.shape_cast %167 : vector<1x32x2xbf16> to vector<32x2xbf16>
    %cst_141 = arith.constant dense<0.000000e+00> : vector<32x2xf32>
    %169 = tpu.matmul %61, %168, %cst_141 {dimension_numbers = #tpu.dot_dimension_numbers<[1], [0], [0], [1], [0, 0, 1, 1], [], []>} : vector<32x32xbf16>, vector<32x2xbf16>, vector<32x2xf32> -> vector<32x2xf32>
    %170 = arith.truncf %169 : vector<32x2xf32> to vector<32x2xbf16>
    %c13_142 = arith.constant 13 : index
    %c0_143 = arith.constant 0 : index
    %c0_144 = arith.constant 0 : index
    %171 = vector.load %arg8[%c13_142, %c0_143, %c0_144] : memref<16x128x32xbf16, #tpu.memory_space<vmem>>, vector<1x128x32xbf16>
    %172 = vector.shape_cast %171 : vector<1x128x32xbf16> to vector<128x32xbf16>
    %cst_145 = arith.constant dense<0.000000e+00> : vector<128x2xf32>
    %173 = tpu.matmul %172, %170, %cst_145 {dimension_numbers = #tpu.dot_dimension_numbers<[1], [0], [0], [1], [0, 0, 1, 1], [], []>} : vector<128x32xbf16>, vector<32x2xbf16>, vector<128x2xf32> -> vector<128x2xf32>
    %174 = arith.addf %166, %173 : vector<128x2xf32>
    %c14 = arith.constant 14 : index
    %c0_146 = arith.constant 0 : index
    %c0_147 = arith.constant 0 : index
    %175 = vector.load %arg2[%c14, %c0_146, %c0_147] : memref<16x32x2xbf16, #tpu.memory_space<vmem>>, vector<1x32x2xbf16>
    %176 = vector.shape_cast %175 : vector<1x32x2xbf16> to vector<32x2xbf16>
    %cst_148 = arith.constant dense<0.000000e+00> : vector<32x2xf32>
    %177 = tpu.matmul %61, %176, %cst_148 {dimension_numbers = #tpu.dot_dimension_numbers<[1], [0], [0], [1], [0, 0, 1, 1], [], []>} : vector<32x32xbf16>, vector<32x2xbf16>, vector<32x2xf32> -> vector<32x2xf32>
    %178 = arith.truncf %177 : vector<32x2xf32> to vector<32x2xbf16>
    %c14_149 = arith.constant 14 : index
    %c0_150 = arith.constant 0 : index
    %c0_151 = arith.constant 0 : index
    %179 = vector.load %arg8[%c14_149, %c0_150, %c0_151] : memref<16x128x32xbf16, #tpu.memory_space<vmem>>, vector<1x128x32xbf16>
    %180 = vector.shape_cast %179 : vector<1x128x32xbf16> to vector<128x32xbf16>
    %cst_152 = arith.constant dense<0.000000e+00> : vector<128x2xf32>
    %181 = tpu.matmul %180, %178, %cst_152 {dimension_numbers = #tpu.dot_dimension_numbers<[1], [0], [0], [1], [0, 0, 1, 1], [], []>} : vector<128x32xbf16>, vector<32x2xbf16>, vector<128x2xf32> -> vector<128x2xf32>
    %182 = arith.addf %174, %181 : vector<128x2xf32>
    %c15 = arith.constant 15 : index
    %c0_153 = arith.constant 0 : index
    %c0_154 = arith.constant 0 : index
    %183 = vector.load %arg2[%c15, %c0_153, %c0_154] : memref<16x32x2xbf16, #tpu.memory_space<vmem>>, vector<1x32x2xbf16>
    %184 = vector.shape_cast %183 : vector<1x32x2xbf16> to vector<32x2xbf16>
    %cst_155 = arith.constant dense<0.000000e+00> : vector<32x2xf32>
    %185 = tpu.matmul %61, %184, %cst_155 {dimension_numbers = #tpu.dot_dimension_numbers<[1], [0], [0], [1], [0, 0, 1, 1], [], []>} : vector<32x32xbf16>, vector<32x2xbf16>, vector<32x2xf32> -> vector<32x2xf32>
    %186 = arith.truncf %185 : vector<32x2xf32> to vector<32x2xbf16>
    %c15_156 = arith.constant 15 : index
    %c0_157 = arith.constant 0 : index
    %c0_158 = arith.constant 0 : index
    %187 = vector.load %arg8[%c15_156, %c0_157, %c0_158] : memref<16x128x32xbf16, #tpu.memory_space<vmem>>, vector<1x128x32xbf16>
    %188 = vector.shape_cast %187 : vector<1x128x32xbf16> to vector<128x32xbf16>
    %cst_159 = arith.constant dense<0.000000e+00> : vector<128x2xf32>
    %189 = tpu.matmul %188, %186, %cst_159 {dimension_numbers = #tpu.dot_dimension_numbers<[1], [0], [0], [1], [0, 0, 1, 1], [], []>} : vector<128x32xbf16>, vector<32x2xbf16>, vector<128x2xf32> -> vector<128x2xf32>
    %190 = arith.addf %182, %189 : vector<128x2xf32>
    %c0_160 = arith.constant 0 : index
    %c0_161 = arith.constant 0 : index
    %191 = vector.load %arg9[%c0_160, %c0_161] : memref<128x1xf32, #tpu.memory_space<vmem>>, vector<128x1xf32>
    %192 = vector.broadcast %191 : vector<128x1xf32> to vector<128x2xf32>
    %193 = arith.addf %190, %192 : vector<128x2xf32>
    %c0_162 = arith.constant 0 : index
    %c0_163 = arith.constant 0 : index
    %194 = vector.load %arg16[%c0_162, %c0_163] : memref<128x2xf32, #tpu.memory_space<vmem>>, vector<128x2xf32>
    tpu.vector_store %arg16[%c0_162, %c0_163], %193 {strides = array<i32>} : memref<128x2xf32, #tpu.memory_space<vmem>>, vector<128x2xf32>,
    %195 = vector.extract_strided_slice %193 {offsets = [0, 0], sizes = [64, 2], strides = [1, 1]} : vector<128x2xf32> to vector<64x2xf32>
    %196 = arith.truncf %195 : vector<64x2xf32> to vector<64x2xbf16>
    %cst_164 = arith.constant 0.000000e+00 : f32
    %197 = vector.broadcast %cst_164 : f32 to vector<32x32xf32>
    %c0_165 = arith.constant 0 : index
    %c0_166 = arith.constant 0 : index
    %c0_167 = arith.constant 0 : index
    %198 = vector.load %arg10[%c0_165, %c0_166, %c0_167] : memref<16x32x64xbf16, #tpu.memory_space<vmem>>, vector<1x32x64xbf16>
    %199 = vector.shape_cast %198 : vector<1x32x64xbf16> to vector<32x64xbf16>
    %cst_168 = arith.constant dense<0.000000e+00> : vector<32x2xf32>
    %200 = tpu.matmul %199, %196, %cst_168 {dimension_numbers = #tpu.dot_dimension_numbers<[1], [0], [0], [1], [0, 0, 1, 1], [], []>} : vector<32x64xbf16>, vector<64x2xbf16>, vector<32x2xf32> -> vector<32x2xf32>
    %c0_169 = arith.constant 0 : index
    %c0_170 = arith.constant 0 : index
    %c0_171 = arith.constant 0 : index
    %201 = vector.load %arg11[%c0_169, %c0_170, %c0_171] : memref<16x32x1xf32, #tpu.memory_space<vmem>>, vector<1x32x1xf32>
    %202 = vector.shape_cast %201 : vector<1x32x1xf32> to vector<32x1xf32>
    %203 = vector.broadcast %202 : vector<32x1xf32> to vector<32x2xf32>
    %204 = arith.addf %200, %203 : vector<32x2xf32>
    %cst_172 = arith.constant 0.000000e+00 : f32
    %205 = vector.broadcast %cst_172 : f32 to vector<32x2xf32>
    %206 = arith.maximumf %204, %205 : vector<32x2xf32>
    %207 = arith.truncf %206 : vector<32x2xf32> to vector<32x2xbf16>
    %c0_173 = arith.constant 0 : index
    %c0_174 = arith.constant 0 : index
    %c0_175 = arith.constant 0 : index
    %208 = vector.load %arg3[%c0_173, %c0_174, %c0_175] : memref<16x2x32xbf16, #tpu.memory_space<vmem>>, vector<1x2x32xbf16>
    %209 = vector.shape_cast %208 : vector<1x2x32xbf16> to vector<2x32xbf16>
    %cst_176 = arith.constant dense<0.000000e+00> : vector<32x32xf32>
    %210 = tpu.matmul %207, %209, %cst_176 {dimension_numbers = #tpu.dot_dimension_numbers<[1], [0], [0], [1], [0, 0, 1, 1], [], []>} : vector<32x2xbf16>, vector<2x32xbf16>, vector<32x32xf32> -> vector<32x32xf32>
    %211 = arith.addf %197, %210 : vector<32x32xf32>
    %c1_177 = arith.constant 1 : index
    %c0_178 = arith.constant 0 : index
    %c0_179 = arith.constant 0 : index
    %212 = vector.load %arg10[%c1_177, %c0_178, %c0_179] : memref<16x32x64xbf16, #tpu.memory_space<vmem>>, vector<1x32x64xbf16>
    %213 = vector.shape_cast %212 : vector<1x32x64xbf16> to vector<32x64xbf16>
    %cst_180 = arith.constant dense<0.000000e+00> : vector<32x2xf32>
    %214 = tpu.matmul %213, %196, %cst_180 {dimension_numbers = #tpu.dot_dimension_numbers<[1], [0], [0], [1], [0, 0, 1, 1], [], []>} : vector<32x64xbf16>, vector<64x2xbf16>, vector<32x2xf32> -> vector<32x2xf32>
    %c1_181 = arith.constant 1 : index
    %c0_182 = arith.constant 0 : index
    %c0_183 = arith.constant 0 : index
    %215 = vector.load %arg11[%c1_181, %c0_182, %c0_183] : memref<16x32x1xf32, #tpu.memory_space<vmem>>, vector<1x32x1xf32>
    %216 = vector.shape_cast %215 : vector<1x32x1xf32> to vector<32x1xf32>
    %217 = vector.broadcast %216 : vector<32x1xf32> to vector<32x2xf32>
    %218 = arith.addf %214, %217 : vector<32x2xf32>
    %cst_184 = arith.constant 0.000000e+00 : f32
    %219 = vector.broadcast %cst_184 : f32 to vector<32x2xf32>
    %220 = arith.maximumf %218, %219 : vector<32x2xf32>
    %221 = arith.truncf %220 : vector<32x2xf32> to vector<32x2xbf16>
    %c1_185 = arith.constant 1 : index
    %c0_186 = arith.constant 0 : index
    %c0_187 = arith.constant 0 : index
    %222 = vector.load %arg3[%c1_185, %c0_186, %c0_187] : memref<16x2x32xbf16, #tpu.memory_space<vmem>>, vector<1x2x32xbf16>
    %223 = vector.shape_cast %222 : vector<1x2x32xbf16> to vector<2x32xbf16>
    %cst_188 = arith.constant dense<0.000000e+00> : vector<32x32xf32>
    %224 = tpu.matmul %221, %223, %cst_188 {dimension_numbers = #tpu.dot_dimension_numbers<[1], [0], [0], [1], [0, 0, 1, 1], [], []>} : vector<32x2xbf16>, vector<2x32xbf16>, vector<32x32xf32> -> vector<32x32xf32>
    %225 = arith.addf %211, %224 : vector<32x32xf32>
    %c2_189 = arith.constant 2 : index
    %c0_190 = arith.constant 0 : index
    %c0_191 = arith.constant 0 : index
    %226 = vector.load %arg10[%c2_189, %c0_190, %c0_191] : memref<16x32x64xbf16, #tpu.memory_space<vmem>>, vector<1x32x64xbf16>
    %227 = vector.shape_cast %226 : vector<1x32x64xbf16> to vector<32x64xbf16>
    %cst_192 = arith.constant dense<0.000000e+00> : vector<32x2xf32>
    %228 = tpu.matmul %227, %196, %cst_192 {dimension_numbers = #tpu.dot_dimension_numbers<[1], [0], [0], [1], [0, 0, 1, 1], [], []>} : vector<32x64xbf16>, vector<64x2xbf16>, vector<32x2xf32> -> vector<32x2xf32>
    %c2_193 = arith.constant 2 : index
    %c0_194 = arith.constant 0 : index
    %c0_195 = arith.constant 0 : index
    %229 = vector.load %arg11[%c2_193, %c0_194, %c0_195] : memref<16x32x1xf32, #tpu.memory_space<vmem>>, vector<1x32x1xf32>
    %230 = vector.shape_cast %229 : vector<1x32x1xf32> to vector<32x1xf32>
    %231 = vector.broadcast %230 : vector<32x1xf32> to vector<32x2xf32>
    %232 = arith.addf %228, %231 : vector<32x2xf32>
    %cst_196 = arith.constant 0.000000e+00 : f32
    %233 = vector.broadcast %cst_196 : f32 to vector<32x2xf32>
    %234 = arith.maximumf %232, %233 : vector<32x2xf32>
    %235 = arith.truncf %234 : vector<32x2xf32> to vector<32x2xbf16>
    %c2_197 = arith.constant 2 : index
    %c0_198 = arith.constant 0 : index
    %c0_199 = arith.constant 0 : index
    %236 = vector.load %arg3[%c2_197, %c0_198, %c0_199] : memref<16x2x32xbf16, #tpu.memory_space<vmem>>, vector<1x2x32xbf16>
    %237 = vector.shape_cast %236 : vector<1x2x32xbf16> to vector<2x32xbf16>
    %cst_200 = arith.constant dense<0.000000e+00> : vector<32x32xf32>
    %238 = tpu.matmul %235, %237, %cst_200 {dimension_numbers = #tpu.dot_dimension_numbers<[1], [0], [0], [1], [0, 0, 1, 1], [], []>} : vector<32x2xbf16>, vector<2x32xbf16>, vector<32x32xf32> -> vector<32x32xf32>
    %239 = arith.addf %225, %238 : vector<32x32xf32>
    %c3_201 = arith.constant 3 : index
    %c0_202 = arith.constant 0 : index
    %c0_203 = arith.constant 0 : index
    %240 = vector.load %arg10[%c3_201, %c0_202, %c0_203] : memref<16x32x64xbf16, #tpu.memory_space<vmem>>, vector<1x32x64xbf16>
    %241 = vector.shape_cast %240 : vector<1x32x64xbf16> to vector<32x64xbf16>
    %cst_204 = arith.constant dense<0.000000e+00> : vector<32x2xf32>
    %242 = tpu.matmul %241, %196, %cst_204 {dimension_numbers = #tpu.dot_dimension_numbers<[1], [0], [0], [1], [0, 0, 1, 1], [], []>} : vector<32x64xbf16>, vector<64x2xbf16>, vector<32x2xf32> -> vector<32x2xf32>
    %c3_205 = arith.constant 3 : index
    %c0_206 = arith.constant 0 : index
    %c0_207 = arith.constant 0 : index
    %243 = vector.load %arg11[%c3_205, %c0_206, %c0_207] : memref<16x32x1xf32, #tpu.memory_space<vmem>>, vector<1x32x1xf32>
    %244 = vector.shape_cast %243 : vector<1x32x1xf32> to vector<32x1xf32>
    %245 = vector.broadcast %244 : vector<32x1xf32> to vector<32x2xf32>
    %246 = arith.addf %242, %245 : vector<32x2xf32>
    %cst_208 = arith.constant 0.000000e+00 : f32
    %247 = vector.broadcast %cst_208 : f32 to vector<32x2xf32>
    %248 = arith.maximumf %246, %247 : vector<32x2xf32>
    %249 = arith.truncf %248 : vector<32x2xf32> to vector<32x2xbf16>
    %c3_209 = arith.constant 3 : index
    %c0_210 = arith.constant 0 : index
    %c0_211 = arith.constant 0 : index
    %250 = vector.load %arg3[%c3_209, %c0_210, %c0_211] : memref<16x2x32xbf16, #tpu.memory_space<vmem>>, vector<1x2x32xbf16>
    %251 = vector.shape_cast %250 : vector<1x2x32xbf16> to vector<2x32xbf16>
    %cst_212 = arith.constant dense<0.000000e+00> : vector<32x32xf32>
    %252 = tpu.matmul %249, %251, %cst_212 {dimension_numbers = #tpu.dot_dimension_numbers<[1], [0], [0], [1], [0, 0, 1, 1], [], []>} : vector<32x2xbf16>, vector<2x32xbf16>, vector<32x32xf32> -> vector<32x32xf32>
    %253 = arith.addf %239, %252 : vector<32x32xf32>
    %c4_213 = arith.constant 4 : index
    %c0_214 = arith.constant 0 : index
    %c0_215 = arith.constant 0 : index
    %254 = vector.load %arg10[%c4_213, %c0_214, %c0_215] : memref<16x32x64xbf16, #tpu.memory_space<vmem>>, vector<1x32x64xbf16>
    %255 = vector.shape_cast %254 : vector<1x32x64xbf16> to vector<32x64xbf16>
    %cst_216 = arith.constant dense<0.000000e+00> : vector<32x2xf32>
    %256 = tpu.matmul %255, %196, %cst_216 {dimension_numbers = #tpu.dot_dimension_numbers<[1], [0], [0], [1], [0, 0, 1, 1], [], []>} : vector<32x64xbf16>, vector<64x2xbf16>, vector<32x2xf32> -> vector<32x2xf32>
    %c4_217 = arith.constant 4 : index
    %c0_218 = arith.constant 0 : index
    %c0_219 = arith.constant 0 : index
    %257 = vector.load %arg11[%c4_217, %c0_218, %c0_219] : memref<16x32x1xf32, #tpu.memory_space<vmem>>, vector<1x32x1xf32>
    %258 = vector.shape_cast %257 : vector<1x32x1xf32> to vector<32x1xf32>
    %259 = vector.broadcast %258 : vector<32x1xf32> to vector<32x2xf32>
    %260 = arith.addf %256, %259 : vector<32x2xf32>
    %cst_220 = arith.constant 0.000000e+00 : f32
    %261 = vector.broadcast %cst_220 : f32 to vector<32x2xf32>
    %262 = arith.maximumf %260, %261 : vector<32x2xf32>
    %263 = arith.truncf %262 : vector<32x2xf32> to vector<32x2xbf16>
    %c4_221 = arith.constant 4 : index
    %c0_222 = arith.constant 0 : index
    %c0_223 = arith.constant 0 : index
    %264 = vector.load %arg3[%c4_221, %c0_222, %c0_223] : memref<16x2x32xbf16, #tpu.memory_space<vmem>>, vector<1x2x32xbf16>
    %265 = vector.shape_cast %264 : vector<1x2x32xbf16> to vector<2x32xbf16>
    %cst_224 = arith.constant dense<0.000000e+00> : vector<32x32xf32>
    %266 = tpu.matmul %263, %265, %cst_224 {dimension_numbers = #tpu.dot_dimension_numbers<[1], [0], [0], [1], [0, 0, 1, 1], [], []>} : vector<32x2xbf16>, vector<2x32xbf16>, vector<32x32xf32> -> vector<32x32xf32>
    %267 = arith.addf %253, %266 : vector<32x32xf32>
    %c5_225 = arith.constant 5 : index
    %c0_226 = arith.constant 0 : index
    %c0_227 = arith.constant 0 : index
    %268 = vector.load %arg10[%c5_225, %c0_226, %c0_227] : memref<16x32x64xbf16, #tpu.memory_space<vmem>>, vector<1x32x64xbf16>
    %269 = vector.shape_cast %268 : vector<1x32x64xbf16> to vector<32x64xbf16>
    %cst_228 = arith.constant dense<0.000000e+00> : vector<32x2xf32>
    %270 = tpu.matmul %269, %196, %cst_228 {dimension_numbers = #tpu.dot_dimension_numbers<[1], [0], [0], [1], [0, 0, 1, 1], [], []>} : vector<32x64xbf16>, vector<64x2xbf16>, vector<32x2xf32> -> vector<32x2xf32>
    %c5_229 = arith.constant 5 : index
    %c0_230 = arith.constant 0 : index
    %c0_231 = arith.constant 0 : index
    %271 = vector.load %arg11[%c5_229, %c0_230, %c0_231] : memref<16x32x1xf32, #tpu.memory_space<vmem>>, vector<1x32x1xf32>
    %272 = vector.shape_cast %271 : vector<1x32x1xf32> to vector<32x1xf32>
    %273 = vector.broadcast %272 : vector<32x1xf32> to vector<32x2xf32>
    %274 = arith.addf %270, %273 : vector<32x2xf32>
    %cst_232 = arith.constant 0.000000e+00 : f32
    %275 = vector.broadcast %cst_232 : f32 to vector<32x2xf32>
    %276 = arith.maximumf %274, %275 : vector<32x2xf32>
    %277 = arith.truncf %276 : vector<32x2xf32> to vector<32x2xbf16>
    %c5_233 = arith.constant 5 : index
    %c0_234 = arith.constant 0 : index
    %c0_235 = arith.constant 0 : index
    %278 = vector.load %arg3[%c5_233, %c0_234, %c0_235] : memref<16x2x32xbf16, #tpu.memory_space<vmem>>, vector<1x2x32xbf16>
    %279 = vector.shape_cast %278 : vector<1x2x32xbf16> to vector<2x32xbf16>
    %cst_236 = arith.constant dense<0.000000e+00> : vector<32x32xf32>
    %280 = tpu.matmul %277, %279, %cst_236 {dimension_numbers = #tpu.dot_dimension_numbers<[1], [0], [0], [1], [0, 0, 1, 1], [], []>} : vector<32x2xbf16>, vector<2x32xbf16>, vector<32x32xf32> -> vector<32x32xf32>
    %281 = arith.addf %267, %280 : vector<32x32xf32>
    %c6_237 = arith.constant 6 : index
    %c0_238 = arith.constant 0 : index
    %c0_239 = arith.constant 0 : index
    %282 = vector.load %arg10[%c6_237, %c0_238, %c0_239] : memref<16x32x64xbf16, #tpu.memory_space<vmem>>, vector<1x32x64xbf16>
    %283 = vector.shape_cast %282 : vector<1x32x64xbf16> to vector<32x64xbf16>
    %cst_240 = arith.constant dense<0.000000e+00> : vector<32x2xf32>
    %284 = tpu.matmul %283, %196, %cst_240 {dimension_numbers = #tpu.dot_dimension_numbers<[1], [0], [0], [1], [0, 0, 1, 1], [], []>} : vector<32x64xbf16>, vector<64x2xbf16>, vector<32x2xf32> -> vector<32x2xf32>
    %c6_241 = arith.constant 6 : index
    %c0_242 = arith.constant 0 : index
    %c0_243 = arith.constant 0 : index
    %285 = vector.load %arg11[%c6_241, %c0_242, %c0_243] : memref<16x32x1xf32, #tpu.memory_space<vmem>>, vector<1x32x1xf32>
    %286 = vector.shape_cast %285 : vector<1x32x1xf32> to vector<32x1xf32>
    %287 = vector.broadcast %286 : vector<32x1xf32> to vector<32x2xf32>
    %288 = arith.addf %284, %287 : vector<32x2xf32>
    %cst_244 = arith.constant 0.000000e+00 : f32
    %289 = vector.broadcast %cst_244 : f32 to vector<32x2xf32>
    %290 = arith.maximumf %288, %289 : vector<32x2xf32>
    %291 = arith.truncf %290 : vector<32x2xf32> to vector<32x2xbf16>
    %c6_245 = arith.constant 6 : index
    %c0_246 = arith.constant 0 : index
    %c0_247 = arith.constant 0 : index
    %292 = vector.load %arg3[%c6_245, %c0_246, %c0_247] : memref<16x2x32xbf16, #tpu.memory_space<vmem>>, vector<1x2x32xbf16>
    %293 = vector.shape_cast %292 : vector<1x2x32xbf16> to vector<2x32xbf16>
    %cst_248 = arith.constant dense<0.000000e+00> : vector<32x32xf32>
    %294 = tpu.matmul %291, %293, %cst_248 {dimension_numbers = #tpu.dot_dimension_numbers<[1], [0], [0], [1], [0, 0, 1, 1], [], []>} : vector<32x2xbf16>, vector<2x32xbf16>, vector<32x32xf32> -> vector<32x32xf32>
    %295 = arith.addf %281, %294 : vector<32x32xf32>
    %c7_249 = arith.constant 7 : index
    %c0_250 = arith.constant 0 : index
    %c0_251 = arith.constant 0 : index
    %296 = vector.load %arg10[%c7_249, %c0_250, %c0_251] : memref<16x32x64xbf16, #tpu.memory_space<vmem>>, vector<1x32x64xbf16>
    %297 = vector.shape_cast %296 : vector<1x32x64xbf16> to vector<32x64xbf16>
    %cst_252 = arith.constant dense<0.000000e+00> : vector<32x2xf32>
    %298 = tpu.matmul %297, %196, %cst_252 {dimension_numbers = #tpu.dot_dimension_numbers<[1], [0], [0], [1], [0, 0, 1, 1], [], []>} : vector<32x64xbf16>, vector<64x2xbf16>, vector<32x2xf32> -> vector<32x2xf32>
    %c7_253 = arith.constant 7 : index
    %c0_254 = arith.constant 0 : index
    %c0_255 = arith.constant 0 : index
    %299 = vector.load %arg11[%c7_253, %c0_254, %c0_255] : memref<16x32x1xf32, #tpu.memory_space<vmem>>, vector<1x32x1xf32>
    %300 = vector.shape_cast %299 : vector<1x32x1xf32> to vector<32x1xf32>
    %301 = vector.broadcast %300 : vector<32x1xf32> to vector<32x2xf32>
    %302 = arith.addf %298, %301 : vector<32x2xf32>
    %cst_256 = arith.constant 0.000000e+00 : f32
    %303 = vector.broadcast %cst_256 : f32 to vector<32x2xf32>
    %304 = arith.maximumf %302, %303 : vector<32x2xf32>
    %305 = arith.truncf %304 : vector<32x2xf32> to vector<32x2xbf16>
    %c7_257 = arith.constant 7 : index
    %c0_258 = arith.constant 0 : index
    %c0_259 = arith.constant 0 : index
    %306 = vector.load %arg3[%c7_257, %c0_258, %c0_259] : memref<16x2x32xbf16, #tpu.memory_space<vmem>>, vector<1x2x32xbf16>
    %307 = vector.shape_cast %306 : vector<1x2x32xbf16> to vector<2x32xbf16>
    %cst_260 = arith.constant dense<0.000000e+00> : vector<32x32xf32>
    %308 = tpu.matmul %305, %307, %cst_260 {dimension_numbers = #tpu.dot_dimension_numbers<[1], [0], [0], [1], [0, 0, 1, 1], [], []>} : vector<32x2xbf16>, vector<2x32xbf16>, vector<32x32xf32> -> vector<32x32xf32>
    %309 = arith.addf %295, %308 : vector<32x32xf32>
    %c8_261 = arith.constant 8 : index
    %c0_262 = arith.constant 0 : index
    %c0_263 = arith.constant 0 : index
    %310 = vector.load %arg10[%c8_261, %c0_262, %c0_263] : memref<16x32x64xbf16, #tpu.memory_space<vmem>>, vector<1x32x64xbf16>
    %311 = vector.shape_cast %310 : vector<1x32x64xbf16> to vector<32x64xbf16>
    %cst_264 = arith.constant dense<0.000000e+00> : vector<32x2xf32>
    %312 = tpu.matmul %311, %196, %cst_264 {dimension_numbers = #tpu.dot_dimension_numbers<[1], [0], [0], [1], [0, 0, 1, 1], [], []>} : vector<32x64xbf16>, vector<64x2xbf16>, vector<32x2xf32> -> vector<32x2xf32>
    %c8_265 = arith.constant 8 : index
    %c0_266 = arith.constant 0 : index
    %c0_267 = arith.constant 0 : index
    %313 = vector.load %arg11[%c8_265, %c0_266, %c0_267] : memref<16x32x1xf32, #tpu.memory_space<vmem>>, vector<1x32x1xf32>
    %314 = vector.shape_cast %313 : vector<1x32x1xf32> to vector<32x1xf32>
    %315 = vector.broadcast %314 : vector<32x1xf32> to vector<32x2xf32>
    %316 = arith.addf %312, %315 : vector<32x2xf32>
    %cst_268 = arith.constant 0.000000e+00 : f32
    %317 = vector.broadcast %cst_268 : f32 to vector<32x2xf32>
    %318 = arith.maximumf %316, %317 : vector<32x2xf32>
    %319 = arith.truncf %318 : vector<32x2xf32> to vector<32x2xbf16>
    %c8_269 = arith.constant 8 : index
    %c0_270 = arith.constant 0 : index
    %c0_271 = arith.constant 0 : index
    %320 = vector.load %arg3[%c8_269, %c0_270, %c0_271] : memref<16x2x32xbf16, #tpu.memory_space<vmem>>, vector<1x2x32xbf16>
    %321 = vector.shape_cast %320 : vector<1x2x32xbf16> to vector<2x32xbf16>
    %cst_272 = arith.constant dense<0.000000e+00> : vector<32x32xf32>
    %322 = tpu.matmul %319, %321, %cst_272 {dimension_numbers = #tpu.dot_dimension_numbers<[1], [0], [0], [1], [0, 0, 1, 1], [], []>} : vector<32x2xbf16>, vector<2x32xbf16>, vector<32x32xf32> -> vector<32x32xf32>
    %323 = arith.addf %309, %322 : vector<32x32xf32>
    %c9_273 = arith.constant 9 : index
    %c0_274 = arith.constant 0 : index
    %c0_275 = arith.constant 0 : index
    %324 = vector.load %arg10[%c9_273, %c0_274, %c0_275] : memref<16x32x64xbf16, #tpu.memory_space<vmem>>, vector<1x32x64xbf16>
    %325 = vector.shape_cast %324 : vector<1x32x64xbf16> to vector<32x64xbf16>
    %cst_276 = arith.constant dense<0.000000e+00> : vector<32x2xf32>
    %326 = tpu.matmul %325, %196, %cst_276 {dimension_numbers = #tpu.dot_dimension_numbers<[1], [0], [0], [1], [0, 0, 1, 1], [], []>} : vector<32x64xbf16>, vector<64x2xbf16>, vector<32x2xf32> -> vector<32x2xf32>
    %c9_277 = arith.constant 9 : index
    %c0_278 = arith.constant 0 : index
    %c0_279 = arith.constant 0 : index
    %327 = vector.load %arg11[%c9_277, %c0_278, %c0_279] : memref<16x32x1xf32, #tpu.memory_space<vmem>>, vector<1x32x1xf32>
    %328 = vector.shape_cast %327 : vector<1x32x1xf32> to vector<32x1xf32>
    %329 = vector.broadcast %328 : vector<32x1xf32> to vector<32x2xf32>
    %330 = arith.addf %326, %329 : vector<32x2xf32>
    %cst_280 = arith.constant 0.000000e+00 : f32
    %331 = vector.broadcast %cst_280 : f32 to vector<32x2xf32>
    %332 = arith.maximumf %330, %331 : vector<32x2xf32>
    %333 = arith.truncf %332 : vector<32x2xf32> to vector<32x2xbf16>
    %c9_281 = arith.constant 9 : index
    %c0_282 = arith.constant 0 : index
    %c0_283 = arith.constant 0 : index
    %334 = vector.load %arg3[%c9_281, %c0_282, %c0_283] : memref<16x2x32xbf16, #tpu.memory_space<vmem>>, vector<1x2x32xbf16>
    %335 = vector.shape_cast %334 : vector<1x2x32xbf16> to vector<2x32xbf16>
    %cst_284 = arith.constant dense<0.000000e+00> : vector<32x32xf32>
    %336 = tpu.matmul %333, %335, %cst_284 {dimension_numbers = #tpu.dot_dimension_numbers<[1], [0], [0], [1], [0, 0, 1, 1], [], []>} : vector<32x2xbf16>, vector<2x32xbf16>, vector<32x32xf32> -> vector<32x32xf32>
    %337 = arith.addf %323, %336 : vector<32x32xf32>
    %c10_285 = arith.constant 10 : index
    %c0_286 = arith.constant 0 : index
    %c0_287 = arith.constant 0 : index
    %338 = vector.load %arg10[%c10_285, %c0_286, %c0_287] : memref<16x32x64xbf16, #tpu.memory_space<vmem>>, vector<1x32x64xbf16>
    %339 = vector.shape_cast %338 : vector<1x32x64xbf16> to vector<32x64xbf16>
    %cst_288 = arith.constant dense<0.000000e+00> : vector<32x2xf32>
    %340 = tpu.matmul %339, %196, %cst_288 {dimension_numbers = #tpu.dot_dimension_numbers<[1], [0], [0], [1], [0, 0, 1, 1], [], []>} : vector<32x64xbf16>, vector<64x2xbf16>, vector<32x2xf32> -> vector<32x2xf32>
    %c10_289 = arith.constant 10 : index
    %c0_290 = arith.constant 0 : index
    %c0_291 = arith.constant 0 : index
    %341 = vector.load %arg11[%c10_289, %c0_290, %c0_291] : memref<16x32x1xf32, #tpu.memory_space<vmem>>, vector<1x32x1xf32>
    %342 = vector.shape_cast %341 : vector<1x32x1xf32> to vector<32x1xf32>
    %343 = vector.broadcast %342 : vector<32x1xf32> to vector<32x2xf32>
    %344 = arith.addf %340, %343 : vector<32x2xf32>
    %cst_292 = arith.constant 0.000000e+00 : f32
    %345 = vector.broadcast %cst_292 : f32 to vector<32x2xf32>
    %346 = arith.maximumf %344, %345 : vector<32x2xf32>
    %347 = arith.truncf %346 : vector<32x2xf32> to vector<32x2xbf16>
    %c10_293 = arith.constant 10 : index
    %c0_294 = arith.constant 0 : index
    %c0_295 = arith.constant 0 : index
    %348 = vector.load %arg3[%c10_293, %c0_294, %c0_295] : memref<16x2x32xbf16, #tpu.memory_space<vmem>>, vector<1x2x32xbf16>
    %349 = vector.shape_cast %348 : vector<1x2x32xbf16> to vector<2x32xbf16>
    %cst_296 = arith.constant dense<0.000000e+00> : vector<32x32xf32>
    %350 = tpu.matmul %347, %349, %cst_296 {dimension_numbers = #tpu.dot_dimension_numbers<[1], [0], [0], [1], [0, 0, 1, 1], [], []>} : vector<32x2xbf16>, vector<2x32xbf16>, vector<32x32xf32> -> vector<32x32xf32>
    %351 = arith.addf %337, %350 : vector<32x32xf32>
    %c11_297 = arith.constant 11 : index
    %c0_298 = arith.constant 0 : index
    %c0_299 = arith.constant 0 : index
    %352 = vector.load %arg10[%c11_297, %c0_298, %c0_299] : memref<16x32x64xbf16, #tpu.memory_space<vmem>>, vector<1x32x64xbf16>
    %353 = vector.shape_cast %352 : vector<1x32x64xbf16> to vector<32x64xbf16>
    %cst_300 = arith.constant dense<0.000000e+00> : vector<32x2xf32>
    %354 = tpu.matmul %353, %196, %cst_300 {dimension_numbers = #tpu.dot_dimension_numbers<[1], [0], [0], [1], [0, 0, 1, 1], [], []>} : vector<32x64xbf16>, vector<64x2xbf16>, vector<32x2xf32> -> vector<32x2xf32>
    %c11_301 = arith.constant 11 : index
    %c0_302 = arith.constant 0 : index
    %c0_303 = arith.constant 0 : index
    %355 = vector.load %arg11[%c11_301, %c0_302, %c0_303] : memref<16x32x1xf32, #tpu.memory_space<vmem>>, vector<1x32x1xf32>
    %356 = vector.shape_cast %355 : vector<1x32x1xf32> to vector<32x1xf32>
    %357 = vector.broadcast %356 : vector<32x1xf32> to vector<32x2xf32>
    %358 = arith.addf %354, %357 : vector<32x2xf32>
    %cst_304 = arith.constant 0.000000e+00 : f32
    %359 = vector.broadcast %cst_304 : f32 to vector<32x2xf32>
    %360 = arith.maximumf %358, %359 : vector<32x2xf32>
    %361 = arith.truncf %360 : vector<32x2xf32> to vector<32x2xbf16>
    %c11_305 = arith.constant 11 : index
    %c0_306 = arith.constant 0 : index
    %c0_307 = arith.constant 0 : index
    %362 = vector.load %arg3[%c11_305, %c0_306, %c0_307] : memref<16x2x32xbf16, #tpu.memory_space<vmem>>, vector<1x2x32xbf16>
    %363 = vector.shape_cast %362 : vector<1x2x32xbf16> to vector<2x32xbf16>
    %cst_308 = arith.constant dense<0.000000e+00> : vector<32x32xf32>
    %364 = tpu.matmul %361, %363, %cst_308 {dimension_numbers = #tpu.dot_dimension_numbers<[1], [0], [0], [1], [0, 0, 1, 1], [], []>} : vector<32x2xbf16>, vector<2x32xbf16>, vector<32x32xf32> -> vector<32x32xf32>
    %365 = arith.addf %351, %364 : vector<32x32xf32>
    %c12_309 = arith.constant 12 : index
    %c0_310 = arith.constant 0 : index
    %c0_311 = arith.constant 0 : index
    %366 = vector.load %arg10[%c12_309, %c0_310, %c0_311] : memref<16x32x64xbf16, #tpu.memory_space<vmem>>, vector<1x32x64xbf16>
    %367 = vector.shape_cast %366 : vector<1x32x64xbf16> to vector<32x64xbf16>
    %cst_312 = arith.constant dense<0.000000e+00> : vector<32x2xf32>
    %368 = tpu.matmul %367, %196, %cst_312 {dimension_numbers = #tpu.dot_dimension_numbers<[1], [0], [0], [1], [0, 0, 1, 1], [], []>} : vector<32x64xbf16>, vector<64x2xbf16>, vector<32x2xf32> -> vector<32x2xf32>
    %c12_313 = arith.constant 12 : index
    %c0_314 = arith.constant 0 : index
    %c0_315 = arith.constant 0 : index
    %369 = vector.load %arg11[%c12_313, %c0_314, %c0_315] : memref<16x32x1xf32, #tpu.memory_space<vmem>>, vector<1x32x1xf32>
    %370 = vector.shape_cast %369 : vector<1x32x1xf32> to vector<32x1xf32>
    %371 = vector.broadcast %370 : vector<32x1xf32> to vector<32x2xf32>
    %372 = arith.addf %368, %371 : vector<32x2xf32>
    %cst_316 = arith.constant 0.000000e+00 : f32
    %373 = vector.broadcast %cst_316 : f32 to vector<32x2xf32>
    %374 = arith.maximumf %372, %373 : vector<32x2xf32>
    %375 = arith.truncf %374 : vector<32x2xf32> to vector<32x2xbf16>
    %c12_317 = arith.constant 12 : index
    %c0_318 = arith.constant 0 : index
    %c0_319 = arith.constant 0 : index
    %376 = vector.load %arg3[%c12_317, %c0_318, %c0_319] : memref<16x2x32xbf16, #tpu.memory_space<vmem>>, vector<1x2x32xbf16>
    %377 = vector.shape_cast %376 : vector<1x2x32xbf16> to vector<2x32xbf16>
    %cst_320 = arith.constant dense<0.000000e+00> : vector<32x32xf32>
    %378 = tpu.matmul %375, %377, %cst_320 {dimension_numbers = #tpu.dot_dimension_numbers<[1], [0], [0], [1], [0, 0, 1, 1], [], []>} : vector<32x2xbf16>, vector<2x32xbf16>, vector<32x32xf32> -> vector<32x32xf32>
    %379 = arith.addf %365, %378 : vector<32x32xf32>
    %c13_321 = arith.constant 13 : index
    %c0_322 = arith.constant 0 : index
    %c0_323 = arith.constant 0 : index
    %380 = vector.load %arg10[%c13_321, %c0_322, %c0_323] : memref<16x32x64xbf16, #tpu.memory_space<vmem>>, vector<1x32x64xbf16>
    %381 = vector.shape_cast %380 : vector<1x32x64xbf16> to vector<32x64xbf16>
    %cst_324 = arith.constant dense<0.000000e+00> : vector<32x2xf32>
    %382 = tpu.matmul %381, %196, %cst_324 {dimension_numbers = #tpu.dot_dimension_numbers<[1], [0], [0], [1], [0, 0, 1, 1], [], []>} : vector<32x64xbf16>, vector<64x2xbf16>, vector<32x2xf32> -> vector<32x2xf32>
    %c13_325 = arith.constant 13 : index
    %c0_326 = arith.constant 0 : index
    %c0_327 = arith.constant 0 : index
    %383 = vector.load %arg11[%c13_325, %c0_326, %c0_327] : memref<16x32x1xf32, #tpu.memory_space<vmem>>, vector<1x32x1xf32>
    %384 = vector.shape_cast %383 : vector<1x32x1xf32> to vector<32x1xf32>
    %385 = vector.broadcast %384 : vector<32x1xf32> to vector<32x2xf32>
    %386 = arith.addf %382, %385 : vector<32x2xf32>
    %cst_328 = arith.constant 0.000000e+00 : f32
    %387 = vector.broadcast %cst_328 : f32 to vector<32x2xf32>
    %388 = arith.maximumf %386, %387 : vector<32x2xf32>
    %389 = arith.truncf %388 : vector<32x2xf32> to vector<32x2xbf16>
    %c13_329 = arith.constant 13 : index
    %c0_330 = arith.constant 0 : index
    %c0_331 = arith.constant 0 : index
    %390 = vector.load %arg3[%c13_329, %c0_330, %c0_331] : memref<16x2x32xbf16, #tpu.memory_space<vmem>>, vector<1x2x32xbf16>
    %391 = vector.shape_cast %390 : vector<1x2x32xbf16> to vector<2x32xbf16>
    %cst_332 = arith.constant dense<0.000000e+00> : vector<32x32xf32>
    %392 = tpu.matmul %389, %391, %cst_332 {dimension_numbers = #tpu.dot_dimension_numbers<[1], [0], [0], [1], [0, 0, 1, 1], [], []>} : vector<32x2xbf16>, vector<2x32xbf16>, vector<32x32xf32> -> vector<32x32xf32>
    %393 = arith.addf %379, %392 : vector<32x32xf32>
    %c14_333 = arith.constant 14 : index
    %c0_334 = arith.constant 0 : index
    %c0_335 = arith.constant 0 : index
    %394 = vector.load %arg10[%c14_333, %c0_334, %c0_335] : memref<16x32x64xbf16, #tpu.memory_space<vmem>>, vector<1x32x64xbf16>
    %395 = vector.shape_cast %394 : vector<1x32x64xbf16> to vector<32x64xbf16>
    %cst_336 = arith.constant dense<0.000000e+00> : vector<32x2xf32>
    %396 = tpu.matmul %395, %196, %cst_336 {dimension_numbers = #tpu.dot_dimension_numbers<[1], [0], [0], [1], [0, 0, 1, 1], [], []>} : vector<32x64xbf16>, vector<64x2xbf16>, vector<32x2xf32> -> vector<32x2xf32>
    %c14_337 = arith.constant 14 : index
    %c0_338 = arith.constant 0 : index
    %c0_339 = arith.constant 0 : index
    %397 = vector.load %arg11[%c14_337, %c0_338, %c0_339] : memref<16x32x1xf32, #tpu.memory_space<vmem>>, vector<1x32x1xf32>
    %398 = vector.shape_cast %397 : vector<1x32x1xf32> to vector<32x1xf32>
    %399 = vector.broadcast %398 : vector<32x1xf32> to vector<32x2xf32>
    %400 = arith.addf %396, %399 : vector<32x2xf32>
    %cst_340 = arith.constant 0.000000e+00 : f32
    %401 = vector.broadcast %cst_340 : f32 to vector<32x2xf32>
    %402 = arith.maximumf %400, %401 : vector<32x2xf32>
    %403 = arith.truncf %402 : vector<32x2xf32> to vector<32x2xbf16>
    %c14_341 = arith.constant 14 : index
    %c0_342 = arith.constant 0 : index
    %c0_343 = arith.constant 0 : index
    %404 = vector.load %arg3[%c14_341, %c0_342, %c0_343] : memref<16x2x32xbf16, #tpu.memory_space<vmem>>, vector<1x2x32xbf16>
    %405 = vector.shape_cast %404 : vector<1x2x32xbf16> to vector<2x32xbf16>
    %cst_344 = arith.constant dense<0.000000e+00> : vector<32x32xf32>
    %406 = tpu.matmul %403, %405, %cst_344 {dimension_numbers = #tpu.dot_dimension_numbers<[1], [0], [0], [1], [0, 0, 1, 1], [], []>} : vector<32x2xbf16>, vector<2x32xbf16>, vector<32x32xf32> -> vector<32x32xf32>
    %407 = arith.addf %393, %406 : vector<32x32xf32>
    %c15_345 = arith.constant 15 : index
    %c0_346 = arith.constant 0 : index
    %c0_347 = arith.constant 0 : index
    %408 = vector.load %arg10[%c15_345, %c0_346, %c0_347] : memref<16x32x64xbf16, #tpu.memory_space<vmem>>, vector<1x32x64xbf16>
    %409 = vector.shape_cast %408 : vector<1x32x64xbf16> to vector<32x64xbf16>
    %cst_348 = arith.constant dense<0.000000e+00> : vector<32x2xf32>
    %410 = tpu.matmul %409, %196, %cst_348 {dimension_numbers = #tpu.dot_dimension_numbers<[1], [0], [0], [1], [0, 0, 1, 1], [], []>} : vector<32x64xbf16>, vector<64x2xbf16>, vector<32x2xf32> -> vector<32x2xf32>
    %c15_349 = arith.constant 15 : index
    %c0_350 = arith.constant 0 : index
    %c0_351 = arith.constant 0 : index
    %411 = vector.load %arg11[%c15_349, %c0_350, %c0_351] : memref<16x32x1xf32, #tpu.memory_space<vmem>>, vector<1x32x1xf32>
    %412 = vector.shape_cast %411 : vector<1x32x1xf32> to vector<32x1xf32>
    %413 = vector.broadcast %412 : vector<32x1xf32> to vector<32x2xf32>
    %414 = arith.addf %410, %413 : vector<32x2xf32>
    %cst_352 = arith.constant 0.000000e+00 : f32
    %415 = vector.broadcast %cst_352 : f32 to vector<32x2xf32>
    %416 = arith.maximumf %414, %415 : vector<32x2xf32>
    %417 = arith.truncf %416 : vector<32x2xf32> to vector<32x2xbf16>
    %c15_353 = arith.constant 15 : index
    %c0_354 = arith.constant 0 : index
    %c0_355 = arith.constant 0 : index
    %418 = vector.load %arg3[%c15_353, %c0_354, %c0_355] : memref<16x2x32xbf16, #tpu.memory_space<vmem>>, vector<1x2x32xbf16>
    %419 = vector.shape_cast %418 : vector<1x2x32xbf16> to vector<2x32xbf16>
    %cst_356 = arith.constant dense<0.000000e+00> : vector<32x32xf32>
    %420 = tpu.matmul %417, %419, %cst_356 {dimension_numbers = #tpu.dot_dimension_numbers<[1], [0], [0], [1], [0, 0, 1, 1], [], []>} : vector<32x2xbf16>, vector<2x32xbf16>, vector<32x32xf32> -> vector<32x32xf32>
    %421 = arith.addf %407, %420 : vector<32x32xf32>
    %422 = arith.truncf %421 : vector<32x32xf32> to vector<32x32xbf16>
    %c0_357 = arith.constant 0 : index
    %c0_358 = arith.constant 0 : index
    %423 = vector.load %arg12[%c0_357, %c0_358] : memref<576x32xbf16, #tpu.memory_space<vmem>>, vector<576x32xbf16>
    %cst_359 = arith.constant dense<0.000000e+00> : vector<576x32xf32>
    %424 = tpu.matmul %423, %422, %cst_359 {dimension_numbers = #tpu.dot_dimension_numbers<[1], [0], [0], [1], [0, 0, 1, 1], [], []>} : vector<576x32xbf16>, vector<32x32xbf16>, vector<576x32xf32> -> vector<576x32xf32>
    %425 = arith.truncf %424 : vector<576x32xf32> to vector<576x32xbf16>
    %cst_360 = arith.constant 0.000000e+00 : f32
    %426 = vector.broadcast %cst_360 : f32 to vector<64x32xf32>
    %427 = vector.extract_strided_slice %425 {offsets = [0, 0], sizes = [64, 32], strides = [1, 1]} : vector<576x32xbf16> to vector<64x32xbf16>
    %c0_361 = arith.constant 0 : index
    %c0_362 = arith.constant 0 : index
    %c0_363 = arith.constant 0 : index
    %428 = vector.load %arg1[%c0_361, %c0_362, %c0_363] : memref<9x32x32xbf16, #tpu.memory_space<vmem>>, vector<1x32x32xbf16>
    %429 = vector.shape_cast %428 : vector<1x32x32xbf16> to vector<32x32xbf16>
    %cst_364 = arith.constant dense<0.000000e+00> : vector<64x32xf32>
    %430 = tpu.matmul %427, %429, %cst_364 {dimension_numbers = #tpu.dot_dimension_numbers<[1], [0], [0], [1], [0, 0, 1, 1], [], []>} : vector<64x32xbf16>, vector<32x32xbf16>, vector<64x32xf32> -> vector<64x32xf32>
    %431 = arith.addf %426, %430 : vector<64x32xf32>
    %432 = vector.extract_strided_slice %425 {offsets = [64, 0], sizes = [64, 32], strides = [1, 1]} : vector<576x32xbf16> to vector<64x32xbf16>
    %c1_365 = arith.constant 1 : index
    %c0_366 = arith.constant 0 : index
    %c0_367 = arith.constant 0 : index
    %433 = vector.load %arg1[%c1_365, %c0_366, %c0_367] : memref<9x32x32xbf16, #tpu.memory_space<vmem>>, vector<1x32x32xbf16>
    %434 = vector.shape_cast %433 : vector<1x32x32xbf16> to vector<32x32xbf16>
    %cst_368 = arith.constant dense<0.000000e+00> : vector<64x32xf32>
    %435 = tpu.matmul %432, %434, %cst_368 {dimension_numbers = #tpu.dot_dimension_numbers<[1], [0], [0], [1], [0, 0, 1, 1], [], []>} : vector<64x32xbf16>, vector<32x32xbf16>, vector<64x32xf32> -> vector<64x32xf32>
    %436 = arith.addf %431, %435 : vector<64x32xf32>
    %437 = vector.extract_strided_slice %425 {offsets = [128, 0], sizes = [64, 32], strides = [1, 1]} : vector<576x32xbf16> to vector<64x32xbf16>
    %c2_369 = arith.constant 2 : index
    %c0_370 = arith.constant 0 : index
    %c0_371 = arith.constant 0 : index
    %438 = vector.load %arg1[%c2_369, %c0_370, %c0_371] : memref<9x32x32xbf16, #tpu.memory_space<vmem>>, vector<1x32x32xbf16>
    %439 = vector.shape_cast %438 : vector<1x32x32xbf16> to vector<32x32xbf16>
    %cst_372 = arith.constant dense<0.000000e+00> : vector<64x32xf32>
    %440 = tpu.matmul %437, %439, %cst_372 {dimension_numbers = #tpu.dot_dimension_numbers<[1], [0], [0], [1], [0, 0, 1, 1], [], []>} : vector<64x32xbf16>, vector<32x32xbf16>, vector<64x32xf32> -> vector<64x32xf32>
    %441 = arith.addf %436, %440 : vector<64x32xf32>
    %442 = vector.extract_strided_slice %425 {offsets = [192, 0], sizes = [64, 32], strides = [1, 1]} : vector<576x32xbf16> to vector<64x32xbf16>
    %c3_373 = arith.constant 3 : index
    %c0_374 = arith.constant 0 : index
    %c0_375 = arith.constant 0 : index
    %443 = vector.load %arg1[%c3_373, %c0_374, %c0_375] : memref<9x32x32xbf16, #tpu.memory_space<vmem>>, vector<1x32x32xbf16>
    %444 = vector.shape_cast %443 : vector<1x32x32xbf16> to vector<32x32xbf16>
    %cst_376 = arith.constant dense<0.000000e+00> : vector<64x32xf32>
    %445 = tpu.matmul %442, %444, %cst_376 {dimension_numbers = #tpu.dot_dimension_numbers<[1], [0], [0], [1], [0, 0, 1, 1], [], []>} : vector<64x32xbf16>, vector<32x32xbf16>, vector<64x32xf32> -> vector<64x32xf32>
    %446 = arith.addf %441, %445 : vector<64x32xf32>
    %447 = vector.extract_strided_slice %425 {offsets = [256, 0], sizes = [64, 32], strides = [1, 1]} : vector<576x32xbf16> to vector<64x32xbf16>
    %c4_377 = arith.constant 4 : index
    %c0_378 = arith.constant 0 : index
    %c0_379 = arith.constant 0 : index
    %448 = vector.load %arg1[%c4_377, %c0_378, %c0_379] : memref<9x32x32xbf16, #tpu.memory_space<vmem>>, vector<1x32x32xbf16>
    %449 = vector.shape_cast %448 : vector<1x32x32xbf16> to vector<32x32xbf16>
    %cst_380 = arith.constant dense<0.000000e+00> : vector<64x32xf32>
    %450 = tpu.matmul %447, %449, %cst_380 {dimension_numbers = #tpu.dot_dimension_numbers<[1], [0], [0], [1], [0, 0, 1, 1], [], []>} : vector<64x32xbf16>, vector<32x32xbf16>, vector<64x32xf32> -> vector<64x32xf32>
    %451 = arith.addf %446, %450 : vector<64x32xf32>
    %452 = vector.extract_strided_slice %425 {offsets = [320, 0], sizes = [64, 32], strides = [1, 1]} : vector<576x32xbf16> to vector<64x32xbf16>
    %c5_381 = arith.constant 5 : index
    %c0_382 = arith.constant 0 : index
    %c0_383 = arith.constant 0 : index
    %453 = vector.load %arg1[%c5_381, %c0_382, %c0_383] : memref<9x32x32xbf16, #tpu.memory_space<vmem>>, vector<1x32x32xbf16>
    %454 = vector.shape_cast %453 : vector<1x32x32xbf16> to vector<32x32xbf16>
    %cst_384 = arith.constant dense<0.000000e+00> : vector<64x32xf32>
    %455 = tpu.matmul %452, %454, %cst_384 {dimension_numbers = #tpu.dot_dimension_numbers<[1], [0], [0], [1], [0, 0, 1, 1], [], []>} : vector<64x32xbf16>, vector<32x32xbf16>, vector<64x32xf32> -> vector<64x32xf32>
    %456 = arith.addf %451, %455 : vector<64x32xf32>
    %457 = vector.extract_strided_slice %425 {offsets = [384, 0], sizes = [64, 32], strides = [1, 1]} : vector<576x32xbf16> to vector<64x32xbf16>
    %c6_385 = arith.constant 6 : index
    %c0_386 = arith.constant 0 : index
    %c0_387 = arith.constant 0 : index
    %458 = vector.load %arg1[%c6_385, %c0_386, %c0_387] : memref<9x32x32xbf16, #tpu.memory_space<vmem>>, vector<1x32x32xbf16>
    %459 = vector.shape_cast %458 : vector<1x32x32xbf16> to vector<32x32xbf16>
    %cst_388 = arith.constant dense<0.000000e+00> : vector<64x32xf32>
    %460 = tpu.matmul %457, %459, %cst_388 {dimension_numbers = #tpu.dot_dimension_numbers<[1], [0], [0], [1], [0, 0, 1, 1], [], []>} : vector<64x32xbf16>, vector<32x32xbf16>, vector<64x32xf32> -> vector<64x32xf32>
    %461 = arith.addf %456, %460 : vector<64x32xf32>
    %462 = vector.extract_strided_slice %425 {offsets = [448, 0], sizes = [64, 32], strides = [1, 1]} : vector<576x32xbf16> to vector<64x32xbf16>
    %c7_389 = arith.constant 7 : index
    %c0_390 = arith.constant 0 : index
    %c0_391 = arith.constant 0 : index
    %463 = vector.load %arg1[%c7_389, %c0_390, %c0_391] : memref<9x32x32xbf16, #tpu.memory_space<vmem>>, vector<1x32x32xbf16>
    %464 = vector.shape_cast %463 : vector<1x32x32xbf16> to vector<32x32xbf16>
    %cst_392 = arith.constant dense<0.000000e+00> : vector<64x32xf32>
    %465 = tpu.matmul %462, %464, %cst_392 {dimension_numbers = #tpu.dot_dimension_numbers<[1], [0], [0], [1], [0, 0, 1, 1], [], []>} : vector<64x32xbf16>, vector<32x32xbf16>, vector<64x32xf32> -> vector<64x32xf32>
    %466 = arith.addf %461, %465 : vector<64x32xf32>
    %467 = vector.extract_strided_slice %425 {offsets = [512, 0], sizes = [64, 32], strides = [1, 1]} : vector<576x32xbf16> to vector<64x32xbf16>
    %c8_393 = arith.constant 8 : index
    %c0_394 = arith.constant 0 : index
    %c0_395 = arith.constant 0 : index
    %468 = vector.load %arg1[%c8_393, %c0_394, %c0_395] : memref<9x32x32xbf16, #tpu.memory_space<vmem>>, vector<1x32x32xbf16>
    %469 = vector.shape_cast %468 : vector<1x32x32xbf16> to vector<32x32xbf16>
    %cst_396 = arith.constant dense<0.000000e+00> : vector<64x32xf32>
    %470 = tpu.matmul %467, %469, %cst_396 {dimension_numbers = #tpu.dot_dimension_numbers<[1], [0], [0], [1], [0, 0, 1, 1], [], []>} : vector<64x32xbf16>, vector<32x32xbf16>, vector<64x32xf32> -> vector<64x32xf32>
    %471 = arith.addf %466, %470 : vector<64x32xf32>
    %c0_397 = arith.constant 0 : index
    %c0_398 = arith.constant 0 : index
    %472 = vector.load %arg13[%c0_397, %c0_398] : memref<64x1xf32, #tpu.memory_space<vmem>>, vector<64x1xf32>
    %473 = vector.broadcast %472 : vector<64x1xf32> to vector<64x32xf32>
    %474 = arith.addf %471, %473 : vector<64x32xf32>
    %cst_399 = arith.constant 0.000000e+00 : f32
    %475 = vector.broadcast %cst_399 : f32 to vector<64x32xf32>
    %476 = arith.maximumf %474, %475 : vector<64x32xf32>
    %477 = arith.truncf %476 : vector<64x32xf32> to vector<64x32xbf16>
    %c0_400 = arith.constant 0 : index
    %c0_401 = arith.constant 0 : index
    %478 = vector.load %arg14[%c0_400, %c0_401] : memref<576x64xbf16, #tpu.memory_space<vmem>>, vector<576x64xbf16>
    %cst_402 = arith.constant dense<0.000000e+00> : vector<576x32xf32>
    %479 = tpu.matmul %478, %477, %cst_402 {dimension_numbers = #tpu.dot_dimension_numbers<[1], [0], [0], [1], [0, 0, 1, 1], [], []>} : vector<576x64xbf16>, vector<64x32xbf16>, vector<576x32xf32> -> vector<576x32xf32>
    %480 = arith.truncf %479 : vector<576x32xf32> to vector<576x32xbf16>
    %cst_403 = arith.constant 0.000000e+00 : f32
    %481 = vector.broadcast %cst_403 : f32 to vector<64x32xf32>
    %482 = vector.extract_strided_slice %480 {offsets = [0, 0], sizes = [64, 32], strides = [1, 1]} : vector<576x32xbf16> to vector<64x32xbf16>
    %c0_404 = arith.constant 0 : index
    %c0_405 = arith.constant 0 : index
    %c0_406 = arith.constant 0 : index
    %483 = vector.load %arg1[%c0_404, %c0_405, %c0_406] : memref<9x32x32xbf16, #tpu.memory_space<vmem>>, vector<1x32x32xbf16>
    %484 = vector.shape_cast %483 : vector<1x32x32xbf16> to vector<32x32xbf16>
    %cst_407 = arith.constant dense<0.000000e+00> : vector<64x32xf32>
    %485 = tpu.matmul %482, %484, %cst_407 {dimension_numbers = #tpu.dot_dimension_numbers<[1], [0], [0], [1], [0, 0, 1, 1], [], []>} : vector<64x32xbf16>, vector<32x32xbf16>, vector<64x32xf32> -> vector<64x32xf32>
    %486 = arith.addf %481, %485 : vector<64x32xf32>
    %487 = vector.extract_strided_slice %480 {offsets = [64, 0], sizes = [64, 32], strides = [1, 1]} : vector<576x32xbf16> to vector<64x32xbf16>
    %c1_408 = arith.constant 1 : index
    %c0_409 = arith.constant 0 : index
    %c0_410 = arith.constant 0 : index
    %488 = vector.load %arg1[%c1_408, %c0_409, %c0_410] : memref<9x32x32xbf16, #tpu.memory_space<vmem>>, vector<1x32x32xbf16>
    %489 = vector.shape_cast %488 : vector<1x32x32xbf16> to vector<32x32xbf16>
    %cst_411 = arith.constant dense<0.000000e+00> : vector<64x32xf32>
    %490 = tpu.matmul %487, %489, %cst_411 {dimension_numbers = #tpu.dot_dimension_numbers<[1], [0], [0], [1], [0, 0, 1, 1], [], []>} : vector<64x32xbf16>, vector<32x32xbf16>, vector<64x32xf32> -> vector<64x32xf32>
    %491 = arith.addf %486, %490 : vector<64x32xf32>
    %492 = vector.extract_strided_slice %480 {offsets = [128, 0], sizes = [64, 32], strides = [1, 1]} : vector<576x32xbf16> to vector<64x32xbf16>
    %c2_412 = arith.constant 2 : index
    %c0_413 = arith.constant 0 : index
    %c0_414 = arith.constant 0 : index
    %493 = vector.load %arg1[%c2_412, %c0_413, %c0_414] : memref<9x32x32xbf16, #tpu.memory_space<vmem>>, vector<1x32x32xbf16>
    %494 = vector.shape_cast %493 : vector<1x32x32xbf16> to vector<32x32xbf16>
    %cst_415 = arith.constant dense<0.000000e+00> : vector<64x32xf32>
    %495 = tpu.matmul %492, %494, %cst_415 {dimension_numbers = #tpu.dot_dimension_numbers<[1], [0], [0], [1], [0, 0, 1, 1], [], []>} : vector<64x32xbf16>, vector<32x32xbf16>, vector<64x32xf32> -> vector<64x32xf32>
    %496 = arith.addf %491, %495 : vector<64x32xf32>
    %497 = vector.extract_strided_slice %480 {offsets = [192, 0], sizes = [64, 32], strides = [1, 1]} : vector<576x32xbf16> to vector<64x32xbf16>
    %c3_416 = arith.constant 3 : index
    %c0_417 = arith.constant 0 : index
    %c0_418 = arith.constant 0 : index
    %498 = vector.load %arg1[%c3_416, %c0_417, %c0_418] : memref<9x32x32xbf16, #tpu.memory_space<vmem>>, vector<1x32x32xbf16>
    %499 = vector.shape_cast %498 : vector<1x32x32xbf16> to vector<32x32xbf16>
    %cst_419 = arith.constant dense<0.000000e+00> : vector<64x32xf32>
    %500 = tpu.matmul %497, %499, %cst_419 {dimension_numbers = #tpu.dot_dimension_numbers<[1], [0], [0], [1], [0, 0, 1, 1], [], []>} : vector<64x32xbf16>, vector<32x32xbf16>, vector<64x32xf32> -> vector<64x32xf32>
    %501 = arith.addf %496, %500 : vector<64x32xf32>
    %502 = vector.extract_strided_slice %480 {offsets = [256, 0], sizes = [64, 32], strides = [1, 1]} : vector<576x32xbf16> to vector<64x32xbf16>
    %c4_420 = arith.constant 4 : index
    %c0_421 = arith.constant 0 : index
    %c0_422 = arith.constant 0 : index
    %503 = vector.load %arg1[%c4_420, %c0_421, %c0_422] : memref<9x32x32xbf16, #tpu.memory_space<vmem>>, vector<1x32x32xbf16>
    %504 = vector.shape_cast %503 : vector<1x32x32xbf16> to vector<32x32xbf16>
    %cst_423 = arith.constant dense<0.000000e+00> : vector<64x32xf32>
    %505 = tpu.matmul %502, %504, %cst_423 {dimension_numbers = #tpu.dot_dimension_numbers<[1], [0], [0], [1], [0, 0, 1, 1], [], []>} : vector<64x32xbf16>, vector<32x32xbf16>, vector<64x32xf32> -> vector<64x32xf32>
    %506 = arith.addf %501, %505 : vector<64x32xf32>
    %507 = vector.extract_strided_slice %480 {offsets = [320, 0], sizes = [64, 32], strides = [1, 1]} : vector<576x32xbf16> to vector<64x32xbf16>
    %c5_424 = arith.constant 5 : index
    %c0_425 = arith.constant 0 : index
    %c0_426 = arith.constant 0 : index
    %508 = vector.load %arg1[%c5_424, %c0_425, %c0_426] : memref<9x32x32xbf16, #tpu.memory_space<vmem>>, vector<1x32x32xbf16>
    %509 = vector.shape_cast %508 : vector<1x32x32xbf16> to vector<32x32xbf16>
    %cst_427 = arith.constant dense<0.000000e+00> : vector<64x32xf32>
    %510 = tpu.matmul %507, %509, %cst_427 {dimension_numbers = #tpu.dot_dimension_numbers<[1], [0], [0], [1], [0, 0, 1, 1], [], []>} : vector<64x32xbf16>, vector<32x32xbf16>, vector<64x32xf32> -> vector<64x32xf32>
    %511 = arith.addf %506, %510 : vector<64x32xf32>
    %512 = vector.extract_strided_slice %480 {offsets = [384, 0], sizes = [64, 32], strides = [1, 1]} : vector<576x32xbf16> to vector<64x32xbf16>
    %c6_428 = arith.constant 6 : index
    %c0_429 = arith.constant 0 : index
    %c0_430 = arith.constant 0 : index
    %513 = vector.load %arg1[%c6_428, %c0_429, %c0_430] : memref<9x32x32xbf16, #tpu.memory_space<vmem>>, vector<1x32x32xbf16>
    %514 = vector.shape_cast %513 : vector<1x32x32xbf16> to vector<32x32xbf16>
    %cst_431 = arith.constant dense<0.000000e+00> : vector<64x32xf32>
    %515 = tpu.matmul %512, %514, %cst_431 {dimension_numbers = #tpu.dot_dimension_numbers<[1], [0], [0], [1], [0, 0, 1, 1], [], []>} : vector<64x32xbf16>, vector<32x32xbf16>, vector<64x32xf32> -> vector<64x32xf32>
    %516 = arith.addf %511, %515 : vector<64x32xf32>
    %517 = vector.extract_strided_slice %480 {offsets = [448, 0], sizes = [64, 32], strides = [1, 1]} : vector<576x32xbf16> to vector<64x32xbf16>
    %c7_432 = arith.constant 7 : index
    %c0_433 = arith.constant 0 : index
    %c0_434 = arith.constant 0 : index
    %518 = vector.load %arg1[%c7_432, %c0_433, %c0_434] : memref<9x32x32xbf16, #tpu.memory_space<vmem>>, vector<1x32x32xbf16>
    %519 = vector.shape_cast %518 : vector<1x32x32xbf16> to vector<32x32xbf16>
    %cst_435 = arith.constant dense<0.000000e+00> : vector<64x32xf32>
    %520 = tpu.matmul %517, %519, %cst_435 {dimension_numbers = #tpu.dot_dimension_numbers<[1], [0], [0], [1], [0, 0, 1, 1], [], []>} : vector<64x32xbf16>, vector<32x32xbf16>, vector<64x32xf32> -> vector<64x32xf32>
    %521 = arith.addf %516, %520 : vector<64x32xf32>
    %522 = vector.extract_strided_slice %480 {offsets = [512, 0], sizes = [64, 32], strides = [1, 1]} : vector<576x32xbf16> to vector<64x32xbf16>
    %c8_436 = arith.constant 8 : index
    %c0_437 = arith.constant 0 : index
    %c0_438 = arith.constant 0 : index
    %523 = vector.load %arg1[%c8_436, %c0_437, %c0_438] : memref<9x32x32xbf16, #tpu.memory_space<vmem>>, vector<1x32x32xbf16>
    %524 = vector.shape_cast %523 : vector<1x32x32xbf16> to vector<32x32xbf16>
    %cst_439 = arith.constant dense<0.000000e+00> : vector<64x32xf32>
    %525 = tpu.matmul %522, %524, %cst_439 {dimension_numbers = #tpu.dot_dimension_numbers<[1], [0], [0], [1], [0, 0, 1, 1], [], []>} : vector<64x32xbf16>, vector<32x32xbf16>, vector<64x32xf32> -> vector<64x32xf32>
    %526 = arith.addf %521, %525 : vector<64x32xf32>
    %c0_440 = arith.constant 0 : index
    %c0_441 = arith.constant 0 : index
    %527 = vector.load %arg15[%c0_440, %c0_441] : memref<64x1xf32, #tpu.memory_space<vmem>>, vector<64x1xf32>
    %528 = vector.broadcast %527 : vector<64x1xf32> to vector<64x32xf32>
    %529 = arith.addf %526, %528 : vector<64x32xf32>
    %530 = arith.negf %529 : vector<64x32xf32>
    %531 = math.exp %530 : vector<64x32xf32>
    %cst_442 = arith.constant 1.000000e+00 : f32
    %532 = vector.broadcast %cst_442 : f32 to vector<64x32xf32>
    %533 = arith.addf %532, %531 : vector<64x32xf32>
    %534 = arith.divf %532, %533 : vector<64x32xf32>
    %c0_443 = arith.constant 0 : index
    %c0_444 = arith.constant 0 : index
    %535 = vector.load %arg17[%c0_443, %c0_444] : memref<64x32xf32, #tpu.memory_space<vmem>>, vector<64x32xf32>
    tpu.vector_store %arg17[%c0_443, %c0_444], %534 {strides = array<i32>} : memref<64x32xf32, #tpu.memory_space<vmem>>, vector<64x32xf32>,
    return
  }
}

</mosaic_0001>

<bundles_post_ra>
// kernel: vae_forward.1
= control target key start
LH: loop header
LB: loop body
LE: loop exit
PB: predicated region body
PF: predicated region fallthrough
CT: control target
= control target key end

     0   :  { %v15435_v3 = vmov 0   ;;  %vm180_vm0 = vcmask 523264   ;;  %vm427_vm1 = vcmask 261120   ;;  %vm5589_vm2 = vcmask 15360   ;;  %s18152_s0 = inlined_call_operand.vmem [shape: f32[64,32], index: 0, kind: input, shape index: {}]   ;;  %s18153_s4 = inlined_call_operand.vmem [shape: bf16[256,64], index: 4, kind: input, shape index: {}]   ;;  %s18154_s5 = inlined_call_operand.vmem [shape: f32[64,1], index: 5, kind: input, shape index: {}]   ;;  %s18155_s7 = inlined_call_operand.vmem [shape: f32[32,1], index: 7, kind: input, shape index: {}]   ;;  %s18156_s9 = inlined_call_operand.vmem [shape: f32[128,1], index: 9, kind: input, shape index: {}]   ;;  %s18157_s11 = inlined_call_operand.vmem [shape: f32[16,32,1], index: 11, kind: input, shape index: {}]   ;;  %s18158_s1 = inlined_call_operand.vmem [shape: bf16[9,32,32], index: 1, kind: input, shape index: {}]   ;;  %s18159_s13 = inlined_call_operand.vmem [shape: f32[64,1], index: 13, kind: input, shape index: {}]   ;;  %s18160_s15 = inlined_call_operand.vmem [shape: f32[64,1], index: 15, kind: input, shape index: {}]   ;;  %s18161_s6 = inlined_call_operand.vmem [shape: bf16[128,64], index: 6, kind: input, shape index: {}]   ;;  %s18162_s2 = inlined_call_operand.vmem [shape: bf16[16,32,2], index: 2, kind: input, shape index: {}]   ;;  %s18163_s8 = inlined_call_operand.vmem [shape: bf16[16,128,32], index: 8, kind: input, shape index: {}]   ;;  %s18164_s10 = inlined_call_operand.vmem [shape: bf16[16,32,64], index: 10, kind: input, shape index: {}]   ;;  %s18165_s16 = inlined_call_operand.vmem [shape: f32[128,2], index: 16, kind: output, shape index: {0}]   ;;  %s18166_s3 = inlined_call_operand.vmem [shape: bf16[16,2,32], index: 3, kind: input, shape index: {}]   ;;  %s18167_s12 = inlined_call_operand.vmem [shape: bf16[576,32], index: 12, kind: input, shape index: {}]   ;;  %s18168_s14 = inlined_call_operand.vmem [shape: bf16[576,64], index: 14, kind: input, shape index: {}]   ;;  %s18169_s17 = inlined_call_operand.vmem [shape: f32[64,32], index: 17, kind: output, shape index: {1}]  }
   0x1   :  { %18172 = sst [smem:[#allocation40_spill]] %s18152_s0  ;;  %15087 = vset.pattern.permute.xlu0 %v15435_v3  ;;  %15088 = vset.pattern.permute.xlu1 %v15435_v3  ;;  %v798_v16 = vld [vmem:[%s18154_s5] sm:$0xff]  ;;  %v800_v17 = vld [vmem:[%s18154_s5 + $0x10] sm:$0xff]  ;;  %v799_v18 = vld [vmem:[%s18154_s5 + $0x8] sm:$0xff]  ;;  %vm5819_vm3 = vcmask 1040384  }
   0x2   :  { %18173 = sst [smem:[#allocation41_spill]] %s18153_s4  ;;  %s18174_s26 = sld [smem:[#allocation40_spill]]  ;;  %808 = vperm.xlu0 %15087, %v798_v16   ;;  %818 = vperm.xlu1 %15088, %v800_v17   ;;  %v801_v19 = vld [vmem:[%s18154_s5 + $0x18] sm:$0xff]  ;;  %v802_v22 = vld [vmem:[%s18154_s5 + $0x20] sm:$0xff]  ;;  %v803_v23 = vld [vmem:[%s18154_s5 + $0x28] sm:$0xff] }
   0x3   :  { %s18175_s24 = sld [smem:[#allocation41_spill]]  ;;  %v804_v24 = vld [vmem:[%s18154_s5 + $0x30] sm:$0xff]  ;;  %v805_v25 = vld [vmem:[%s18154_s5 + $0x38] sm:$0xff]  ;;  %v1279_v28 = vld [vmem:[%s18155_s7] sm:$0xff] }
   0x4   :  { %v1280_v29 = vld [vmem:[%s18155_s7 + $0x8] sm:$0xff]  ;;  %v1281_v30 = vld [vmem:[%s18155_s7 + $0x10] sm:$0xff]  ;;  %v1282_v31 = vld [vmem:[%s18155_s7 + $0x18] sm:$0xff] }
   0x5   :  { %v5477_v34 = vld [vmem:[%s18156_s9] sm:$0xff]  ;;  %v5478_v35 = vld [vmem:[%s18156_s9 + $0x8] sm:$0xff]  ;;  %v5479_v36 = vld [vmem:[%s18156_s9 + $0x10] sm:$0xff] }
   0x6   :  { %813 = vperm.xlu0 %15087, %v799_v18   ;;  %823 = vperm.xlu1 %15088, %v801_v19   ;;  %v5480_v37 = vld [vmem:[%s18156_s9 + $0x18] sm:$0xff]  ;;  %v5481_v40 = vld [vmem:[%s18156_s9 + $0x20] sm:$0xff]  ;;  %v5482_v41 = vld [vmem:[%s18156_s9 + $0x28] sm:$0xff] }
   0x7   :  { %v5483_v42 = vld [vmem:[%s18156_s9 + $0x30] sm:$0xff]  ;;  %v5484_v43 = vld [vmem:[%s18156_s9 + $0x38] sm:$0xff]  ;;  %v12231_v46 = vld [vmem:[%s18157_s11 + $0x20] sm:$0xff] }
   0x8   :  { %v56_v0 = vld [vmem:[%s18174_s26] sm:$0xff]  ;;  %v57_v1 = vld [vmem:[%s18174_s26 + $0x8] sm:$0xff]  ;;  %v58_v2 = vld [vmem:[%s18174_s26 + $0x10] sm:$0xff] }
   0x9   :  { %v64_v4 = vpack.c.bf16 %v57_v1, %v56_v0  ;;  %v59_v5 = vld [vmem:[%s18174_s26 + $0x18] sm:$0xff]  ;;  %v60_v7 = vld [vmem:[%s18174_s26 + $0x20] sm:$0xff]  ;;  %v61_v8 = vld [vmem:[%s18174_s26 + $0x28] sm:$0xff] }
   0xa   :  { %v65_v6 = vpack.c.bf16 %v59_v5, %v58_v2  ;;  %v15089_v9 = vld [vmem:[%s18175_s24] sm:$0xff]   ;;  %v66_v10 = vpack.c.bf16 %v61_v8, %v60_v7  ;;  %v62_v11 = vld [vmem:[%s18174_s26 + $0x30] sm:$0xff]  ;;  %v63_v12 = vld [vmem:[%s18174_s26 + $0x38] sm:$0xff]  ;;  %828 = vperm.xlu0 %15087, %v802_v22   ;;  %833 = vperm.xlu1 %15088, %v803_v23  }
   0xb   :  { %13354 = vmatprep.subr.bf16.mxu0 %v64_v4  ;;  %13362 = vmatprep.mubr.msk.bf16.mxu0 %vm180_vm0, %v15089_v9  ;;  %v67_v13 = vpack.c.bf16 %v63_v12, %v62_v11  ;;  %v15090_v14 = vld [vmem:[%s18175_s24 + $0x8] sm:$0xff]   ;;  %v15091_v15 = vld [vmem:[%s18175_s24 + $0x10] sm:$0xff]   ;;  %v15092_v20 = vld [vmem:[%s18175_s24 + $0x18] sm:$0xff]  }
   0xc   :  { %13355 = vmatpush3.bf16.msra.mxu0 %v64_v4  ;;  %v15093_v21 = vld [vmem:[%s18175_s24 + $0x20] sm:$0xff]   ;;  %v15094_v26 = vld [vmem:[%s18175_s24 + $0x28] sm:$0xff]   ;;  %v15095_v27 = vld [vmem:[%s18175_s24 + $0x30] sm:$0xff]  }
   0xd   :  { %13356 = vmatprep.subr.bf16.mxu0 %v65_v6  ;;  %v15096_v32 = vld [vmem:[%s18175_s24 + $0x38] sm:$0xff]   ;;  %v15097_v33 = vld [vmem:[%s18175_s24 + $0x40] sm:$0xff]   ;;  %v15098_v38 = vld [vmem:[%s18175_s24 + $0x48] sm:$0xff]  }
   0xe   :  { %838 = vperm.xlu0 %15087, %v804_v24   ;;  %843 = vperm.xlu1 %15088, %v805_v25   ;;  %v15099_v39 = vld [vmem:[%s18175_s24 + $0x50] sm:$0xff]   ;;  %v15100_v44 = vld [vmem:[%s18175_s24 + $0x58] sm:$0xff]   ;;  %v15101_v45 = vld [vmem:[%s18175_s24 + $0x60] sm:$0xff]  }
   0xf   :  { %v12232_v47 = vld [vmem:[%s18157_s11 + $0x28] sm:$0xff]  ;;  %v12233_v48 = vld [vmem:[%s18157_s11 + $0x30] sm:$0xff]  ;;  %v12234_v49 = vld [vmem:[%s18157_s11 + $0x38] sm:$0xff] }
  0x10   :  { %13357 = vmatpush3.bf16.msra.mxu0 %v65_v6  ;;  %v15102_v50 = vld [vmem:[%s18175_s24 + $0x68] sm:$0xff]   ;;  %v15103_v51 = vld [vmem:[%s18175_s24 + $0x70] sm:$0xff]   ;;  %v5614_v52 = vld [vmem:[%s18157_s11] sm:$0xff] }
  0x11   :  { %13358 = vmatprep.subr.bf16.mxu0 %v66_v10  ;;  %v5615_v53 = vld [vmem:[%s18157_s11 + $0x8] sm:$0xff]  ;;  %v5616_v54 = vld [vmem:[%s18157_s11 + $0x10] sm:$0xff]  ;;  %v5617_v55 = vld [vmem:[%s18157_s11 + $0x18] sm:$0xff] }
  0x12   :  { %1285 = vperm.xlu0 %15087, %v1279_v28   ;;  %1290 = vperm.xlu1 %15088, %v1280_v29   ;;  %v15104_v56 = vld [vmem:[%s18175_s24 + $0x78] sm:$0xff]   ;;  %v12248_v57 = vld [vmem:[%s18157_s11 + $0x40] sm:$0xff]  ;;  %v12249_v58 = vld [vmem:[%s18157_s11 + $0x48] sm:$0xff] }
  0x13   :  { %v12250_v59 = vld [vmem:[%s18157_s11 + $0x50] sm:$0xff]  ;;  %v12251_v60 = vld [vmem:[%s18157_s11 + $0x58] sm:$0xff]  ;;  %v12263_v61 = vld [vmem:[%s18157_s11 + $0x60] sm:$0xff] }
  0x14   :  { %13359 = vmatpush3.bf16.msra.mxu0 %v66_v10  ;;  %v12264_v62 = vld [vmem:[%s18157_s11 + $0x68] sm:$0xff]  ;;  %v12265_v63 = vld [vmem:[%s18157_s11 + $0x70] sm:$0xff]  ;;  %v12266_v0 = vld [vmem:[%s18157_s11 + $0x78] sm:$0xff] }
  0x15   :  { %13360 = vmatprep.subr.bf16.mxu0 %v67_v13  ;;  %v12278_v1 = vld [vmem:[%s18157_s11 + $0x80] sm:$0xff]  ;;  %v15105_v2 = vld [vmem:[%s18158_s1 + $0x10] sm:$0xff]   ;;  %v12279_v3 = vld [vmem:[%s18157_s11 + $0x88] sm:$0xff] }
  0x16   :  { %1295 = vperm.xlu0 %15087, %v1281_v30   ;;  %1300 = vperm.xlu1 %15088, %v1282_v31   ;;  %v12280_v4 = vld [vmem:[%s18157_s11 + $0x90] sm:$0xff]  ;;  %v15106_v5 = vld [vmem:[%s18158_s1 + $0x18] sm:$0xff]   ;;  %v12293_v7 = vld [vmem:[%s18157_s11 + $0xa0] sm:$0xff] }
  0x17   :  { %13394 = vmatprep.subr.bf16.mxu1 %v15105_v2  ;;  %v12281_v6 = vld [vmem:[%s18157_s11 + $0x98] sm:$0xff]  ;;  %v12294_v8 = vld [vmem:[%s18157_s11 + $0xa8] sm:$0xff]  ;;  %v12295_v9 = vld [vmem:[%s18157_s11 + $0xb0] sm:$0xff] }
  0x18   :  { %13361 = vmatpush3.bf16.msra.mxu0 %v67_v13  ;;  %13395 = vmatpush3.bf16.msra.mxu1 %v15105_v2  ;;  %v12296_v10 = vld [vmem:[%s18157_s11 + $0xb8] sm:$0xff]  ;;  %v12308_v11 = vld [vmem:[%s18157_s11 + $0xc0] sm:$0xff]  ;;  %v12309_v13 = vld [vmem:[%s18157_s11 + $0xc8] sm:$0xff] }
  0x19   :  { %13466 = vmatprep.subr.bf16.mxu0 %v15105_v2  ;;  %13396 = vmatprep.subr.bf16.mxu1 %v15106_v5  ;;  %v15758_v12 = vld [vmem:[%s18158_s1] sm:$0xff]   ;;  %v12324_v17 = vld [vmem:[%s18157_s11 + $0xe8] sm:$0xff]  ;;  %v12325_v18 = vld [vmem:[%s18157_s11 + $0xf0] sm:$0xff] }
  0x1a   :  { %5495 = vperm.xlu0 %15087, %v5477_v34   ;;  %5500 = vperm.xlu1 %15088, %v5478_v35   ;;  %v12323_v16 = vld [vmem:[%s18157_s11 + $0xe0] sm:$0xff]  ;;  %v12326_v19 = vld [vmem:[%s18157_s11 + $0xf8] sm:$0xff]  ;;  %v12340_v22 = vld [vmem:[%s18157_s11 + $0x110] sm:$0xff] }
  0x1b   :  { %13363 = vmatmul.mubr.msk.bf16.vlgmr.msra.gmra.mrb[0].mxu0 %vm180_vm0, %v15090_v14  ;;  %v12310_v14 = vld [vmem:[%s18157_s11 + $0xd0] sm:$0xff]  ;;  %v12341_v23 = vld [vmem:[%s18157_s11 + $0x118] sm:$0xff]  ;;  %v12353_v24 = vld [vmem:[%s18157_s11 + $0x120] sm:$0xff] }
  0x1c   :  { %13366 = vmatprep.mubr.msk.bf16.mxu0 %vm180_vm0, %v15091_v15  ;;  %13467 = vmatpush3.bf16.msra.mxu0 %v15105_v2  ;;  %v12311_v15 = vld [vmem:[%s18157_s11 + $0xd8] sm:$0xff]  ;;  %v12354_v25 = vld [vmem:[%s18157_s11 + $0x128] sm:$0xff]  ;;  %v12368_v28 = vld [vmem:[%s18157_s11 + $0x140] sm:$0xff] }
  0x1d   :  { %13468 = vmatprep.subr.bf16.mxu0 %v15106_v5  ;;  %13397 = vmatpush3.bf16.msra.mxu1 %v15106_v5  ;;  %v12369_v29 = vld [vmem:[%s18157_s11 + $0x148] sm:$0xff]  ;;  %v12370_v30 = vld [vmem:[%s18157_s11 + $0x150] sm:$0xff]  ;;  %v12371_v31 = vld [vmem:[%s18157_s11 + $0x158] sm:$0xff] }
  0x1e   :  { %5505 = vperm.xlu0 %15087, %v5479_v36   ;;  %5510 = vperm.xlu1 %15088, %v5480_v37   ;;  %v12385_v34 = vld [vmem:[%s18157_s11 + $0x170] sm:$0xff]  ;;  %v12386_v35 = vld [vmem:[%s18157_s11 + $0x178] sm:$0xff]  ;;  %v12398_v36 = vld [vmem:[%s18157_s11 + $0x180] sm:$0xff] }
  0x1f   :  { %13406 = vmatprep.subr.bf16.mxu1 %v15758_v12  ;;  %v12399_v37 = vld [vmem:[%s18157_s11 + $0x188] sm:$0xff] }
  0x20   :  { %13469 = vmatpush3.bf16.msra.mxu0 %v15106_v5  ;;  %v11394_v5 = vld [vmem:[%s18160_s15 + $0x18] sm:$0xff] }
  0x21   :  { %13474 = vmatprep.subr.bf16.mxu0 %v15758_v12 }
  0x22   :  { %5515 = vperm.xlu0 %15087, %v5481_v40   ;;  %5520 = vperm.xlu1 %15088, %v5482_v41   ;;  %v12413_v40 = vld [vmem:[%s18157_s11 + $0x1a0] sm:$0xff]  ;;  %v12414_v41 = vld [vmem:[%s18157_s11 + $0x1a8] sm:$0xff] }
  0x23   :  { %13367 = vmatmul.mubr.msk.bf16.gmra.mrb[4].mxu0 %vm180_vm0, %v15092_v20  ;;  %v12338_v20 = vld [vmem:[%s18157_s11 + $0x100] sm:$0xff] }
  0x24   :  { %13370 = vmatprep.mubr.msk.bf16.mxu0 %vm180_vm0, %v15093_v21  ;;  %v12339_v21 = vld [vmem:[%s18157_s11 + $0x108] sm:$0xff] }
  0x26   :  { %5525 = vperm.xlu0 %15087, %v5483_v42   ;;  %5530 = vperm.xlu1 %15088, %v5484_v43   ;;  %v12415_v42 = vld [vmem:[%s18157_s11 + $0x1b0] sm:$0xff]  ;;  %v12416_v43 = vld [vmem:[%s18157_s11 + $0x1b8] sm:$0xff] }
  0x2a   :  { %5722 = vperm.xlu0 %15087, %v12231_v46   ;;  %5727 = vperm.xlu1 %15088, %v12232_v47   ;;  %v12430_v46 = vld [vmem:[%s18157_s11 + $0x1d0] sm:$0xff]  ;;  %v12431_v47 = vld [vmem:[%s18157_s11 + $0x1d8] sm:$0xff] }
  0x2b   :  { %13371 = vmatmul.mubr.msk.bf16.gmra.mrb[8].mxu0 %vm180_vm0, %v15094_v26  ;;  %v12355_v26 = vld [vmem:[%s18157_s11 + $0x130] sm:$0xff] }
  0x2c   :  { %13374 = vmatprep.mubr.msk.bf16.mxu0 %vm180_vm0, %v15095_v27  ;;  %v12356_v27 = vld [vmem:[%s18157_s11 + $0x138] sm:$0xff] }
  0x2e   :  { %5732 = vperm.xlu0 %15087, %v12233_v48   ;;  %5737 = vperm.xlu1 %15088, %v12234_v49   ;;  %v12443_v48 = vld [vmem:[%s18157_s11 + $0x1e0] sm:$0xff]  ;;  %v12444_v49 = vld [vmem:[%s18157_s11 + $0x1e8] sm:$0xff] }
  0x32   :  { %5620 = vperm.xlu0 %15087, %v5614_v52   ;;  %5625 = vperm.xlu1 %15088, %v5615_v53   ;;  %v9857_v52 = vld [vmem:[%s18159_s13] sm:$0xff]  ;;  %v9858_v53 = vld [vmem:[%s18159_s13 + $0x8] sm:$0xff] }
  0x33   :  { %13375 = vmatmul.mubr.msk.bf16.gmra.mrb[12].mxu0 %vm180_vm0, %v15096_v32  ;;  %v12383_v32 = vld [vmem:[%s18157_s11 + $0x160] sm:$0xff] }
  0x34   :  { %13378 = vmatprep.mubr.msk.bf16.mxu0 %vm180_vm0, %v15097_v33  ;;  %v12384_v33 = vld [vmem:[%s18157_s11 + $0x168] sm:$0xff] }
  0x36   :  { %5630 = vperm.xlu0 %15087, %v5616_v54   ;;  %5635 = vperm.xlu1 %15088, %v5617_v55   ;;  %v9859_v54 = vld [vmem:[%s18159_s13 + $0x10] sm:$0xff]  ;;  %v9860_v55 = vld [vmem:[%s18159_s13 + $0x18] sm:$0xff] }
  0x3a   :  { %5942 = vperm.xlu0 %15087, %v12248_v57   ;;  %5947 = vperm.xlu1 %15088, %v12249_v58   ;;  %v9862_v57 = vld [vmem:[%s18159_s13 + $0x28] sm:$0xff]  ;;  %v9863_v58 = vld [vmem:[%s18159_s13 + $0x30] sm:$0xff] }
  0x3b   :  { %13379 = vmatmul.mubr.msk.bf16.gmra.mrb[16].mxu0 %vm180_vm0, %v15098_v38  ;;  %v12400_v38 = vld [vmem:[%s18157_s11 + $0x190] sm:$0xff] }
  0x3c   :  { %13382 = vmatprep.mubr.msk.bf16.mxu0 %vm180_vm0, %v15099_v39  ;;  %v12401_v39 = vld [vmem:[%s18157_s11 + $0x198] sm:$0xff] }
  0x3e   :  { %5952 = vperm.xlu0 %15087, %v12250_v59   ;;  %5957 = vperm.xlu1 %15088, %v12251_v60   ;;  %v9864_v59 = vld [vmem:[%s18159_s13 + $0x38] sm:$0xff]  ;;  %v11391_v60 = vld [vmem:[%s18160_s15] sm:$0xff] }
  0x42   :  { %6107 = vperm.xlu0 %15087, %v12263_v61   ;;  %6112 = vperm.xlu1 %15088, %v12264_v62   ;;  %v11392_v61 = vld [vmem:[%s18160_s15 + $0x8] sm:$0xff]  ;;  %v11393_v62 = vld [vmem:[%s18160_s15 + $0x10] sm:$0xff] }
  0x43   :  { %13383 = vmatmul.mubr.msk.bf16.gmra.mrb[20].mxu0 %vm180_vm0, %v15100_v44  ;;  %v12428_v44 = vld [vmem:[%s18157_s11 + $0x1c0] sm:$0xff] }
  0x44   :  { %13386 = vmatprep.mubr.msk.bf16.mxu0 %vm180_vm0, %v15101_v45  ;;  %v12429_v45 = vld [vmem:[%s18157_s11 + $0x1c8] sm:$0xff] }
  0x46   :  { %6117 = vperm.xlu0 %15087, %v12265_v63   ;;  %6122 = vperm.xlu1 %15088, %v12266_v0  }
  0x4a   :  { %6272 = vperm.xlu0 %15087, %v12278_v1   ;;  %6277 = vperm.xlu1 %15088, %v12279_v3  }
  0x4b   :  { %13387 = vmatmul.mubr.msk.bf16.gmra.mrb[24].mxu0 %vm180_vm0, %v15102_v50  ;;  %v12445_v50 = vld [vmem:[%s18157_s11 + $0x1f0] sm:$0xff] }
  0x4c   :  { %13390 = vmatprep.mubr.msk.bf16.mxu0 %vm180_vm0, %v15103_v51  ;;  %v12446_v51 = vld [vmem:[%s18157_s11 + $0x1f8] sm:$0xff] }
  0x4e   :  { %6282 = vperm.xlu0 %15087, %v12280_v4   ;;  %6287 = vperm.xlu1 %15088, %v12281_v6   ;;  %v11395_v6 = vld [vmem:[%s18160_s15 + $0x20] sm:$0xff] }
  0x52   :  { %6437 = vperm.xlu0 %15087, %v12293_v7   ;;  %6442 = vperm.xlu1 %15088, %v12294_v8  }
  0x53   :  { %13391 = vmatmul.mubr.msk.bf16.gmra.mrb[28].mxu0 %vm180_vm0, %v15104_v56  ;;  %v9861_v56 = vld [vmem:[%s18159_s13 + $0x20] sm:$0xff] }
  0x56   :  { %6447 = vperm.xlu0 %15087, %v12295_v9   ;;  %6452 = vperm.xlu1 %15088, %v12296_v10   ;;  %v11396_v9 = vld [vmem:[%s18160_s15 + $0x28] sm:$0xff]  ;;  %v11397_v10 = vld [vmem:[%s18160_s15 + $0x30] sm:$0xff] }
  0x5a   :  { %6602 = vperm.xlu0 %15087, %v12308_v11   ;;  %6607 = vperm.xlu1 %15088, %v12309_v13  }
  0x5e   :  { %6612 = vperm.xlu0 %15087, %v12310_v14   ;;  %6617 = vperm.xlu1 %15088, %v12311_v15  }
  0x62   :  { %6767 = vperm.xlu0 %15087, %v12323_v16   ;;  %6772 = vperm.xlu1 %15088, %v12324_v17  }
  0x66   :  { %6777 = vperm.xlu0 %15087, %v12325_v18   ;;  %6782 = vperm.xlu1 %15088, %v12326_v19   ;;  %v11398_v18 = vld [vmem:[%s18160_s15 + $0x38] sm:$0xff]  ;;  %v5485_v19 = vld [vmem:[%s18156_s9 + $0x40] sm:$0xff] }
  0x6a   :  { %6932 = vperm.xlu0 %15087, %v12338_v20   ;;  %6937 = vperm.xlu1 %15088, %v12339_v21  }
  0x6e   :  { %6942 = vperm.xlu0 %15087, %v12340_v22   ;;  %6947 = vperm.xlu1 %15088, %v12341_v23   ;;  %v5486_v23 = vld [vmem:[%s18156_s9 + $0x48] sm:$0xff] }
  0x72   :  { %7097 = vperm.xlu0 %15087, %v12353_v24   ;;  %7102 = vperm.xlu1 %15088, %v12354_v25   ;;  %v5487_v24 = vld [vmem:[%s18156_s9 + $0x50] sm:$0xff] }
  0x76   :  { %7107 = vperm.xlu0 %15087, %v12355_v26   ;;  %7112 = vperm.xlu1 %15088, %v12356_v27  }
  0x7a   :  { %7262 = vperm.xlu0 %15087, %v12368_v28   ;;  %7267 = vperm.xlu1 %15088, %v12369_v29  }
  0x7e   :  { %7272 = vperm.xlu0 %15087, %v12370_v30   ;;  %7277 = vperm.xlu1 %15088, %v12371_v31   ;;  %v5488_v31 = vld [vmem:[%s18156_s9 + $0x58] sm:$0xff] }
  0x81   :  { %v15922_v4 = vpop.permute.xlu0 %808  ;;  %v15932_v8 = vpop.permute.xlu1 %818 }
  0x82   :  { %7427 = vperm.xlu0 %15087, %v12383_v32   ;;  %7432 = vperm.xlu1 %15088, %v12384_v33   ;;  %v5489_v33 = vld [vmem:[%s18156_s9 + $0x60] sm:$0xff] }
  0x85   :  { %v15944_v14 = vpop.permute.xlu0 %813  ;;  %v15957_v21 = vpop.permute.xlu1 %823 }
  0x86   :  { %7437 = vperm.xlu0 %15087, %v12385_v34   ;;  %7442 = vperm.xlu1 %15088, %v12386_v35   ;;  %v15978_v34 = vld [vmem:[%s18158_s1 + $0x8] sm:$0xff]  }
  0x89   :  { %v15959_v22 = vpop.permute.xlu0 %828  ;;  %v15967_v28 = vpop.permute.xlu1 %833 }
  0x8a   :  { %7592 = vperm.xlu0 %15087, %v12398_v36   ;;  %7597 = vperm.xlu1 %15088, %v12399_v37   ;;  %v5490_v36 = vld [vmem:[%s18156_s9 + $0x68] sm:$0xff] }
  0x8d   :  { %v15980_v35 = vpop.permute.xlu0 %838 }
  0x8e   :  { %7602 = vperm.xlu0 %15087, %v12400_v38   ;;  %7607 = vperm.xlu1 %15088, %v12401_v39   ;;  %v15988_v38 = vpop.permute.xlu1 %843  ;;  %v5491_v39 = vld [vmem:[%s18156_s9 + $0x70] sm:$0xff] }
  0x92   :  { %7757 = vperm.xlu0 %15087, %v12413_v40   ;;  %7762 = vperm.xlu1 %15088, %v12414_v41   ;;  %v15997_v41 = vld [vmem:[%s18158_s1 + $0x30] sm:$0xff]  }
  0x96   :  { %7767 = vperm.xlu0 %15087, %v12415_v42   ;;  %7772 = vperm.xlu1 %15088, %v12416_v43  }
  0x9a   :  { %7922 = vperm.xlu0 %15087, %v12428_v44   ;;  %7927 = vperm.xlu1 %15088, %v12429_v45   ;;  %v15999_v45 = vpop.permute.xlu0 %1285 }
  0x9e   :  { %7932 = vperm.xlu0 %15087, %v12430_v46   ;;  %7937 = vperm.xlu1 %15088, %v12431_v47   ;;  %v5492_v46 = vld [vmem:[%s18156_s9 + $0x78] sm:$0xff] }
  0xa2   :  { %8087 = vperm.xlu0 %15087, %v12443_v48   ;;  %8092 = vperm.xlu1 %15088, %v12444_v49   ;;  %v16007_v48 = vpop.permute.xlu1 %1290 }
  0xa6   :  { %8097 = vperm.xlu0 %15087, %v12445_v50   ;;  %8102 = vperm.xlu1 %15088, %v12446_v51  }
  0xaa   :  { %9867 = vperm.xlu0 %15087, %v9857_v52   ;;  %9872 = vperm.xlu1 %15088, %v9858_v53  }
  0xae   :  { %9877 = vperm.xlu0 %15087, %v9859_v54   ;;  %9882 = vperm.xlu1 %15088, %v9860_v55   ;;  %v16017_v55 = vld [vmem:[%s18158_s1 + $0x38] sm:$0xff]  }
  0xb2   :  { %9887 = vperm.xlu0 %15087, %v9861_v56   ;;  %9892 = vperm.xlu1 %15088, %v9862_v57  }
  0xb6   :  { %9897 = vperm.xlu0 %15087, %v9863_v58   ;;  %9902 = vperm.xlu1 %15088, %v9864_v59   ;;  %v16029_v58 = vld [vmem:[%s18158_s1 + $0x40] sm:$0xff]  }
  0xba   :  { %11401 = vperm.xlu0 %15087, %v11391_v60   ;;  %11406 = vperm.xlu1 %15088, %v11392_v61  }
  0xbe   :  { %11411 = vperm.xlu0 %15087, %v11393_v62   ;;  %11416 = vperm.xlu1 %15088, %v11394_v5  }
  0xc2   :  { %11421 = vperm.xlu0 %15087, %v11395_v6   ;;  %11426 = vperm.xlu1 %15088, %v11396_v9   ;;  %v16041_v6 = vld [vmem:[%s18158_s1 + $0x48] sm:$0xff]  }
  0xc6   :  { %11431 = vperm.xlu0 %15087, %v11397_v10   ;;  %11436 = vperm.xlu1 %15088, %v11398_v18  }
  0xca   :  { %5535 = vperm.xlu0 %15087, %v5485_v19   ;;  %5540 = vperm.xlu1 %15088, %v5486_v23  }
  0xce   :  { %5545 = vperm.xlu0 %15087, %v5487_v24   ;;  %5550 = vperm.xlu1 %15088, %v5488_v31  }
  0xd2   :  { %5555 = vperm.xlu0 %15087, %v5489_v33   ;;  %5560 = vperm.xlu1 %15088, %v5490_v36  }
  0xd6   :  { %5565 = vperm.xlu0 %15087, %v5491_v39   ;;  %5570 = vperm.xlu1 %15088, %v5492_v46  }
  0xee   :  { %v15912_v63 = vpop.f32.mrb[0].mxu0 }
  0xef   :  { %v15914_v0 = vpop.f32.mrb[1].mxu0 }
  0xf0   :  { %v15916_v1 = vpop.f32.mrb[2].mxu0 }
  0xf1   :  { %v391_v2 = vpack.c.bf16 %v15916_v1, %v15912_v63  ;;  %v15920_v3 = vpop.f32.mrb[3].mxu0 }
  0xf2   :  { %v390_v7 = vpack.c.bf16 %v15920_v3, %v15914_v0 }
  0xf6   :  { %v15940_v11 = vpop.f32.mrb[4].mxu0 }
  0xf7   :  { %v15942_v13 = vpop.f32.mrb[5].mxu0 }
  0xf8   :  { %v15946_v15 = vpop.f32.mrb[6].mxu0 }
  0xf9   :  { %v393_v16 = vpack.c.bf16 %v15946_v15, %v15940_v11  ;;  %v282_v17 = vpop.f32.mrb[7].mxu0 }
  0xfa   :  { %v392_v20 = vpack.c.bf16 %v282_v17, %v15942_v13 }
  0xfe   :  { %v13372_v25 = vpop.f32.mrb[8].mxu0 }
  0xff   :  { %v295_v26 = vpop.f32.mrb[9].mxu0 }
 0x100   :  { %v13373_v27 = vpop.f32.mrb[10].mxu0 }
 0x101   :  { %v395_v29 = vpack.c.bf16 %v13373_v27, %v13372_v25  ;;  %v298_v30 = vpop.f32.mrb[11].mxu0 }
 0x102   :  { %v394_v32 = vpack.c.bf16 %v298_v30, %v295_v26 }
 0x104   :  { %13398 = vmatprep.mubr.msk.bf16.mxu1 %vm427_vm1, %v394_v32 }
 0x105   :  { %13399 = vmatmul.mubr.msk.bf16.vlgmr.msra.gmra.mrb[0].mxu1 %vm427_vm1, %v395_v29 }
 0x106   :  { %v13376_v37 = vpop.f32.mrb[12].mxu0  ;;  %13407 = vmatpush3.bf16.msra.mxu1 %v15758_v12 }
 0x107   :  { %v311_v40 = vpop.f32.mrb[13].mxu0  ;;  %13408 = vmatprep.subr.bf16.mxu1 %v15978_v34 }
 0x108   :  { %v13377_v42 = vpop.f32.mrb[14].mxu0 }
 0x109   :  { %v397_v43 = vpack.c.bf16 %v13377_v42, %v13376_v37  ;;  %v314_v44 = vpop.f32.mrb[15].mxu0 }
 0x10a   :  { %v396_v47 = vpack.c.bf16 %v314_v44, %v311_v40  ;;  %13409 = vmatpush3.bf16.msra.mxu1 %v15978_v34 }
 0x10b   :  { %13418 = vmatprep.subr.bf16.mxu1 %v15997_v41 }
 0x10c   :  { %13402 = vmatprep.mubr.msk.bf16.mxu1 %vm427_vm1, %v396_v47 }
 0x10d   :  { %13403 = vmatmul.mubr.msk.bf16.gmra.mrb[4].mxu1 %vm427_vm1, %v397_v43 }
 0x10e   :  { %13410 = vmatprep.mubr.msk.bf16.mxu1 %vm427_vm1, %v390_v7  ;;  %v13380_v49 = vpop.f32.mrb[16].mxu0 }
 0x10f   :  { %v327_v50 = vpop.f32.mrb[17].mxu0 }
 0x110   :  { %v13381_v51 = vpop.f32.mrb[18].mxu0 }
 0x111   :  { %v399_v52 = vpack.c.bf16 %v13381_v51, %v13380_v49  ;;  %v330_v53 = vpop.f32.mrb[19].mxu0  ;;  %v15119_v51 = vld [vmem:[%s18161_s6 + $0x30] sm:$0xff]  }
 0x112   :  { %v398_v54 = vpack.c.bf16 %v330_v53, %v327_v50  ;;  %v15118_v50 = vld [vmem:[%s18161_s6 + $0x28] sm:$0xff]  }
 0x115   :  { %13411 = vmatmul.mubr.msk.bf16.vlgmr.msra.gmra.mrb[0].mxu1 %vm427_vm1, %v391_v2 }
 0x116   :  { %13414 = vmatprep.mubr.msk.bf16.mxu1 %vm427_vm1, %v392_v20  ;;  %13419 = vmatpush3.bf16.msra.mxu1 %v15997_v41  ;;  %v13384_v56 = vpop.f32.mrb[20].mxu0 }
 0x117   :  { %13420 = vmatprep.subr.bf16.mxu1 %v16017_v55  ;;  %v343_v57 = vpop.f32.mrb[21].mxu0 }
 0x118   :  { %v13385_v59 = vpop.f32.mrb[22].mxu0 }
 0x119   :  { %v401_v60 = vpack.c.bf16 %v13385_v59, %v13384_v56  ;;  %v346_v61 = vpop.f32.mrb[23].mxu0 }
 0x11a   :  { %13421 = vmatpush3.bf16.msra.mxu1 %v16017_v55  ;;  %v400_v62 = vpack.c.bf16 %v346_v61, %v343_v57 }
 0x11b   :  { %13430 = vmatprep.subr.bf16.mxu1 %v16029_v58 }
 0x11d   :  { %13415 = vmatmul.mubr.msk.bf16.gmra.mrb[4].mxu1 %vm427_vm1, %v393_v16  ;;  %v15113_v16 = vld [vmem:[%s18161_s6] sm:$0xff]  }
 0x11e   :  { %13422 = vmatprep.mubr.msk.bf16.mxu1 %vm427_vm1, %v398_v54  ;;  %v13388_v63 = vpop.f32.mrb[24].mxu0 }
 0x11f   :  { %v359_v0 = vpop.f32.mrb[25].mxu0 }
 0x120   :  { %v13389_v1 = vpop.f32.mrb[26].mxu0 }
 0x121   :  { %v403_v2 = vpack.c.bf16 %v13389_v1, %v13388_v63  ;;  %v362_v3 = vpop.f32.mrb[27].mxu0 }
 0x122   :  { %v402_v5 = vpack.c.bf16 %v362_v3, %v359_v0 }
 0x125   :  { %13423 = vmatmul.mubr.msk.bf16.vlgmr.msra.gmra.mrb[0].mxu1 %vm427_vm1, %v399_v52  ;;  %v15120_v52 = vld [vmem:[%s18161_s6 + $0x38] sm:$0xff]  }
 0x126   :  { %13426 = vmatprep.mubr.msk.bf16.mxu1 %vm427_vm1, %v400_v62  ;;  %13431 = vmatpush3.bf16.msra.mxu1 %v16029_v58  ;;  %v13392_v7 = vpop.f32.mrb[28].mxu0 }
 0x127   :  { %13432 = vmatprep.subr.bf16.mxu1 %v16041_v6  ;;  %v375_v9 = vpop.f32.mrb[29].mxu0 }
 0x128   :  { %v13393_v10 = vpop.f32.mrb[30].mxu0 }
 0x129   :  { %v405_v11 = vpack.c.bf16 %v13393_v10, %v13392_v7  ;;  %v378_v13 = vpop.f32.mrb[31].mxu0 }
 0x12a   :  { %13433 = vmatpush3.bf16.msra.mxu1 %v16041_v6  ;;  %v404_v15 = vpack.c.bf16 %v378_v13, %v375_v9 }
 0x12d   :  { %13427 = vmatmul.mubr.msk.bf16.gmra.mrb[4].mxu1 %vm427_vm1, %v401_v60 }
 0x12e   :  { %13434 = vmatprep.mubr.msk.bf16.mxu1 %vm427_vm1, %v402_v5 }
 0x135   :  { %13435 = vmatmul.mubr.msk.bf16.vlgmr.msra.gmra.mrb[0].mxu1 %vm427_vm1, %v403_v2 }
 0x136   :  { %13438 = vmatprep.mubr.msk.bf16.mxu1 %vm427_vm1, %v404_v15 }
 0x13d   :  { %13439 = vmatmul.mubr.msk.bf16.gmra.mrb[4].mxu1 %vm427_vm1, %v405_v11 }
 0x13e   :  { %13450 = vmatprep.mubr.msk.bf16.mxu1 %vm180_vm0, %v15113_v16 }
 0x208   :  { %v13436_v17 = vpop.f32.mrb[0].mxu1 }
 0x209   :  { %v848_v18 = vadd.f32 %v13436_v17, %v15932_v8  ;;  %v759_v19 = vpop.f32.mrb[1].mxu1 }
 0x20a   :  { %v846_v20 = vadd.f32 %v15922_v4, %v759_v19  ;;  %v13437_v23 = vpop.f32.mrb[2].mxu1  ;;  %v1296_v19 = vpop.permute.xlu0 %1295 }
 0x20b   :  { %v849_v24 = vadd.f32 %v13437_v23, %v15957_v21  ;;  %v762_v25 = vpop.f32.mrb[3].mxu1  ;;  %v856_v27 = vmax.f32 %v848_v18, 0.0 }
 0x20c   :  { %v847_v26 = vadd.f32 %v15944_v14, %v762_v25  ;;  %v854_v30 = vmax.f32 %v846_v20, 0.0  ;;  %v1301_v25 = vpop.permute.xlu1 %1300 }
 0x20d   :  { %v857_v29 = vmax.f32 %v849_v24, 0.0 }
 0x20e   :  { %v855_v31 = vmax.f32 %v847_v26, 0.0 }
 0x20f   :  { %v863_v32 = vpack.c.bf16 %v857_v29, %v856_v27 }
 0x210   :  { %v862_v33 = vpack.c.bf16 %v855_v31, %v854_v30  ;;  %v13440_v36 = vpop.f32.mrb[4].mxu1 }
 0x211   :  { %v852_v37 = vadd.f32 %v13440_v36, %v15980_v35  ;;  %v775_v39 = vpop.f32.mrb[5].mxu1  ;;  %v15116_v35 = vld [vmem:[%s18161_s6 + $0x18] sm:$0xff]  }
 0x212   :  { %v850_v8 = vadd.f32 %v15959_v22, %v775_v39  ;;  %v13441_v40 = vpop.f32.mrb[6].mxu1  ;;  %13442 = vmatprep.subr.bf16.mxu1 %v862_v33  ;;  %v15114_v22 = vld [vmem:[%s18161_s6 + $0x8] sm:$0xff]  }
 0x213   :  { %v853_v4 = vadd.f32 %v13441_v40, %v15988_v38  ;;  %v778_v21 = vpop.f32.mrb[7].mxu1  ;;  %13443 = vmatpush3.bf16.msra.mxu1 %v862_v33  ;;  %v860_v42 = vmax.f32 %v852_v37, 0.0  ;;  %v15117_v38 = vld [vmem:[%s18161_s6 + $0x20] sm:$0xff]   ;;  %v15126_v40 = vld [vmem:[%s18162_s2 + $0x28] sm:$0xff]  }
 0x214   :  { %v851_v14 = vadd.f32 %v15967_v28, %v778_v21  ;;  %13444 = vmatprep.subr.bf16.mxu1 %v863_v32  ;;  %v858_v44 = vmax.f32 %v850_v8, 0.0  ;;  %v15115_v28 = vld [vmem:[%s18161_s6 + $0x10] sm:$0xff]   ;;  %v15130_v21 = vld [vmem:[%s18162_s2 + $0x48] sm:$0xff]  }
 0x215   :  { %v861_v43 = vmax.f32 %v853_v4, 0.0  ;;  %v15129_v4 = vld [vmem:[%s18162_s2 + $0x40] sm:$0xff]  }
 0x216   :  { %v859_v46 = vmax.f32 %v851_v14, 0.0  ;;  %v15131_v14 = vld [vmem:[%s18162_s2 + $0x50] sm:$0xff]  }
 0x217   :  { %v865_v47 = vpack.c.bf16 %v861_v43, %v860_v42  ;;  %13445 = vmatpush3.bf16.msra.mxu1 %v863_v32  ;;  %v15132_v42 = vld [vmem:[%s18162_s2 + $0x58] sm:$0xff]   ;;  %v15133_v43 = vld [vmem:[%s18162_s2 + $0x60] sm:$0xff]  }
 0x218   :  { %v864_v49 = vpack.c.bf16 %v859_v46, %v858_v44  ;;  %v15134_v44 = vld [vmem:[%s18162_s2 + $0x68] sm:$0xff]   ;;  %v15135_v46 = vld [vmem:[%s18162_s2 + $0x70] sm:$0xff]  }
 0x21a   :  { %13446 = vmatprep.subr.bf16.mxu1 %v864_v49 }
 0x21b   :  { %13447 = vmatpush3.bf16.msra.mxu1 %v864_v49  ;;  %v15137_v49 = vld [vmem:[%s18162_s2 + $0x80] sm:$0xff]  }
 0x21c   :  { %13448 = vmatprep.subr.bf16.mxu1 %v865_v47 }
 0x21f   :  { %13449 = vmatpush3.bf16.msra.mxu1 %v865_v47  ;;  %v15136_v47 = vld [vmem:[%s18162_s2 + $0x78] sm:$0xff]  }
 0x222   :  { %13451 = vmatmul.mubr.msk.bf16.vlgmr.msra.gmra.mrb[8].mxu1 %vm180_vm0, %v15114_v22  ;;  %v15138_v22 = vld [vmem:[%s18162_s2 + $0x88] sm:$0xff]  }
 0x223   :  { %13454 = vmatprep.mubr.msk.bf16.mxu1 %vm180_vm0, %v15115_v28  ;;  %v15139_v28 = vld [vmem:[%s18162_s2 + $0x90] sm:$0xff]  }
 0x22a   :  { %13455 = vmatmul.mubr.msk.bf16.gmra.mrb[12].mxu1 %vm180_vm0, %v15116_v35  ;;  %v15140_v35 = vld [vmem:[%s18162_s2 + $0x98] sm:$0xff]  }
 0x22b   :  { %13458 = vmatprep.mubr.msk.bf16.mxu1 %vm180_vm0, %v15117_v38  ;;  %v15141_v38 = vld [vmem:[%s18162_s2 + $0xa0] sm:$0xff]  }
 0x232   :  { %13459 = vmatmul.mubr.msk.bf16.gmra.mrb[16].mxu1 %vm180_vm0, %v15118_v50  ;;  %v15142_v50 = vld [vmem:[%s18162_s2 + $0xa8] sm:$0xff]  }
 0x233   :  { %13462 = vmatprep.mubr.msk.bf16.mxu1 %vm180_vm0, %v15119_v51  ;;  %v15143_v51 = vld [vmem:[%s18162_s2 + $0xb0] sm:$0xff]  }
 0x23a   :  { %13463 = vmatmul.mubr.msk.bf16.gmra.mrb[20].mxu1 %vm180_vm0, %v15120_v52  ;;  %v15144_v52 = vld [vmem:[%s18162_s2 + $0xb8] sm:$0xff]  }
 0x2f5   :  { %v13452_v53 = vpop.f32.mrb[8].mxu1 }
 0x2f6   :  { %v980_v54 = vpop.f32.mrb[9].mxu1 }
 0x2f7   :  { %v13453_v56 = vpop.f32.mrb[10].mxu1 }
 0x2f8   :  { %v1044_v57 = vpack.c.bf16 %v13453_v56, %v13452_v53  ;;  %v983_v59 = vpop.f32.mrb[11].mxu1  ;;  %v15145_v53 = vld [vmem:[%s18162_s2 + $0xc0] sm:$0xff]   ;;  %v15147_v56 = vld [vmem:[%s18162_s2 + $0xd0] sm:$0xff]  }
 0x2f9   :  { %v1043_v60 = vpack.c.bf16 %v983_v59, %v980_v54  ;;  %v15146_v54 = vld [vmem:[%s18162_s2 + $0xc8] sm:$0xff]   ;;  %v15149_v59 = vld [vmem:[%s18162_s2 + $0xe0] sm:$0xff]  }
 0x2fd   :  { %v13456_v61 = vpop.f32.mrb[12].mxu1 }
 0x2fe   :  { %v996_v62 = vpop.f32.mrb[13].mxu1 }
 0x2ff   :  { %v13457_v63 = vpop.f32.mrb[14].mxu1 }
 0x300   :  { %v1046_v0 = vpack.c.bf16 %v13457_v63, %v13456_v61  ;;  %v999_v1 = vpop.f32.mrb[15].mxu1  ;;  %v15153_v61 = vld [vmem:[%s18163_s8 + $0x40] sm:$0xff]   ;;  %v15152_v63 = vld [vmem:[%s18162_s2 + $0xf8] sm:$0xff]  }
 0x301   :  { %v1045_v2 = vpack.c.bf16 %v999_v1, %v996_v62  ;;  %v15151_v62 = vld [vmem:[%s18162_s2 + $0xf0] sm:$0xff]  }
 0x303   :  { %13470 = vmatprep.mubr.msk.bf16.mxu0 %vm427_vm1, %v1045_v2 }
 0x304   :  { %13471 = vmatmul.mubr.msk.bf16.vlgmr.msra.gmra.mrb[32].mxu0 %vm427_vm1, %v1046_v0 }
 0x305   :  { %13478 = vmatprep.mubr.msk.bf16.mxu0 %vm427_vm1, %v1043_v60  ;;  %13475 = vmatpush3.bf16.msra.mxu0 %v15758_v12  ;;  %v13460_v3 = vpop.f32.mrb[16].mxu1  ;;  %v15150_v60 = vld [vmem:[%s18162_s2 + $0xe8] sm:$0xff]  }
 0x306   :  { %13476 = vmatprep.subr.bf16.mxu0 %v15978_v34  ;;  %v1012_v5 = vpop.f32.mrb[17].mxu1 }
 0x307   :  { %v13461_v7 = vpop.f32.mrb[18].mxu1 }
 0x308   :  { %v1048_v9 = vpack.c.bf16 %v13461_v7, %v13460_v3  ;;  %v1015_v10 = vpop.f32.mrb[19].mxu1 }
 0x309   :  { %13477 = vmatpush3.bf16.msra.mxu0 %v15978_v34  ;;  %v1047_v11 = vpack.c.bf16 %v1015_v10, %v1012_v5  ;;  %v15121_v34 = vld [vmem:[%s18162_s2] sm:$0xff]  }
 0x30a   :  { %13482 = vmatprep.subr.bf16.mxu0 %v15997_v41  ;;  %13498 = vmatprep.subr.bf16.mxu1 %v15121_v34 }
 0x30b   :  { %13499 = vmatpush3.bf16.msra.mxu1 %v15121_v34  ;;  %v15154_v34 = vld [vmem:[%s18163_s8 + $0x48] sm:$0xff]  }
 0x30d   :  { %v13464_v13 = vpop.f32.mrb[20].mxu1 }
 0x30e   :  { %v1028_v15 = vpop.f32.mrb[21].mxu1 }
 0x30f   :  { %v13465_v16 = vpop.f32.mrb[22].mxu1 }
 0x310   :  { %13479 = vmatmul.mubr.msk.bf16.vlgmr.msra.gmra.mrb[32].mxu0 %vm427_vm1, %v1044_v57  ;;  %v1050_v17 = vpack.c.bf16 %v13465_v16, %v13464_v13  ;;  %v1031_v18 = vpop.f32.mrb[23].mxu1  ;;  %v15148_v57 = vld [vmem:[%s18162_s2 + $0xd8] sm:$0xff]  }
 0x311   :  { %13483 = vmatpush3.bf16.msra.mxu0 %v15997_v41  ;;  %13486 = vmatprep.mubr.msk.bf16.mxu0 %vm427_vm1, %v1047_v11  ;;  %v1049_v12 = vpack.c.bf16 %v1031_v18, %v1028_v15  ;;  %v15122_v41 = vld [vmem:[%s18162_s2 + $0x10] sm:$0xff]  }
 0x312   :  { %13484 = vmatprep.subr.bf16.mxu0 %v16017_v55 }
 0x315   :  { %13485 = vmatpush3.bf16.msra.mxu0 %v16017_v55  ;;  %v15123_v55 = vld [vmem:[%s18162_s2 + $0x8] sm:$0xff]  }
 0x316   :  { %13490 = vmatprep.subr.bf16.mxu0 %v16029_v58  ;;  %13500 = vmatprep.subr.bf16.mxu1 %v15123_v55 }
 0x317   :  { %13501 = vmatpush3.bf16.msra.mxu1 %v15123_v55 }
 0x31c   :  { %13487 = vmatmul.mubr.msk.bf16.vlgmr.msra.gmra.mrb[32].mxu0 %vm427_vm1, %v1048_v9 }
 0x31d   :  { %13491 = vmatpush3.bf16.msra.mxu0 %v16029_v58  ;;  %13494 = vmatprep.mubr.msk.bf16.mxu0 %vm427_vm1, %v1049_v12  ;;  %v15124_v58 = vld [vmem:[%s18162_s2 + $0x18] sm:$0xff]  }
 0x31e   :  { %13492 = vmatprep.subr.bf16.mxu0 %v16041_v6 }
 0x321   :  { %13493 = vmatpush3.bf16.msra.mxu0 %v16041_v6  ;;  %v15125_v6 = vld [vmem:[%s18162_s2 + $0x20] sm:$0xff]  }
 0x322   :  { %13506 = vmatprep.subr.bf16.mxu0 %v15122_v41 }
 0x328   :  { %13495 = vmatmul.mubr.msk.bf16.vlgmr.msra.gmra.mrb[32].mxu0 %vm427_vm1, %v1050_v17 }
 0x329   :  { %13507 = vmatpush3.bf16.msra.mxu0 %v15122_v41 }
 0x32a   :  { %13508 = vmatprep.subr.bf16.mxu0 %v15124_v58 }
 0x32d   :  { %13509 = vmatpush3.bf16.msra.mxu0 %v15124_v58  ;;  %v15155_v58 = vld [vmem:[%s18163_s8 + $0x50] sm:$0xff]  }
 0x32e   :  { %13554 = vmatprep.subr.bf16.mxu0 %v15125_v6 }
 0x3fb   :  { %v13496_v20 = vpop.f32.mrb[32].mxu0 }
 0x3fc   :  { %v1305_v23 = vadd.f32 %v13496_v20, %v1296_v19  ;;  %v1260_v24 = vpop.f32.mrb[33].mxu0 }
 0x3fd   :  { %v1303_v26 = vadd.f32 %v15999_v45, %v1260_v24  ;;  %v13497_v27 = vpop.f32.mrb[34].mxu0  ;;  %v15127_v45 = vld [vmem:[%s18162_s2 + $0x30] sm:$0xff]   ;;  %v15156_v24 = vld [vmem:[%s18163_s8 + $0x58] sm:$0xff]  }
 0x3fe   :  { %v1306_v29 = vadd.f32 %v13497_v27, %v1301_v25  ;;  %v1263_v30 = vpop.f32.mrb[35].mxu0  ;;  %v1309_v32 = vmax.f32 %v1305_v23, 0.0  ;;  %v15157_v27 = vld [vmem:[%s18163_s8 + $0x60] sm:$0xff]  }
 0x3ff   :  { %v1304_v31 = vadd.f32 %v16007_v48, %v1263_v30  ;;  %v1307_v36 = vmax.f32 %v1303_v26, 0.0  ;;  %v15128_v48 = vld [vmem:[%s18162_s2 + $0x38] sm:$0xff]  }
 0x400   :  { %v1310_v33 = vmax.f32 %v1306_v29, 0.0 }
 0x401   :  { %v1308_v37 = vmax.f32 %v1304_v31, 0.0 }
 0x402   :  { %v16129_v39 = vpack.c.bf16 %v1310_v33, %v1309_v32  ;;  %v15158_v33 = vld [vmem:[%s18163_s8 + $0x68] sm:$0xff]  }
 0x403   :  { %v16131_v8 = vpack.c.bf16 %v1308_v37, %v1307_v36 }
 0x405   :  { %13502 = vmatprep.mubr.msk.bf16.mxu1 %vm427_vm1, %v16131_v8  ;;  %13510 = vmatprep.mubr.msk.bf16.mxu0 %vm427_vm1, %v16131_v8 }
 0x406   :  { %13503 = vmatmul.mubr.msk.bf16.vlgmr.msra.gmra.mrb[24].mxu1 %vm427_vm1, %v16129_v39  ;;  %13511 = vmatmul.mubr.msk.bf16.vlgmr.msra.gmra.mrb[36].mxu0 %vm427_vm1, %v16129_v39 }
 0x407   :  { %13555 = vmatpush3.bf16.msra.mxu0 %v15125_v6  ;;  %13558 = vmatprep.mubr.msk.bf16.mxu0 %vm427_vm1, %v16131_v8 }
 0x408   :  { %13556 = vmatprep.subr.bf16.mxu0 %v15126_v40  ;;  %13518 = vmatprep.mubr.msk.bf16.mxu1 %vm427_vm1, %v15153_v61 }
 0x40b   :  { %13557 = vmatpush3.bf16.msra.mxu0 %v15126_v40 }
 0x40c   :  { %13582 = vmatprep.subr.bf16.mxu0 %v15127_v45 }
 0x40e   :  { %13559 = vmatmul.mubr.msk.bf16.vlgmr.msra.gmra.mrb[40].mxu0 %vm427_vm1, %v16129_v39 }
 0x40f   :  { %13583 = vmatpush3.bf16.msra.mxu0 %v15127_v45  ;;  %13586 = vmatprep.mubr.msk.bf16.mxu0 %vm427_vm1, %v16131_v8 }
 0x410   :  { %13584 = vmatprep.subr.bf16.mxu0 %v15128_v48 }
 0x413   :  { %13585 = vmatpush3.bf16.msra.mxu0 %v15128_v48 }
 0x414   :  { %13610 = vmatprep.subr.bf16.mxu0 %v15129_v4 }
 0x416   :  { %13587 = vmatmul.mubr.msk.bf16.vlgmr.msra.gmra.mrb[44].mxu0 %vm427_vm1, %v16129_v39 }
 0x417   :  { %13611 = vmatpush3.bf16.msra.mxu0 %v15129_v4  ;;  %13614 = vmatprep.mubr.msk.bf16.mxu0 %vm427_vm1, %v16131_v8  ;;  %v15160_v4 = vld [vmem:[%s18163_s8 + $0x78] sm:$0xff]  }
 0x418   :  { %13612 = vmatprep.subr.bf16.mxu0 %v15130_v21 }
 0x41b   :  { %13613 = vmatpush3.bf16.msra.mxu0 %v15130_v21 }
 0x41c   :  { %13638 = vmatprep.subr.bf16.mxu0 %v15131_v14 }
 0x41e   :  { %13615 = vmatmul.mubr.msk.bf16.vlgmr.msra.gmra.mrb[48].mxu0 %vm427_vm1, %v16129_v39 }
 0x41f   :  { %13639 = vmatpush3.bf16.msra.mxu0 %v15131_v14  ;;  %13642 = vmatprep.mubr.msk.bf16.mxu0 %vm427_vm1, %v16131_v8 }
 0x420   :  { %13640 = vmatprep.subr.bf16.mxu0 %v15132_v42 }
 0x423   :  { %13641 = vmatpush3.bf16.msra.mxu0 %v15132_v42  ;;  %v15161_v42 = vld [vmem:[%s18163_s8] sm:$0xff]  }
 0x424   :  { %13666 = vmatprep.subr.bf16.mxu0 %v15133_v43 }
 0x426   :  { %13643 = vmatmul.mubr.msk.bf16.vlgmr.msra.gmra.mrb[52].mxu0 %vm427_vm1, %v16129_v39 }
 0x427   :  { %13667 = vmatpush3.bf16.msra.mxu0 %v15133_v43  ;;  %13670 = vmatprep.mubr.msk.bf16.mxu0 %vm427_vm1, %v16131_v8 }
 0x428   :  { %13668 = vmatprep.subr.bf16.mxu0 %v15134_v44 }
 0x42b   :  { %13669 = vmatpush3.bf16.msra.mxu0 %v15134_v44 }
 0x42c   :  { %13694 = vmatprep.subr.bf16.mxu0 %v15135_v46 }
 0x42e   :  { %13671 = vmatmul.mubr.msk.bf16.vlgmr.msra.gmra.mrb[56].mxu0 %vm427_vm1, %v16129_v39 }
 0x42f   :  { %13695 = vmatpush3.bf16.msra.mxu0 %v15135_v46  ;;  %13698 = vmatprep.mubr.msk.bf16.mxu0 %vm427_vm1, %v16131_v8 }
 0x430   :  { %13696 = vmatprep.subr.bf16.mxu0 %v15136_v47 }
 0x433   :  { %13697 = vmatpush3.bf16.msra.mxu0 %v15136_v47 }
 0x434   :  { %13722 = vmatprep.subr.bf16.mxu0 %v15137_v49 }
 0x436   :  { %13699 = vmatmul.mubr.msk.bf16.vlgmr.msra.gmra.mrb[60].mxu0 %vm427_vm1, %v16129_v39 }
 0x437   :  { %13723 = vmatpush3.bf16.msra.mxu0 %v15137_v49  ;;  %13726 = vmatprep.mubr.msk.bf16.mxu0 %vm427_vm1, %v16131_v8  ;;  %v15162_v49 = vld [vmem:[%s18163_s8 + $0x8] sm:$0xff]  }
 0x438   :  { %13724 = vmatprep.subr.bf16.mxu0 %v15138_v22 }
 0x43b   :  { %13725 = vmatpush3.bf16.msra.mxu0 %v15138_v22 }
 0x43c   :  { %13750 = vmatprep.subr.bf16.mxu0 %v15139_v28 }
 0x43e   :  { %13727 = vmatmul.mubr.msk.bf16.vlgmr.msra.gmra.mrb[64].mxu0 %vm427_vm1, %v16129_v39 }
 0x43f   :  { %13751 = vmatpush3.bf16.msra.mxu0 %v15139_v28  ;;  %13754 = vmatprep.mubr.msk.bf16.mxu0 %vm427_vm1, %v16131_v8 }
 0x440   :  { %13752 = vmatprep.subr.bf16.mxu0 %v15140_v35 }
 0x443   :  { %13753 = vmatpush3.bf16.msra.mxu0 %v15140_v35  ;;  %v15163_v35 = vld [vmem:[%s18163_s8 + $0x10] sm:$0xff]  }
 0x444   :  { %13778 = vmatprep.subr.bf16.mxu0 %v15141_v38 }
 0x446   :  { %13755 = vmatmul.mubr.msk.bf16.vlgmr.msra.gmra.mrb[68].mxu0 %vm427_vm1, %v16129_v39 }
 0x447   :  { %13779 = vmatpush3.bf16.msra.mxu0 %v15141_v38  ;;  %13782 = vmatprep.mubr.msk.bf16.mxu0 %vm427_vm1, %v16131_v8 }
 0x448   :  { %13780 = vmatprep.subr.bf16.mxu0 %v15142_v50 }
 0x44b   :  { %13781 = vmatpush3.bf16.msra.mxu0 %v15142_v50 }
 0x44c   :  { %13806 = vmatprep.subr.bf16.mxu0 %v15143_v51 }
 0x44e   :  { %13783 = vmatmul.mubr.msk.bf16.vlgmr.msra.gmra.mrb[72].mxu0 %vm427_vm1, %v16129_v39 }
 0x44f   :  { %13807 = vmatpush3.bf16.msra.mxu0 %v15143_v51  ;;  %13810 = vmatprep.mubr.msk.bf16.mxu0 %vm427_vm1, %v16131_v8 }
 0x450   :  { %13808 = vmatprep.subr.bf16.mxu0 %v15144_v52 }
 0x453   :  { %13809 = vmatpush3.bf16.msra.mxu0 %v15144_v52 }
 0x454   :  { %13834 = vmatprep.subr.bf16.mxu0 %v15145_v53 }
 0x456   :  { %13811 = vmatmul.mubr.msk.bf16.vlgmr.msra.gmra.mrb[76].mxu0 %vm427_vm1, %v16129_v39 }
 0x457   :  { %13835 = vmatpush3.bf16.msra.mxu0 %v15145_v53  ;;  %13838 = vmatprep.mubr.msk.bf16.mxu0 %vm427_vm1, %v16131_v8  ;;  %v15164_v53 = vld [vmem:[%s18163_s8 + $0x18] sm:$0xff]  }
 0x458   :  { %13836 = vmatprep.subr.bf16.mxu0 %v15146_v54 }
 0x45b   :  { %13837 = vmatpush3.bf16.msra.mxu0 %v15146_v54 }
 0x45c   :  { %13862 = vmatprep.subr.bf16.mxu0 %v15147_v56 }
 0x45e   :  { %13839 = vmatmul.mubr.msk.bf16.vlgmr.msra.gmra.mrb[80].mxu0 %vm427_vm1, %v16129_v39 }
 0x45f   :  { %13863 = vmatpush3.bf16.msra.mxu0 %v15147_v56  ;;  %13866 = vmatprep.mubr.msk.bf16.mxu0 %vm427_vm1, %v16131_v8 }
 0x460   :  { %13864 = vmatprep.subr.bf16.mxu0 %v15148_v57 }
 0x463   :  { %13865 = vmatpush3.bf16.msra.mxu0 %v15148_v57  ;;  %v15165_v57 = vld [vmem:[%s18163_s8 + $0x20] sm:$0xff]  }
 0x464   :  { %13890 = vmatprep.subr.bf16.mxu0 %v15149_v59 }
 0x466   :  { %13867 = vmatmul.mubr.msk.bf16.vlgmr.msra.gmra.mrb[84].mxu0 %vm427_vm1, %v16129_v39 }
 0x467   :  { %13891 = vmatpush3.bf16.msra.mxu0 %v15149_v59  ;;  %13894 = vmatprep.mubr.msk.bf16.mxu0 %vm427_vm1, %v16131_v8 }
 0x468   :  { %13892 = vmatprep.subr.bf16.mxu0 %v15150_v60 }
 0x46b   :  { %13893 = vmatpush3.bf16.msra.mxu0 %v15150_v60 }
 0x46c   :  { %13918 = vmatprep.subr.bf16.mxu0 %v15151_v62 }
 0x46e   :  { %13895 = vmatmul.mubr.msk.bf16.vlgmr.msra.gmra.mrb[88].mxu0 %vm427_vm1, %v16129_v39 }
 0x46f   :  { %13919 = vmatpush3.bf16.msra.mxu0 %v15151_v62  ;;  %13922 = vmatprep.mubr.msk.bf16.mxu0 %vm427_vm1, %v16131_v8 }
 0x470   :  { %13920 = vmatprep.subr.bf16.mxu0 %v15152_v63 }
 0x473   :  { %13921 = vmatpush3.bf16.msra.mxu0 %v15152_v63  ;;  %v15166_v63 = vld [vmem:[%s18163_s8 + $0x28] sm:$0xff]  }
 0x476   :  { %13923 = vmatmul.mubr.msk.bf16.vlgmr.msra.gmra.mrb[92].mxu0 %vm427_vm1, %v16129_v39  ;;  %v15159_v39 = vld [vmem:[%s18163_s8 + $0x70] sm:$0xff]  }
 0x4d9   :  { %v13504_v0 = vpop.f32.mrb[24].mxu1  ;;  %v13512_v1 = vpop.f32.mrb[36].mxu0 }
 0x4da   :  { %v1369_v2 = vpop.f32.mrb[25].mxu1  ;;  %v1453_v3 = vpop.f32.mrb[37].mxu0 }
 0x4db   :  { %v13505_v5 = vpop.f32.mrb[26].mxu1  ;;  %v13513_v7 = vpop.f32.mrb[38].mxu0 }
 0x4dc   :  { %v1385_v9 = vpack.c.bf16 %v13505_v5, %v13504_v0  ;;  %v1469_v10 = vpack.c.bf16 %v13513_v7, %v13512_v1  ;;  %v1372_v11 = vpop.f32.mrb[27].mxu1  ;;  %v1456_v13 = vpop.f32.mrb[39].mxu0 }
 0x4dd   :  { %v1384_v15 = vpack.c.bf16 %v1372_v11, %v1369_v2  ;;  %v1468_v16 = vpack.c.bf16 %v1456_v13, %v1453_v3  ;;  %v15167_v2 = vld [vmem:[%s18163_s8 + $0x30] sm:$0xff]  }
 0x4df   :  { %13514 = vmatprep.subr.bf16.mxu1 %v1468_v16 }
 0x4e0   :  { %13515 = vmatpush3.bf16.msra.mxu1 %v1468_v16 }
 0x4e1   :  { %13516 = vmatprep.subr.bf16.mxu1 %v1469_v10  ;;  %v13560_v17 = vpop.f32.mrb[40].mxu0 }
 0x4e2   :  { %v1860_v18 = vpop.f32.mrb[41].mxu0 }
 0x4e3   :  { %v13561_v12 = vpop.f32.mrb[42].mxu0 }
 0x4e4   :  { %v1876_v41 = vpack.c.bf16 %v13561_v12, %v13560_v17  ;;  %13517 = vmatpush3.bf16.msra.mxu1 %v1469_v10  ;;  %v1863_v55 = vpop.f32.mrb[43].mxu0  ;;  %v15168_v10 = vld [vmem:[%s18163_s8 + $0x38] sm:$0xff]  }
 0x4e5   :  { %v1875_v6 = vpack.c.bf16 %v1863_v55, %v1860_v18  ;;  %13534 = vmatprep.subr.bf16.mxu1 %v1384_v15 }
 0x4e7   :  { %13519 = vmatmul.mubr.msk.bf16.vlgmr.msra.gmra.mrb[28].mxu1 %vm427_vm1, %v15154_v34  ;;  %v15170_v34 = vld [vmem:[%s18163_s8 + $0x88] sm:$0xff]  }
 0x4e8   :  { %13535 = vmatpush3.bf16.msra.mxu1 %v1384_v15  ;;  %13522 = vmatprep.mubr.msk.bf16.mxu1 %vm427_vm1, %v15155_v58  ;;  %v15169_v15 = vld [vmem:[%s18163_s8 + $0x80] sm:$0xff]   ;;  %v15171_v58 = vld [vmem:[%s18163_s8 + $0x90] sm:$0xff]  }
 0x4e9   :  { %13536 = vmatprep.subr.bf16.mxu1 %v1385_v9  ;;  %v13588_v19 = vpop.f32.mrb[44].mxu0 }
 0x4ea   :  { %v2122_v20 = vpop.f32.mrb[45].mxu0 }
 0x4eb   :  { %v13589_v23 = vpop.f32.mrb[46].mxu0 }
 0x4ec   :  { %v16293_v25 = vpack.c.bf16 %v13589_v23, %v13588_v19  ;;  %13537 = vmatpush3.bf16.msra.mxu1 %v1385_v9  ;;  %v2125_v26 = vpop.f32.mrb[47].mxu0 }
 0x4ed   :  { %v16298_v29 = vpack.c.bf16 %v2125_v26, %v2122_v20  ;;  %13562 = vmatprep.subr.bf16.mxu1 %v1875_v6 }
 0x4ef   :  { %13523 = vmatmul.mubr.msk.bf16.gmra.mrb[32].mxu1 %vm427_vm1, %v15156_v24  ;;  %v15172_v24 = vld [vmem:[%s18163_s8 + $0x98] sm:$0xff]  }
 0x4f0   :  { %13526 = vmatprep.mubr.msk.bf16.mxu1 %vm427_vm1, %v15157_v27 }
 0x4f1   :  { %v13616_v30 = vpop.f32.mrb[48].mxu0 }
 0x4f2   :  { %v2384_v31 = vpop.f32.mrb[49].mxu0 }
 0x4f3   :  { %v13617_v32 = vpop.f32.mrb[50].mxu0 }
 0x4f4   :  { %v16305_v36 = vpack.c.bf16 %v13617_v32, %v13616_v30  ;;  %v2387_v37 = vpop.f32.mrb[51].mxu0 }
 0x4f5   :  { %v16310_v8 = vpack.c.bf16 %v2387_v37, %v2384_v31 }
 0x4f7   :  { %13527 = vmatmul.mubr.msk.bf16.gmra.mrb[36].mxu1 %vm427_vm1, %v15158_v33 }
 0x4f8   :  { %13530 = vmatprep.mubr.msk.bf16.mxu1 %vm427_vm1, %v15159_v39 }
 0x4f9   :  { %v13644_v40 = vpop.f32.mrb[52].mxu0 }
 0x4fa   :  { %v2646_v45 = vpop.f32.mrb[53].mxu0 }
 0x4fb   :  { %v13645_v48 = vpop.f32.mrb[54].mxu0 }
 0x4fc   :  { %v16317_v21 = vpack.c.bf16 %v13645_v48, %v13644_v40  ;;  %v2649_v14 = vpop.f32.mrb[55].mxu0  ;;  %v15175_v40 = vld [vmem:[%s18163_s8 + $0xb0] sm:$0xff]  }
 0x4fd   :  { %v16322_v43 = vpack.c.bf16 %v2649_v14, %v2646_v45 }
 0x4ff   :  { %13531 = vmatmul.mubr.msk.bf16.gmra.mrb[40].mxu1 %vm427_vm1, %v15160_v4 }
 0x500   :  { %13538 = vmatprep.mubr.msk.bf16.mxu1 %vm427_vm1, %v15161_v42  ;;  %v15176_v42 = vld [vmem:[%s18163_s8 + $0xb8] sm:$0xff]  }
 0x501   :  { %v13672_v44 = vpop.f32.mrb[56].mxu0 }
 0x502   :  { %v2908_v46 = vpop.f32.mrb[57].mxu0 }
 0x503   :  { %v13673_v47 = vpop.f32.mrb[58].mxu0 }
 0x504   :  { %v16329_v22 = vpack.c.bf16 %v13673_v47, %v13672_v44  ;;  %v2911_v28 = vpop.f32.mrb[59].mxu0  ;;  %v15177_v47 = vld [vmem:[%s18163_s8 + $0xc0] sm:$0xff]  }
 0x505   :  { %v16334_v38 = vpack.c.bf16 %v2911_v28, %v2908_v46 }
 0x507   :  { %13539 = vmatmul.mubr.msk.bf16.vlgmr.msra.gmra.mrb[28].mxu1 %vm427_vm1, %v15162_v49 }
 0x508   :  { %13563 = vmatpush3.bf16.msra.mxu1 %v1875_v6  ;;  %13542 = vmatprep.mubr.msk.bf16.mxu1 %vm427_vm1, %v15163_v35 }
 0x509   :  { %13564 = vmatprep.subr.bf16.mxu1 %v1876_v41  ;;  %v13700_v50 = vpop.f32.mrb[60].mxu0 }
 0x50a   :  { %v3170_v51 = vpop.f32.mrb[61].mxu0 }
 0x50b   :  { %v13701_v52 = vpop.f32.mrb[62].mxu0 }
 0x50c   :  { %13565 = vmatpush3.bf16.msra.mxu1 %v1876_v41  ;;  %v16341_v54 = vpack.c.bf16 %v13701_v52, %v13700_v50  ;;  %v3173_v56 = vpop.f32.mrb[63].mxu0 }
 0x50d   :  { %13590 = vmatprep.subr.bf16.mxu1 %v16298_v29  ;;  %v16347_v59 = vpack.c.bf16 %v3173_v56, %v3170_v51  ;;  %v15178_v51 = vld [vmem:[%s18163_s8 + $0xc8] sm:$0xff]   ;;  %v15179_v56 = vld [vmem:[%s18163_s8 + $0xd0] sm:$0xff]  }
 0x50f   :  { %13543 = vmatmul.mubr.msk.bf16.gmra.mrb[32].mxu1 %vm427_vm1, %v15164_v53 }
 0x510   :  { %13546 = vmatprep.mubr.msk.bf16.mxu1 %vm427_vm1, %v15165_v57 }
 0x511   :  { %v13728_v60 = vpop.f32.mrb[64].mxu0 }
 0x512   :  { %v3432_v61 = vpop.f32.mrb[65].mxu0 }
 0x513   :  { %v13729_v62 = vpop.f32.mrb[66].mxu0 }
 0x514   :  { %v16354_v0 = vpack.c.bf16 %v13729_v62, %v13728_v60  ;;  %v3435_v1 = vpop.f32.mrb[67].mxu0 }
 0x515   :  { %v16359_v3 = vpack.c.bf16 %v3435_v1, %v3432_v61 }
 0x517   :  { %13547 = vmatmul.mubr.msk.bf16.gmra.mrb[36].mxu1 %vm427_vm1, %v15166_v63  ;;  %v15180_v63 = vld [vmem:[%s18163_s8 + $0xd8] sm:$0xff]  }
 0x518   :  { %13550 = vmatprep.mubr.msk.bf16.mxu1 %vm427_vm1, %v15167_v2 }
 0x519   :  { %v13756_v5 = vpop.f32.mrb[68].mxu0 }
 0x51a   :  { %v3694_v7 = vpop.f32.mrb[69].mxu0 }
 0x51b   :  { %v13757_v9 = vpop.f32.mrb[70].mxu0 }
 0x51c   :  { %v16366_v11 = vpack.c.bf16 %v13757_v9, %v13756_v5  ;;  %v3697_v13 = vpop.f32.mrb[71].mxu0  ;;  %v15184_v9 = vld [vmem:[%s18163_s8 + $0xf8] sm:$0xff]  }
 0x51d   :  { %v16371_v16 = vpack.c.bf16 %v3697_v13, %v3694_v7  ;;  %v15182_v7 = vld [vmem:[%s18163_s8 + $0xe8] sm:$0xff]  }
 0x51e   :  { %v15186_v13 = vld [vmem:[%s18163_s8 + $0x108] sm:$0xff]  }
 0x51f   :  { %13551 = vmatmul.mubr.msk.bf16.gmra.mrb[40].mxu1 %vm427_vm1, %v15168_v10  ;;  %v15185_v10 = vld [vmem:[%s18163_s8 + $0x100] sm:$0xff]  }
 0x520   :  { %13566 = vmatprep.mubr.msk.bf16.mxu1 %vm427_vm1, %v15169_v15  ;;  %v15187_v15 = vld [vmem:[%s18163_s8 + $0x110] sm:$0xff]  }
 0x521   :  { %v13784_v17 = vpop.f32.mrb[72].mxu0 }
 0x522   :  { %v3956_v18 = vpop.f32.mrb[73].mxu0 }
 0x523   :  { %v13785_v12 = vpop.f32.mrb[74].mxu0 }
 0x524   :  { %v16378_v41 = vpack.c.bf16 %v13785_v12, %v13784_v17  ;;  %v3959_v55 = vpop.f32.mrb[75].mxu0  ;;  %v15188_v17 = vld [vmem:[%s18163_s8 + $0x118] sm:$0xff]   ;;  %v15191_v12 = vld [vmem:[%s18163_s8 + $0x130] sm:$0xff]  }
 0x525   :  { %v16383_v6 = vpack.c.bf16 %v3959_v55, %v3956_v18  ;;  %v15189_v18 = vld [vmem:[%s18163_s8 + $0x120] sm:$0xff]   ;;  %v15194_v55 = vld [vmem:[%s18163_s8 + $0x148] sm:$0xff]  }
 0x527   :  { %13567 = vmatmul.mubr.msk.bf16.vlgmr.msra.gmra.mrb[28].mxu1 %vm427_vm1, %v15170_v34  ;;  %v15193_v34 = vld [vmem:[%s18163_s8 + $0x140] sm:$0xff]  }
 0x528   :  { %13591 = vmatpush3.bf16.msra.mxu1 %v16298_v29  ;;  %13570 = vmatprep.mubr.msk.bf16.mxu1 %vm427_vm1, %v15171_v58  ;;  %v15173_v29 = vld [vmem:[%s18163_s8 + $0xa0] sm:$0xff]   ;;  %v15195_v58 = vld [vmem:[%s18163_s8 + $0x150] sm:$0xff]  }
 0x529   :  { %13592 = vmatprep.subr.bf16.mxu1 %v16293_v25  ;;  %v13812_v19 = vpop.f32.mrb[76].mxu0 }
 0x52a   :  { %v4218_v20 = vpop.f32.mrb[77].mxu0 }
 0x52b   :  { %v13813_v23 = vpop.f32.mrb[78].mxu0 }
 0x52c   :  { %13593 = vmatpush3.bf16.msra.mxu1 %v16293_v25  ;;  %v16393_v26 = vpack.c.bf16 %v13813_v23, %v13812_v19  ;;  %v4221_v27 = vpop.f32.mrb[79].mxu0  ;;  %v15174_v25 = vld [vmem:[%s18163_s8 + $0xa8] sm:$0xff]   ;;  %v15196_v19 = vld [vmem:[%s18163_s8 + $0x158] sm:$0xff]   ;;  %v15199_v23 = vld [vmem:[%s18163_s8 + $0x170] sm:$0xff]  }
 0x52d   :  { %13618 = vmatprep.subr.bf16.mxu1 %v16310_v8  ;;  %v16399_v30 = vpack.c.bf16 %v4221_v27, %v4218_v20  ;;  %v15197_v20 = vld [vmem:[%s18163_s8 + $0x160] sm:$0xff]   ;;  %v15202_v27 = vld [vmem:[%s18163_s8 + $0x188] sm:$0xff]  }
 0x52f   :  { %13571 = vmatmul.mubr.msk.bf16.gmra.mrb[32].mxu1 %vm427_vm1, %v15172_v24  ;;  %v15201_v24 = vld [vmem:[%s18163_s8 + $0x180] sm:$0xff]  }
 0x530   :  { %13574 = vmatprep.mubr.msk.bf16.mxu1 %vm427_vm1, %v15173_v29  ;;  %v15203_v29 = vld [vmem:[%s18163_s8 + $0x190] sm:$0xff]  }
 0x531   :  { %v13840_v31 = vpop.f32.mrb[80].mxu0 }
 0x532   :  { %v4480_v32 = vpop.f32.mrb[81].mxu0 }
 0x533   :  { %v13841_v33 = vpop.f32.mrb[82].mxu0 }
 0x534   :  { %v16406_v37 = vpack.c.bf16 %v13841_v33, %v13840_v31  ;;  %v4483_v39 = vpop.f32.mrb[83].mxu0  ;;  %v15204_v31 = vld [vmem:[%s18163_s8 + $0x198] sm:$0xff]   ;;  %v15207_v33 = vld [vmem:[%s18163_s8 + $0x1b0] sm:$0xff]  }
 0x535   :  { %v16411_v45 = vpack.c.bf16 %v4483_v39, %v4480_v32  ;;  %v15205_v32 = vld [vmem:[%s18163_s8 + $0x1a0] sm:$0xff]   ;;  %v15210_v39 = vld [vmem:[%s18163_s8 + $0x1c8] sm:$0xff]  }
 0x537   :  { %13575 = vmatmul.mubr.msk.bf16.gmra.mrb[36].mxu1 %vm427_vm1, %v15174_v25  ;;  %v15209_v25 = vld [vmem:[%s18163_s8 + $0x1c0] sm:$0xff]  }
 0x538   :  { %13578 = vmatprep.mubr.msk.bf16.mxu1 %vm427_vm1, %v15175_v40  ;;  %v15211_v40 = vld [vmem:[%s18163_s8 + $0x1d0] sm:$0xff]  }
 0x539   :  { %v13868_v48 = vpop.f32.mrb[84].mxu0 }
 0x53a   :  { %v4742_v4 = vpop.f32.mrb[85].mxu0 }
 0x53b   :  { %v13869_v14 = vpop.f32.mrb[86].mxu0 }
 0x53c   :  { %v16418_v44 = vpack.c.bf16 %v13869_v14, %v13868_v48  ;;  %v4745_v46 = vpop.f32.mrb[87].mxu0  ;;  %v15212_v48 = vld [vmem:[%s18163_s8 + $0x1d8] sm:$0xff]   ;;  %v15215_v14 = vld [vmem:[%s18163_s8 + $0x1f0] sm:$0xff]  }
 0x53d   :  { %v16423_v49 = vpack.c.bf16 %v4745_v46, %v4742_v4  ;;  %v15213_v4 = vld [vmem:[%s18163_s8 + $0x1e0] sm:$0xff]   ;;  %v15218_v46 = vld [vmem:[%s18163_s8 + $0x208] sm:$0xff]  }
 0x53f   :  { %13579 = vmatmul.mubr.msk.bf16.gmra.mrb[40].mxu1 %vm427_vm1, %v15176_v42  ;;  %v15217_v42 = vld [vmem:[%s18163_s8 + $0x200] sm:$0xff]  }
 0x540   :  { %13594 = vmatprep.mubr.msk.bf16.mxu1 %vm427_vm1, %v15177_v47  ;;  %v15219_v47 = vld [vmem:[%s18163_s8 + $0x210] sm:$0xff]  }
 0x541   :  { %v13896_v28 = vpop.f32.mrb[88].mxu0 }
 0x542   :  { %v5004_v35 = vpop.f32.mrb[89].mxu0 }
 0x543   :  { %v13897_v50 = vpop.f32.mrb[90].mxu0 }
 0x544   :  { %v16430_v52 = vpack.c.bf16 %v13897_v50, %v13896_v28  ;;  %v5007_v53 = vpop.f32.mrb[91].mxu0  ;;  %v15220_v28 = vld [vmem:[%s18163_s8 + $0x218] sm:$0xff]   ;;  %v15223_v50 = vld [vmem:[%s18163_s8 + $0x230] sm:$0xff]  }
 0x545   :  { %v16435_v57 = vpack.c.bf16 %v5007_v53, %v5004_v35  ;;  %v15221_v35 = vld [vmem:[%s18163_s8 + $0x220] sm:$0xff]   ;;  %v15226_v53 = vld [vmem:[%s18163_s8 + $0x248] sm:$0xff]  }
 0x547   :  { %13595 = vmatmul.mubr.msk.bf16.vlgmr.msra.gmra.mrb[28].mxu1 %vm427_vm1, %v15178_v51  ;;  %v15225_v51 = vld [vmem:[%s18163_s8 + $0x240] sm:$0xff]  }
 0x548   :  { %13619 = vmatpush3.bf16.msra.mxu1 %v16310_v8  ;;  %13598 = vmatprep.mubr.msk.bf16.mxu1 %vm427_vm1, %v15179_v56  ;;  %v15181_v8 = vld [vmem:[%s18163_s8 + $0xe0] sm:$0xff]   ;;  %v15227_v56 = vld [vmem:[%s18163_s8 + $0x250] sm:$0xff]  }
 0x549   :  { %13620 = vmatprep.subr.bf16.mxu1 %v16305_v36  ;;  %v13924_v60 = vpop.f32.mrb[92].mxu0 }
 0x54a   :  { %v5266_v61 = vpop.f32.mrb[93].mxu0 }
 0x54b   :  { %v13925_v62 = vpop.f32.mrb[94].mxu0 }
 0x54c   :  { %13621 = vmatpush3.bf16.msra.mxu1 %v16305_v36  ;;  %v16445_v1 = vpack.c.bf16 %v13925_v62, %v13924_v60  ;;  %v5269_v2 = vpop.f32.mrb[95].mxu0  ;;  %v15183_v36 = vld [vmem:[%s18163_s8 + $0xf0] sm:$0xff]   ;;  %v15228_v60 = vld [vmem:[%s18163_s8 + $0x258] sm:$0xff]  }
 0x54d   :  { %13646 = vmatprep.subr.bf16.mxu1 %v16322_v43  ;;  %v16451_v5 = vpack.c.bf16 %v5269_v2, %v5266_v61  ;;  %v15229_v61 = vld [vmem:[%s18163_s8 + $0x260] sm:$0xff]   ;;  %v15231_v62 = vld [vmem:[%s18163_s8 + $0x270] sm:$0xff]   ;;  %v15234_v2 = vld [vmem:[%s18163_s8 + $0x288] sm:$0xff]  }
 0x54f   :  { %13599 = vmatmul.mubr.msk.bf16.gmra.mrb[32].mxu1 %vm427_vm1, %v15180_v63  ;;  %v15233_v63 = vld [vmem:[%s18163_s8 + $0x280] sm:$0xff]  }
 0x550   :  { %13602 = vmatprep.mubr.msk.bf16.mxu1 %vm427_vm1, %v15181_v8  ;;  %v15235_v8 = vld [vmem:[%s18163_s8 + $0x290] sm:$0xff]  }
 0x557   :  { %13603 = vmatmul.mubr.msk.bf16.gmra.mrb[36].mxu1 %vm427_vm1, %v15182_v7  ;;  %v15236_v7 = vld [vmem:[%s18163_s8 + $0x298] sm:$0xff]  }
 0x558   :  { %13606 = vmatprep.mubr.msk.bf16.mxu1 %vm427_vm1, %v15183_v36  ;;  %v15237_v36 = vld [vmem:[%s18163_s8 + $0x2a0] sm:$0xff]  }
 0x55f   :  { %13607 = vmatmul.mubr.msk.bf16.gmra.mrb[40].mxu1 %vm427_vm1, %v15184_v9  ;;  %v15239_v9 = vld [vmem:[%s18163_s8 + $0x2b0] sm:$0xff]  }
 0x560   :  { %13622 = vmatprep.mubr.msk.bf16.mxu1 %vm427_vm1, %v15185_v10  ;;  %v15241_v10 = vld [vmem:[%s18163_s8 + $0x2c0] sm:$0xff]  }
 0x567   :  { %13623 = vmatmul.mubr.msk.bf16.vlgmr.msra.gmra.mrb[28].mxu1 %vm427_vm1, %v15186_v13  ;;  %v15242_v13 = vld [vmem:[%s18163_s8 + $0x2c8] sm:$0xff]  }
 0x568   :  { %13647 = vmatpush3.bf16.msra.mxu1 %v16322_v43  ;;  %13626 = vmatprep.mubr.msk.bf16.mxu1 %vm427_vm1, %v15187_v15  ;;  %v15190_v43 = vld [vmem:[%s18163_s8 + $0x128] sm:$0xff]   ;;  %v15243_v15 = vld [vmem:[%s18163_s8 + $0x2d0] sm:$0xff]  }
 0x569   :  { %13648 = vmatprep.subr.bf16.mxu1 %v16317_v21 }
 0x56c   :  { %13649 = vmatpush3.bf16.msra.mxu1 %v16317_v21  ;;  %v15192_v21 = vld [vmem:[%s18163_s8 + $0x138] sm:$0xff]  }
 0x56d   :  { %13674 = vmatprep.subr.bf16.mxu1 %v16334_v38 }
 0x56f   :  { %13627 = vmatmul.mubr.msk.bf16.gmra.mrb[32].mxu1 %vm427_vm1, %v15188_v17  ;;  %v15244_v17 = vld [vmem:[%s18163_s8 + $0x2d8] sm:$0xff]  }
 0x570   :  { %13630 = vmatprep.mubr.msk.bf16.mxu1 %vm427_vm1, %v15189_v18  ;;  %v15245_v18 = vld [vmem:[%s18163_s8 + $0x2e0] sm:$0xff]  }
 0x577   :  { %13631 = vmatmul.mubr.msk.bf16.gmra.mrb[36].mxu1 %vm427_vm1, %v15190_v43  ;;  %v15247_v43 = vld [vmem:[%s18163_s8 + $0x2f0] sm:$0xff]  }
 0x578   :  { %13634 = vmatprep.mubr.msk.bf16.mxu1 %vm427_vm1, %v15191_v12  ;;  %v15249_v12 = vld [vmem:[%s18163_s8 + $0x300] sm:$0xff]  }
 0x57f   :  { %13635 = vmatmul.mubr.msk.bf16.gmra.mrb[40].mxu1 %vm427_vm1, %v15192_v21  ;;  %v15250_v21 = vld [vmem:[%s18163_s8 + $0x308] sm:$0xff]  }
 0x580   :  { %13650 = vmatprep.mubr.msk.bf16.mxu1 %vm427_vm1, %v15193_v34  ;;  %v15251_v34 = vld [vmem:[%s18163_s8 + $0x310] sm:$0xff]  }
 0x587   :  { %13651 = vmatmul.mubr.msk.bf16.vlgmr.msra.gmra.mrb[28].mxu1 %vm427_vm1, %v15194_v55  ;;  %v15252_v55 = vld [vmem:[%s18163_s8 + $0x318] sm:$0xff]  }
 0x588   :  { %13675 = vmatpush3.bf16.msra.mxu1 %v16334_v38  ;;  %13654 = vmatprep.mubr.msk.bf16.mxu1 %vm427_vm1, %v15195_v58  ;;  %v15198_v38 = vld [vmem:[%s18163_s8 + $0x168] sm:$0xff]   ;;  %v15253_v58 = vld [vmem:[%s18163_s8 + $0x320] sm:$0xff]  }
 0x589   :  { %13676 = vmatprep.subr.bf16.mxu1 %v16329_v22 }
 0x58c   :  { %13677 = vmatpush3.bf16.msra.mxu1 %v16329_v22  ;;  %v15200_v22 = vld [vmem:[%s18163_s8 + $0x178] sm:$0xff]  }
 0x58d   :  { %13702 = vmatprep.subr.bf16.mxu1 %v16347_v59 }
 0x58f   :  { %13655 = vmatmul.mubr.msk.bf16.gmra.mrb[32].mxu1 %vm427_vm1, %v15196_v19  ;;  %v15255_v19 = vld [vmem:[%s18163_s8 + $0x330] sm:$0xff]  }
 0x590   :  { %13658 = vmatprep.mubr.msk.bf16.mxu1 %vm427_vm1, %v15197_v20  ;;  %v15257_v20 = vld [vmem:[%s18163_s8 + $0x340] sm:$0xff]  }
 0x597   :  { %13659 = vmatmul.mubr.msk.bf16.gmra.mrb[36].mxu1 %vm427_vm1, %v15198_v38  ;;  %v15258_v38 = vld [vmem:[%s18163_s8 + $0x348] sm:$0xff]  }
 0x598   :  { %13662 = vmatprep.mubr.msk.bf16.mxu1 %vm427_vm1, %v15199_v23  ;;  %v15259_v23 = vld [vmem:[%s18163_s8 + $0x350] sm:$0xff]  }
 0x59f   :  { %13663 = vmatmul.mubr.msk.bf16.gmra.mrb[40].mxu1 %vm427_vm1, %v15200_v22  ;;  %v15260_v22 = vld [vmem:[%s18163_s8 + $0x358] sm:$0xff]  }
 0x5a0   :  { %13678 = vmatprep.mubr.msk.bf16.mxu1 %vm427_vm1, %v15201_v24  ;;  %v15261_v24 = vld [vmem:[%s18163_s8 + $0x360] sm:$0xff]  }
 0x5a7   :  { %13679 = vmatmul.mubr.msk.bf16.vlgmr.msra.gmra.mrb[28].mxu1 %vm427_vm1, %v15202_v27  ;;  %v15263_v27 = vld [vmem:[%s18163_s8 + $0x370] sm:$0xff]  }
 0x5a8   :  { %13703 = vmatpush3.bf16.msra.mxu1 %v16347_v59  ;;  %13682 = vmatprep.mubr.msk.bf16.mxu1 %vm427_vm1, %v15203_v29  ;;  %v15206_v59 = vld [vmem:[%s18163_s8 + $0x1a8] sm:$0xff]   ;;  %v16825_v29 = vpop.permute.xlu1 %5500 }
 0x5a9   :  { %13704 = vmatprep.subr.bf16.mxu1 %v16341_v54 }
 0x5ac   :  { %13705 = vmatpush3.bf16.msra.mxu1 %v16341_v54  ;;  %v15208_v54 = vld [vmem:[%s18163_s8 + $0x1b8] sm:$0xff]  }
 0x5ad   :  { %13730 = vmatprep.subr.bf16.mxu1 %v16359_v3 }
 0x5af   :  { %13683 = vmatmul.mubr.msk.bf16.gmra.mrb[32].mxu1 %vm427_vm1, %v15204_v31  ;;  %v15264_v31 = vld [vmem:[%s18163_s8 + $0x378] sm:$0xff]  }
 0x5b0   :  { %13686 = vmatprep.mubr.msk.bf16.mxu1 %vm427_vm1, %v15205_v32  ;;  %v15265_v32 = vld [vmem:[%s18163_s8 + $0x380] sm:$0xff]  }
 0x5b7   :  { %13687 = vmatmul.mubr.msk.bf16.gmra.mrb[36].mxu1 %vm427_vm1, %v15206_v59 }
 0x5b8   :  { %13690 = vmatprep.mubr.msk.bf16.mxu1 %vm427_vm1, %v15207_v33  ;;  %v16836_v33 = vpop.permute.xlu1 %5510 }
 0x5bf   :  { %13691 = vmatmul.mubr.msk.bf16.gmra.mrb[40].mxu1 %vm427_vm1, %v15208_v54  ;;  %v15266_v54 = vld [vmem:[%s18163_s8 + $0x388] sm:$0xff]  }
 0x5c0   :  { %13706 = vmatprep.mubr.msk.bf16.mxu1 %vm427_vm1, %v15209_v25 }
 0x5c7   :  { %13707 = vmatmul.mubr.msk.bf16.vlgmr.msra.gmra.mrb[28].mxu1 %vm427_vm1, %v15210_v39  ;;  %v15267_v39 = vld [vmem:[%s18163_s8 + $0x390] sm:$0xff]  }
 0x5c8   :  { %13731 = vmatpush3.bf16.msra.mxu1 %v16359_v3  ;;  %13710 = vmatprep.mubr.msk.bf16.mxu1 %vm427_vm1, %v15211_v40  ;;  %v15214_v3 = vld [vmem:[%s18163_s8 + $0x1e8] sm:$0xff]   ;;  %v16847_v40 = vpop.permute.xlu1 %5520 }
 0x5c9   :  { %13732 = vmatprep.subr.bf16.mxu1 %v16354_v0 }
 0x5cc   :  { %13733 = vmatpush3.bf16.msra.mxu1 %v16354_v0  ;;  %v15216_v0 = vld [vmem:[%s18163_s8 + $0x1f8] sm:$0xff]  }
 0x5cd   :  { %13758 = vmatprep.subr.bf16.mxu1 %v16371_v16 }
 0x5cf   :  { %13711 = vmatmul.mubr.msk.bf16.gmra.mrb[32].mxu1 %vm427_vm1, %v15212_v48 }
 0x5d0   :  { %13714 = vmatprep.mubr.msk.bf16.mxu1 %vm427_vm1, %v15213_v4  ;;  %v15268_v4 = vld [vmem:[%s18163_s8 + $0x398] sm:$0xff]  }
 0x5d7   :  { %13715 = vmatmul.mubr.msk.bf16.gmra.mrb[36].mxu1 %vm427_vm1, %v15214_v3  ;;  %v16858_v3 = vpop.permute.xlu1 %5530 }
 0x5d8   :  { %13718 = vmatprep.mubr.msk.bf16.mxu1 %vm427_vm1, %v15215_v14  ;;  %v15269_v14 = vld [vmem:[%s18163_s8 + $0x3a0] sm:$0xff]  }
 0x5df   :  { %13719 = vmatmul.mubr.msk.bf16.gmra.mrb[40].mxu1 %vm427_vm1, %v15216_v0  ;;  %v16868_v0 = vpop.permute.xlu1 %5727 }
 0x5e0   :  { %13734 = vmatprep.mubr.msk.bf16.mxu1 %vm427_vm1, %v15217_v42  ;;  %v15270_v42 = vld [vmem:[%s18163_s8 + $0x3a8] sm:$0xff]  }
 0x5e7   :  { %13735 = vmatmul.mubr.msk.bf16.vlgmr.msra.gmra.mrb[28].mxu1 %vm427_vm1, %v15218_v46 }
 0x5e8   :  { %13759 = vmatpush3.bf16.msra.mxu1 %v16371_v16  ;;  %13738 = vmatprep.mubr.msk.bf16.mxu1 %vm427_vm1, %v15219_v47  ;;  %v15222_v16 = vld [vmem:[%s18163_s8 + $0x228] sm:$0xff]   ;;  %v16879_v47 = vpop.permute.xlu1 %5737 }
 0x5e9   :  { %13760 = vmatprep.subr.bf16.mxu1 %v16366_v11 }
 0x5ec   :  { %13761 = vmatpush3.bf16.msra.mxu1 %v16366_v11  ;;  %v15224_v11 = vld [vmem:[%s18163_s8 + $0x238] sm:$0xff]  }
 0x5ed   :  { %13786 = vmatprep.subr.bf16.mxu1 %v16383_v6 }
 0x5ef   :  { %13739 = vmatmul.mubr.msk.bf16.gmra.mrb[32].mxu1 %vm427_vm1, %v15220_v28  ;;  %v15272_v28 = vld [vmem:[%s18163_s8 + $0x3b8] sm:$0xff]  }
 0x5f0   :  { %13742 = vmatprep.mubr.msk.bf16.mxu1 %vm427_vm1, %v15221_v35 }
 0x5f7   :  { %13743 = vmatmul.mubr.msk.bf16.gmra.mrb[36].mxu1 %vm427_vm1, %v15222_v16  ;;  %v15273_v16 = vld [vmem:[%s18163_s8 + $0x3c0] sm:$0xff]  }
 0x5f8   :  { %13746 = vmatprep.mubr.msk.bf16.mxu1 %vm427_vm1, %v15223_v50  ;;  %v16890_v50 = vpop.permute.xlu1 %5625 }
 0x5ff   :  { %13747 = vmatmul.mubr.msk.bf16.gmra.mrb[40].mxu1 %vm427_vm1, %v15224_v11 }
 0x600   :  { %13762 = vmatprep.mubr.msk.bf16.mxu1 %vm427_vm1, %v15225_v51  ;;  %v15274_v51 = vld [vmem:[%s18163_s8 + $0x3c8] sm:$0xff]  }
 0x607   :  { %13763 = vmatmul.mubr.msk.bf16.vlgmr.msra.gmra.mrb[28].mxu1 %vm427_vm1, %v15226_v53  ;;  %v16899_v53 = vpop.permute.xlu1 %5635 }
 0x608   :  { %13787 = vmatpush3.bf16.msra.mxu1 %v16383_v6  ;;  %13766 = vmatprep.mubr.msk.bf16.mxu1 %vm427_vm1, %v15227_v56  ;;  %v15230_v6 = vld [vmem:[%s18163_s8 + $0x268] sm:$0xff]   ;;  %v15275_v56 = vld [vmem:[%s18163_s8 + $0x3d0] sm:$0xff]  }
 0x609   :  { %13788 = vmatprep.subr.bf16.mxu1 %v16378_v41 }
 0x60c   :  { %13789 = vmatpush3.bf16.msra.mxu1 %v16378_v41  ;;  %v15232_v41 = vld [vmem:[%s18163_s8 + $0x278] sm:$0xff]  }
 0x60d   :  { %13814 = vmatprep.subr.bf16.mxu1 %v16399_v30 }
 0x60f   :  { %13767 = vmatmul.mubr.msk.bf16.gmra.mrb[32].mxu1 %vm427_vm1, %v15228_v60 }
 0x610   :  { %13770 = vmatprep.mubr.msk.bf16.mxu1 %vm427_vm1, %v15229_v61  ;;  %v16908_v61 = vpop.permute.xlu1 %5947 }
 0x617   :  { %13771 = vmatmul.mubr.msk.bf16.gmra.mrb[36].mxu1 %vm427_vm1, %v15230_v6  ;;  %v15276_v6 = vld [vmem:[%s18163_s8 + $0x3d8] sm:$0xff]  }
 0x618   :  { %13774 = vmatprep.mubr.msk.bf16.mxu1 %vm427_vm1, %v15231_v62  ;;  %v15277_v62 = vld [vmem:[%s18163_s8 + $0x3e0] sm:$0xff]  }
 0x61f   :  { %13775 = vmatmul.mubr.msk.bf16.gmra.mrb[40].mxu1 %vm427_vm1, %v15232_v41 }
 0x620   :  { %13790 = vmatprep.mubr.msk.bf16.mxu1 %vm427_vm1, %v15233_v63  ;;  %v16919_v63 = vpop.permute.xlu1 %5957 }
 0x627   :  { %13791 = vmatmul.mubr.msk.bf16.vlgmr.msra.gmra.mrb[28].mxu1 %vm427_vm1, %v15234_v2  ;;  %v15278_v2 = vld [vmem:[%s18163_s8 + $0x3e8] sm:$0xff]  }
 0x628   :  { %13815 = vmatpush3.bf16.msra.mxu1 %v16399_v30  ;;  %13794 = vmatprep.mubr.msk.bf16.mxu1 %vm427_vm1, %v15235_v8  ;;  %v15238_v30 = vld [vmem:[%s18163_s8 + $0x2a8] sm:$0xff]  }
 0x629   :  { %13816 = vmatprep.subr.bf16.mxu1 %v16393_v26 }
 0x62c   :  { %13817 = vmatpush3.bf16.msra.mxu1 %v16393_v26  ;;  %v15240_v26 = vld [vmem:[%s18163_s8 + $0x2b8] sm:$0xff]  }
 0x62d   :  { %13842 = vmatprep.subr.bf16.mxu1 %v16411_v45 }
 0x62f   :  { %13795 = vmatmul.mubr.msk.bf16.gmra.mrb[32].mxu1 %vm427_vm1, %v15236_v7  ;;  %v15279_v7 = vld [vmem:[%s18163_s8 + $0x3f0] sm:$0xff]  }
 0x630   :  { %13798 = vmatprep.mubr.msk.bf16.mxu1 %vm427_vm1, %v15237_v36  ;;  %v16930_v36 = vpop.permute.xlu1 %6112 }
 0x637   :  { %13799 = vmatmul.mubr.msk.bf16.gmra.mrb[36].mxu1 %vm427_vm1, %v15238_v30 }
 0x638   :  { %13802 = vmatprep.mubr.msk.bf16.mxu1 %vm427_vm1, %v15239_v9  ;;  %v15280_v9 = vld [vmem:[%s18163_s8 + $0x3f8] sm:$0xff]  }
 0x63f   :  { %13803 = vmatmul.mubr.msk.bf16.gmra.mrb[40].mxu1 %vm427_vm1, %v15240_v26  ;;  %v16939_v26 = vpop.permute.xlu1 %6122 }
 0x640   :  { %13818 = vmatprep.mubr.msk.bf16.mxu1 %vm427_vm1, %v15241_v10 }
 0x647   :  { %13819 = vmatmul.mubr.msk.bf16.vlgmr.msra.gmra.mrb[28].mxu1 %vm427_vm1, %v15242_v13  ;;  %v16944_v13 = vpop.permute.xlu1 %6277 }
 0x648   :  { %13843 = vmatpush3.bf16.msra.mxu1 %v16411_v45  ;;  %13822 = vmatprep.mubr.msk.bf16.mxu1 %vm427_vm1, %v15243_v15  ;;  %v15246_v45 = vld [vmem:[%s18163_s8 + $0x2e8] sm:$0xff]  }
 0x649   :  { %13844 = vmatprep.subr.bf16.mxu1 %v16406_v37 }
 0x64c   :  { %13845 = vmatpush3.bf16.msra.mxu1 %v16406_v37  ;;  %v15248_v37 = vld [vmem:[%s18163_s8 + $0x2f8] sm:$0xff]  }
 0x64d   :  { %13870 = vmatprep.subr.bf16.mxu1 %v16423_v49 }
 0x64f   :  { %13823 = vmatmul.mubr.msk.bf16.gmra.mrb[32].mxu1 %vm427_vm1, %v15244_v17  ;;  %v16948_v17 = vpop.permute.xlu1 %6287 }
 0x650   :  { %13826 = vmatprep.mubr.msk.bf16.mxu1 %vm427_vm1, %v15245_v18 }
 0x657   :  { %13827 = vmatmul.mubr.msk.bf16.gmra.mrb[36].mxu1 %vm427_vm1, %v15246_v45  ;;  %v16952_v45 = vpop.permute.xlu1 %6442 }
 0x658   :  { %13830 = vmatprep.mubr.msk.bf16.mxu1 %vm427_vm1, %v15247_v43 }
 0x65f   :  { %13831 = vmatmul.mubr.msk.bf16.gmra.mrb[40].mxu1 %vm427_vm1, %v15248_v37  ;;  %v16956_v37 = vpop.permute.xlu1 %6452 }
 0x660   :  { %13846 = vmatprep.mubr.msk.bf16.mxu1 %vm427_vm1, %v15249_v12 }
 0x667   :  { %13847 = vmatmul.mubr.msk.bf16.vlgmr.msra.gmra.mrb[28].mxu1 %vm427_vm1, %v15250_v21  ;;  %v16960_v21 = vpop.permute.xlu1 %6607 }
 0x668   :  { %13871 = vmatpush3.bf16.msra.mxu1 %v16423_v49  ;;  %13850 = vmatprep.mubr.msk.bf16.mxu1 %vm427_vm1, %v15251_v34  ;;  %v15254_v49 = vld [vmem:[%s18163_s8 + $0x328] sm:$0xff]  }
 0x669   :  { %13872 = vmatprep.subr.bf16.mxu1 %v16418_v44 }
 0x66c   :  { %13873 = vmatpush3.bf16.msra.mxu1 %v16418_v44  ;;  %v15256_v44 = vld [vmem:[%s18163_s8 + $0x338] sm:$0xff]  }
 0x66d   :  { %13898 = vmatprep.subr.bf16.mxu1 %v16435_v57 }
 0x66f   :  { %13851 = vmatmul.mubr.msk.bf16.gmra.mrb[32].mxu1 %vm427_vm1, %v15252_v55  ;;  %v16964_v55 = vpop.permute.xlu1 %6617 }
 0x670   :  { %13854 = vmatprep.mubr.msk.bf16.mxu1 %vm427_vm1, %v15253_v58 }
 0x677   :  { %13855 = vmatmul.mubr.msk.bf16.gmra.mrb[36].mxu1 %vm427_vm1, %v15254_v49  ;;  %v16968_v49 = vpop.permute.xlu1 %6772 }
 0x678   :  { %13858 = vmatprep.mubr.msk.bf16.mxu1 %vm427_vm1, %v15255_v19 }
 0x67f   :  { %13859 = vmatmul.mubr.msk.bf16.gmra.mrb[40].mxu1 %vm427_vm1, %v15256_v44  ;;  %v16972_v44 = vpop.permute.xlu1 %6782 }
 0x680   :  { %13874 = vmatprep.mubr.msk.bf16.mxu1 %vm427_vm1, %v15257_v20 }
 0x687   :  { %13875 = vmatmul.mubr.msk.bf16.vlgmr.msra.gmra.mrb[28].mxu1 %vm427_vm1, %v15258_v38  ;;  %v16976_v38 = vpop.permute.xlu1 %6937 }
 0x688   :  { %13899 = vmatpush3.bf16.msra.mxu1 %v16435_v57  ;;  %13878 = vmatprep.mubr.msk.bf16.mxu1 %vm427_vm1, %v15259_v23  ;;  %v15262_v57 = vld [vmem:[%s18163_s8 + $0x368] sm:$0xff]  }
 0x689   :  { %13900 = vmatprep.subr.bf16.mxu1 %v16430_v52 }
 0x68c   :  { %13901 = vmatpush3.bf16.msra.mxu1 %v16430_v52  ;;  %v16822_v52 = vpop.permute.xlu0 %5495 }
 0x68d   :  { %13926 = vmatprep.subr.bf16.mxu1 %v16451_v5 }
 0x68f   :  { %13879 = vmatmul.mubr.msk.bf16.gmra.mrb[32].mxu1 %vm427_vm1, %v15260_v22  ;;  %v16980_v22 = vpop.permute.xlu1 %6947 }
 0x690   :  { %13882 = vmatprep.mubr.msk.bf16.mxu1 %vm427_vm1, %v15261_v24  ;;  %v16833_v59 = vpop.permute.xlu0 %5505 }
 0x694   :  { %v16842_v25 = vpop.permute.xlu0 %5515 }
 0x697   :  { %13883 = vmatmul.mubr.msk.bf16.gmra.mrb[36].mxu1 %vm427_vm1, %v15262_v57  ;;  %v16984_v57 = vpop.permute.xlu1 %7102 }
 0x698   :  { %13886 = vmatprep.mubr.msk.bf16.mxu1 %vm427_vm1, %v15263_v27  ;;  %v16853_v48 = vpop.permute.xlu0 %5525 }
 0x69f   :  { %13887 = vmatmul.mubr.msk.bf16.gmra.mrb[40].mxu1 %vm427_vm1, %v15264_v31  ;;  %v16988_v31 = vpop.permute.xlu1 %7112 }
 0x6a0   :  { %13902 = vmatprep.mubr.msk.bf16.mxu1 %vm427_vm1, %v15265_v32 }
 0x6a7   :  { %13903 = vmatmul.mubr.msk.bf16.vlgmr.msra.gmra.mrb[28].mxu1 %vm427_vm1, %v15266_v54  ;;  %v16992_v54 = vpop.permute.xlu1 %7267 }
 0x6a8   :  { %13927 = vmatpush3.bf16.msra.mxu1 %v16451_v5  ;;  %13906 = vmatprep.mubr.msk.bf16.mxu1 %vm427_vm1, %v15267_v39  ;;  %v16865_v5 = vpop.permute.xlu0 %5722  ;;  %18176 = vst [vmem:[#allocation2_spill] sm:$0xff] %v16992_v54 }
 0x6a9   :  { %13928 = vmatprep.subr.bf16.mxu1 %v16445_v1 }
 0x6ac   :  { %13929 = vmatpush3.bf16.msra.mxu1 %v16445_v1  ;;  %v15271_v1 = vld [vmem:[%s18163_s8 + $0x3b0] sm:$0xff]   ;;  %v16876_v46 = vpop.permute.xlu0 %5732 }
 0x6af   :  { %13907 = vmatmul.mubr.msk.bf16.gmra.mrb[32].mxu1 %vm427_vm1, %v15268_v4  ;;  %v16996_v4 = vpop.permute.xlu1 %7277 }
 0x6b0   :  { %13910 = vmatprep.mubr.msk.bf16.mxu1 %vm427_vm1, %v15269_v14  ;;  %v16885_v35 = vpop.permute.xlu0 %5620  ;;  %18177 = vst [vmem:[#allocation3_spill] sm:$0xff] %v16996_v4  ;;  %v15281_v14 = vld [vmem:[%s18164_s10] sm:$0xff]  }
 0x6b1   :  { %13954 = vmatprep.mubr.msk.bf16.mxu0 %vm180_vm0, %v15281_v14 }
 0x6b4   :  { %v16894_v11 = vpop.permute.xlu0 %5630 }
 0x6b7   :  { %13911 = vmatmul.mubr.msk.bf16.gmra.mrb[36].mxu1 %vm427_vm1, %v15270_v42 }
 0x6b8   :  { %13914 = vmatprep.mubr.msk.bf16.mxu1 %vm427_vm1, %v15271_v1  ;;  %v16905_v60 = vpop.permute.xlu0 %5942  ;;  %v17004_v1 = vpop.permute.xlu1 %7432 }
 0x6b9   :  { %18179 = vst [vmem:[#allocation5_spill] sm:$0xff] %v17004_v1 }
 0x6bc   :  { %v16916_v41 = vpop.permute.xlu0 %5952 }
 0x6bf   :  { %13915 = vmatmul.mubr.msk.bf16.gmra.mrb[40].mxu1 %vm427_vm1, %v15272_v28 }
 0x6c0   :  { %13930 = vmatprep.mubr.msk.bf16.mxu1 %vm427_vm1, %v15273_v16  ;;  %v16925_v8 = vpop.permute.xlu0 %6107  ;;  %v17008_v16 = vpop.permute.xlu1 %7442 }
 0x6c1   :  { %18181 = vst [vmem:[#allocation7_spill] sm:$0xff] %v17008_v16 }
 0x6c4   :  { %v16934_v30 = vpop.permute.xlu0 %6117 }
 0x6c7   :  { %13931 = vmatmul.mubr.msk.bf16.vlgmr.msra.gmra.mrb[28].mxu1 %vm427_vm1, %v15274_v51 }
 0x6c8   :  { %13934 = vmatprep.mubr.msk.bf16.mxu1 %vm427_vm1, %v15275_v56  ;;  %v16942_v10 = vpop.permute.xlu0 %6272  ;;  %v17012_v56 = vpop.permute.xlu1 %7597 }
 0x6c9   :  { %18183 = vst [vmem:[#allocation9_spill] sm:$0xff] %v17012_v56 }
 0x6cc   :  { %v16946_v15 = vpop.permute.xlu0 %6282 }
 0x6cf   :  { %13935 = vmatmul.mubr.msk.bf16.gmra.mrb[32].mxu1 %vm427_vm1, %v15276_v6 }
 0x6d0   :  { %13938 = vmatprep.mubr.msk.bf16.mxu1 %vm427_vm1, %v15277_v62  ;;  %v16950_v18 = vpop.permute.xlu0 %6437  ;;  %v17016_v62 = vpop.permute.xlu1 %7607 }
 0x6d1   :  { %18185 = vst [vmem:[#allocation11_spill] sm:$0xff] %v17016_v62 }
 0x6d4   :  { %v16954_v43 = vpop.permute.xlu0 %6447 }
 0x6d7   :  { %13939 = vmatmul.mubr.msk.bf16.gmra.mrb[36].mxu1 %vm427_vm1, %v15278_v2 }
 0x6d8   :  { %13942 = vmatprep.mubr.msk.bf16.mxu1 %vm427_vm1, %v15279_v7  ;;  %v16958_v12 = vpop.permute.xlu0 %6602  ;;  %v17020_v7 = vpop.permute.xlu1 %7762 }
 0x6d9   :  { %18187 = vst [vmem:[#allocation13_spill] sm:$0xff] %v17020_v7 }
 0x6dc   :  { %v16962_v34 = vpop.permute.xlu0 %6612  ;;  %v17024_v14 = vpop.permute.xlu1 %7772 }
 0x6dd   :  { %18189 = vst [vmem:[#allocation15_spill] sm:$0xff] %v17024_v14 }
 0x6df   :  { %13943 = vmatmul.mubr.msk.bf16.gmra.mrb[40].mxu1 %vm427_vm1, %v15280_v9 }
 0x6e0   :  { %v16966_v58 = vpop.permute.xlu0 %6767 }
 0x6e4   :  { %v16970_v19 = vpop.permute.xlu0 %6777 }
 0x6e8   :  { %v16974_v20 = vpop.permute.xlu0 %6932 }
 0x6ec   :  { %v16978_v23 = vpop.permute.xlu0 %6942 }
 0x6f0   :  { %v16982_v24 = vpop.permute.xlu0 %7097 }
 0x6f4   :  { %v16986_v27 = vpop.permute.xlu0 %7107 }
 0x6f8   :  { %v16990_v32 = vpop.permute.xlu0 %7262 }
 0x6fc   :  { %v16994_v39 = vpop.permute.xlu0 %7272 }
 0x700   :  { %v17002_v42 = vpop.permute.xlu0 %7427 }
 0x701   :  { %18178 = vst [vmem:[#allocation4_spill] sm:$0xff] %v17002_v42  ;;  %v17028_v42 = vpop.permute.xlu1 %7927 }
 0x702   :  { %18191 = vst [vmem:[#allocation17_spill] sm:$0xff] %v17028_v42 }
 0x704   :  { %v17006_v28 = vpop.permute.xlu0 %7437 }
 0x705   :  { %18180 = vst [vmem:[#allocation6_spill] sm:$0xff] %v17006_v28 }
 0x708   :  { %v17010_v51 = vpop.permute.xlu0 %7592 }
 0x709   :  { %18182 = vst [vmem:[#allocation8_spill] sm:$0xff] %v17010_v51  ;;  %v17032_v51 = vpop.permute.xlu1 %7937 }
 0x70a   :  { %18193 = vst [vmem:[#allocation19_spill] sm:$0xff] %v17032_v51 }
 0x70c   :  { %v17014_v6 = vpop.permute.xlu0 %7602 }
 0x70d   :  { %18184 = vst [vmem:[#allocation10_spill] sm:$0xff] %v17014_v6  ;;  %v17036_v6 = vpop.permute.xlu1 %8092 }
 0x70e   :  { %18195 = vst [vmem:[#allocation21_spill] sm:$0xff] %v17036_v6 }
 0x710   :  { %v17018_v2 = vpop.permute.xlu0 %7757 }
 0x711   :  { %18186 = vst [vmem:[#allocation12_spill] sm:$0xff] %v17018_v2  ;;  %v17040_v2 = vpop.permute.xlu1 %8102 }
 0x712   :  { %18197 = vst [vmem:[#allocation23_spill] sm:$0xff] %v17040_v2 }
 0x714   :  { %v17022_v9 = vpop.permute.xlu0 %7767 }
 0x715   :  { %18188 = vst [vmem:[#allocation14_spill] sm:$0xff] %v17022_v9  ;;  %v17044_v9 = vpop.permute.xlu1 %9872 }
 0x716   :  { %18199 = vst [vmem:[#allocation25_spill] sm:$0xff] %v17044_v9 }
 0x718   :  { %v17026_v1 = vpop.permute.xlu0 %7922 }
 0x719   :  { %18190 = vst [vmem:[#allocation16_spill] sm:$0xff] %v17026_v1  ;;  %v17048_v1 = vpop.permute.xlu1 %9882 }
 0x71a   :  { %18201 = vst [vmem:[#allocation27_spill] sm:$0xff] %v17048_v1 }
 0x71c   :  { %v17030_v16 = vpop.permute.xlu0 %7932 }
 0x71d   :  { %18192 = vst [vmem:[#allocation18_spill] sm:$0xff] %v17030_v16  ;;  %v17052_v16 = vpop.permute.xlu1 %9892 }
 0x71e   :  { %18203 = vst [vmem:[#allocation29_spill] sm:$0xff] %v17052_v16 }
 0x720   :  { %v17034_v56 = vpop.permute.xlu0 %8087 }
 0x721   :  { %18194 = vst [vmem:[#allocation20_spill] sm:$0xff] %v17034_v56  ;;  %v17056_v56 = vpop.permute.xlu1 %9902 }
 0x722   :  { %18205 = vst [vmem:[#allocation31_spill] sm:$0xff] %v17056_v56 }
 0x724   :  { %v17038_v62 = vpop.permute.xlu0 %8097 }
 0x725   :  { %18196 = vst [vmem:[#allocation22_spill] sm:$0xff] %v17038_v62  ;;  %v17060_v62 = vpop.permute.xlu1 %11406 }
 0x726   :  { %18207 = vst [vmem:[#allocation33_spill] sm:$0xff] %v17060_v62 }
 0x728   :  { %v17042_v7 = vpop.permute.xlu0 %9867 }
 0x729   :  { %18198 = vst [vmem:[#allocation24_spill] sm:$0xff] %v17042_v7  ;;  %v17064_v7 = vpop.permute.xlu1 %11416 }
 0x72a   :  { %18209 = vst [vmem:[#allocation35_spill] sm:$0xff] %v17064_v7 }
 0x72c   :  { %v17046_v14 = vpop.permute.xlu0 %9877 }
 0x72d   :  { %18200 = vst [vmem:[#allocation26_spill] sm:$0xff] %v17046_v14  ;;  %v17068_v14 = vpop.permute.xlu1 %11426 }
 0x72e   :  { %18211 = vst [vmem:[#allocation37_spill] sm:$0xff] %v17068_v14 }
 0x730   :  { %v17050_v42 = vpop.permute.xlu0 %9887 }
 0x731   :  { %18202 = vst [vmem:[#allocation28_spill] sm:$0xff] %v17050_v42  ;;  %v17073_v56 = vpop.permute.xlu1 %11436 }
 0x732   :  { %18213 = vst [vmem:[#allocation39_spill] sm:$0xff] %v17073_v56 }
 0x734   :  { %v17054_v51 = vpop.permute.xlu0 %9897 }
 0x735   :  { %18204 = vst [vmem:[#allocation30_spill] sm:$0xff] %v17054_v51 }
 0x738   :  { %v17058_v6 = vpop.permute.xlu0 %11401 }
 0x739   :  { %18206 = vst [vmem:[#allocation32_spill] sm:$0xff] %v17058_v6 }
 0x73c   :  { %v17062_v2 = vpop.permute.xlu0 %11411 }
 0x73d   :  { %18208 = vst [vmem:[#allocation34_spill] sm:$0xff] %v17062_v2 }
 0x740   :  { %v17066_v9 = vpop.permute.xlu0 %11421 }
 0x741   :  { %18210 = vst [vmem:[#allocation36_spill] sm:$0xff] %v17066_v9 }
 0x744   :  { %v17070_v1 = vpop.permute.xlu0 %11431 }
 0x745   :  { %18212 = vst [vmem:[#allocation38_spill] sm:$0xff] %v17070_v1 }
 0x79a   :  { %v13932_v42 = vpop.f32.mrb[28].mxu1 }
 0x79b   :  { %v5575_v16 = vadd.f32 %v13932_v42, %v16833_v59  ;;  %v5398_v51 = vpop.f32.mrb[29].mxu1  ;;  %v5536_v42 = vpop.permute.xlu0 %5535 }
 0x79c   :  { %v5573_v6 = vadd.f32 %v16822_v52, %v5398_v51  ;;  %v13933_v62 = vpop.f32.mrb[30].mxu1  ;;  %v5541_v51 = vpop.permute.xlu1 %5540 }
 0x79d   :  { %5592 = vst.msk [vmem:[%s18165_s16 + $0x10] sm:$0xff] %vm5589_vm2, %v5575_v16  ;;  %v5576_v9 = vadd.f32 %v13933_v62, %v16836_v33  ;;  %v5401_v14 = vpop.f32.mrb[31].mxu1 }
 0x79e   :  { %5590 = vst.msk [vmem:[%s18165_s16] sm:$0xff] %vm5589_vm2, %v5573_v6  ;;  %v5574_v59 = vadd.f32 %v16825_v29, %v5401_v14 }
 0x79f   :  { %5593 = vst.msk [vmem:[%s18165_s16 + $0x18] sm:$0xff] %vm5589_vm2, %v5576_v9  ;;  %v17090_v52 = vpack.c.bf16 %v5576_v9, %v5575_v16  ;;  %v5546_v56 = vpop.permute.xlu0 %5545 }
 0x7a0   :  { %5591 = vst.msk [vmem:[%s18165_s16 + $0x8] sm:$0xff] %vm5589_vm2, %v5574_v59  ;;  %v17096_v33 = vpack.c.bf16 %v5574_v59, %v5573_v6 }
 0x7a2   :  { %v13936_v62 = vpop.f32.mrb[32].mxu1  ;;  %13946 = vmatprep.subr.bf16.mxu0 %v17096_v33 }
 0x7a3   :  { %v5579_v29 = vadd.f32 %v13936_v62, %v16853_v48  ;;  %v5414_v14 = vpop.f32.mrb[33].mxu1  ;;  %13947 = vmatpush3.bf16.msra.mxu0 %v17096_v33  ;;  %v5551_v62 = vpop.permute.xlu1 %5550 }
 0x7a4   :  { %v5577_v16 = vadd.f32 %v16842_v25, %v5414_v14  ;;  %v13937_v9 = vpop.f32.mrb[34].mxu1  ;;  %13948 = vmatprep.subr.bf16.mxu0 %v17090_v52 }
 0x7a5   :  { %5596 = vst.msk [vmem:[%s18165_s16 + $0x30] sm:$0xff] %vm5589_vm2, %v5579_v29  ;;  %v5580_v6 = vadd.f32 %v13937_v9, %v16858_v3  ;;  %v5417_v59 = vpop.f32.mrb[35].mxu1 }
 0x7a6   :  { %5594 = vst.msk [vmem:[%s18165_s16 + $0x20] sm:$0xff] %vm5589_vm2, %v5577_v16  ;;  %v5578_v48 = vadd.f32 %v16847_v40, %v5417_v59  ;;  %v5556_v59 = vpop.permute.xlu0 %5555 }
 0x7a7   :  { %5597 = vst.msk [vmem:[%s18165_s16 + $0x38] sm:$0xff] %vm5589_vm2, %v5580_v6  ;;  %v17117_v25 = vpack.c.bf16 %v5580_v6, %v5579_v29  ;;  %13949 = vmatpush3.bf16.msra.mxu0 %v17090_v52 }
 0x7a8   :  { %5595 = vst.msk [vmem:[%s18165_s16 + $0x28] sm:$0xff] %vm5589_vm2, %v5578_v48  ;;  %v17124_v3 = vpack.c.bf16 %v5578_v48, %v5577_v16  ;;  %v5561_v48 = vpop.permute.xlu1 %5560 }
 0x7aa   :  { %v13940_v14 = vpop.f32.mrb[36].mxu1  ;;  %13950 = vmatprep.subr.bf16.mxu0 %v17124_v3 }
 0x7ab   :  { %v5583_v40 = vadd.f32 %v13940_v14, %v5546_v56  ;;  %v5430_v9 = vpop.f32.mrb[37].mxu1  ;;  %13951 = vmatpush3.bf16.msra.mxu0 %v17124_v3 }
 0x7ac   :  { %v5581_v29 = vadd.f32 %v5536_v42, %v5430_v9  ;;  %v13941_v6 = vpop.f32.mrb[38].mxu1  ;;  %13952 = vmatprep.subr.bf16.mxu0 %v17117_v25  ;;  %v15282_v42 = vld [vmem:[%s18164_s10 + $0x8] sm:$0xff]  }
 0x7ad   :  { %5600 = vst.msk [vmem:[%s18165_s16 + $0x50] sm:$0xff] %vm5589_vm2, %v5583_v40  ;;  %v5584_v1 = vadd.f32 %v13941_v6, %v5551_v62  ;;  %v5433_v16 = vpop.f32.mrb[39].mxu1  ;;  %v15283_v62 = vld [vmem:[%s18164_s10 + $0x10] sm:$0xff]  }
 0x7ae   :  { %5598 = vst.msk [vmem:[%s18165_s16 + $0x40] sm:$0xff] %vm5589_vm2, %v5581_v29  ;;  %v5582_v56 = vadd.f32 %v5541_v51, %v5433_v16  ;;  %v5566_v51 = vpop.permute.xlu0 %5565 }
 0x7af   :  { %5601 = vst.msk [vmem:[%s18165_s16 + $0x58] sm:$0xff] %vm5589_vm2, %v5584_v1  ;;  %13953 = vmatpush3.bf16.msra.mxu0 %v17117_v25  ;;  %v5571_v1 = vpop.permute.xlu1 %5570 }
 0x7b0   :  { %5599 = vst.msk [vmem:[%s18165_s16 + $0x48] sm:$0xff] %vm5589_vm2, %v5582_v56  ;;  %13958 = vmatprep.subr.bf16.mxu0 %v17096_v33 }
 0x7b2   :  { %v13944_v14 = vpop.f32.mrb[40].mxu1  ;;  %13955 = vmatmul.mubr.msk.bf16.vlgmr.msra.gmra.mrb[96].mxu0 %vm180_vm0, %v15282_v42 }
 0x7b3   :  { %v5587_v40 = vadd.f32 %v13944_v14, %v5566_v51  ;;  %v5446_v9 = vpop.f32.mrb[41].mxu1  ;;  %13959 = vmatpush3.bf16.msra.mxu0 %v17096_v33  ;;  %13966 = vmatprep.mubr.msk.bf16.mxu0 %vm180_vm0, %v15283_v62  ;;  %v5709_v51 = vld [vmem:[%s18166_s3] sm:$0x1] }
 0x7b4   :  { %v5585_v29 = vadd.f32 %v5556_v59, %v5446_v9  ;;  %v13945_v6 = vpop.f32.mrb[42].mxu1  ;;  %13960 = vmatprep.subr.bf16.mxu0 %v17090_v52  ;;  %v15284_v59 = vld [vmem:[%s18164_s10 + $0x18] sm:$0xff]  }
 0x7b5   :  { %5604 = vst.msk [vmem:[%s18165_s16 + $0x70] sm:$0xff] %vm5589_vm2, %v5587_v40  ;;  %v5588_v16 = vadd.f32 %v13945_v6, %v5571_v1  ;;  %v5449_v56 = vpop.f32.mrb[43].mxu1 }
 0x7b6   :  { %5602 = vst.msk [vmem:[%s18165_s16 + $0x60] sm:$0xff] %vm5589_vm2, %v5585_v29  ;;  %v5586_v42 = vadd.f32 %v5561_v48, %v5449_v56  ;;  %v12239_v48 = vld [vmem:[%s18166_s3 + $0x1] sm:$0x1] }
 0x7b7   :  { %5605 = vst.msk [vmem:[%s18165_s16 + $0x78] sm:$0xff] %vm5589_vm2, %v5588_v16  ;;  %13961 = vmatpush3.bf16.msra.mxu0 %v17090_v52  ;;  %v5821_v62 = vsel %vm5819_vm3, %v12239_v48, 0 }
 0x7b8   :  { %5603 = vst.msk [vmem:[%s18165_s16 + $0x68] sm:$0xff] %vm5589_vm2, %v5586_v42  ;;  %13962 = vmatprep.subr.bf16.mxu0 %v17124_v3 }
 0x7bb   :  { %13963 = vmatpush3.bf16.msra.mxu0 %v17124_v3 }
 0x7bc   :  { %13964 = vmatprep.subr.bf16.mxu0 %v17117_v25 }
 0x7bf   :  { %13965 = vmatpush3.bf16.msra.mxu0 %v17117_v25 }
 0x7c0   :  { %15070 = vmatprep.subr.msk.bf16.mxu0 %vm5819_vm3, %v12239_v48 }
 0x7c2   :  { %13967 = vmatmul.mubr.msk.bf16.vlgmr.msra.gmra.mrb[100].mxu0 %vm180_vm0, %v15284_v59 }
 0x7c3   :  { %13971 = vmatpush3.bf16.msra.mxu0 %v5821_v62 }
 0x7c4   :  { %15071 = vmatprep.subr.msk.bf16.mxu0 %vm5819_vm3, %v5709_v51 }
 0x885   :  { %v13956_v14 = vpop.f32.mrb[96].mxu0 }
 0x886   :  { %v5697_v40 = vadd.f32 %v13956_v14, %v16894_v11  ;;  %v5688_v9 = vpop.f32.mrb[97].mxu0 }
 0x887   :  { %v5689_v1 = vadd.f32 %v5688_v9, %v16885_v35  ;;  %v13957_v29 = vpop.f32.mrb[98].mxu0 }
 0x888   :  { %v5700_v6 = vadd.f32 %v13957_v29, %v16899_v53  ;;  %v5691_v16 = vpop.f32.mrb[99].mxu0  ;;  %v5705_v42 = vmax.f32 %v5697_v40, 0.0 }
 0x889   :  { %v5692_v56 = vadd.f32 %v5691_v16, %v16890_v50  ;;  %v5703_v48 = vmax.f32 %v5689_v1, 0.0 }
 0x88a   :  { %v5706_v59 = vmax.f32 %v5700_v6, 0.0 }
 0x88b   :  { %v5704_v62 = vmax.f32 %v5692_v56, 0.0  ;;  %v5879_v56 = vsel %vm5819_vm3, %v5709_v51, 0 }
 0x88c   :  { %v5708_v7 = vpack.c.bf16 %v5706_v59, %v5705_v42 }
 0x88d   :  { %v5707_v2 = vpack.c.bf16 %v5704_v62, %v5703_v48 }
 0x895   :  { %v13968_v28 = vpop.f32.mrb[100].mxu0 }
 0x896   :  { %v5799_v54 = vadd.f32 %v13968_v28, %v16876_v46  ;;  %v5790_v4 = vpop.f32.mrb[101].mxu0  ;;  %v15286_v46 = vld [vmem:[%s18164_s10 + $0x28] sm:$0xff]  }
 0x897   :  { %v5791_v11 = vadd.f32 %v5790_v4, %v16865_v5  ;;  %v13969_v14 = vpop.f32.mrb[102].mxu0  ;;  %v15285_v5 = vld [vmem:[%s18164_s10 + $0x20] sm:$0xff]  }
 0x898   :  { %v5802_v35 = vadd.f32 %v13969_v14, %v16879_v47  ;;  %v5793_v9 = vpop.f32.mrb[103].mxu0  ;;  %v5807_v29 = vmax.f32 %v5799_v54, 0.0 }
 0x899   :  { %v5794_v53 = vadd.f32 %v5793_v9, %v16868_v0  ;;  %v5805_v40 = vmax.f32 %v5791_v11, 0.0  ;;  %v12256_v0 = vld [vmem:[%s18166_s3 + $0x2] sm:$0x1] }
 0x89a   :  { %v5808_v50 = vmax.f32 %v5802_v35, 0.0  ;;  %v6040_v47 = vsel %vm5819_vm3, %v12256_v0, 0 }
 0x89b   :  { %v5806_v6 = vmax.f32 %v5794_v53, 0.0  ;;  %v15287_v53 = vld [vmem:[%s18164_s10 + $0x30] sm:$0xff]  }
 0x89c   :  { %v5810_v1 = vpack.c.bf16 %v5808_v50, %v5807_v29 }
 0x89d   :  { %v5809_v16 = vpack.c.bf16 %v5806_v6, %v5805_v40 }
 0x89f   :  { %13972 = vmatprep.mubr.msk.bf16.mxu0 %vm5589_vm2, %v5809_v16 }
 0x8a0   :  { %13973 = vmatmul.mubr.msk.bf16.vlgmr.msra.gmra.mrb[104].mxu0 %vm5589_vm2, %v5810_v1 }
 0x8a1   :  { %13977 = vmatpush3.bf16.msra.mxu0 %v5879_v56  ;;  %13978 = vmatprep.mubr.msk.bf16.mxu0 %vm5589_vm2, %v5707_v2 }
 0x8a2   :  { %13982 = vmatprep.subr.bf16.mxu0 %v17096_v33 }
 0x8ac   :  { %13979 = vmatmul.mubr.msk.bf16.vlgmr.msra.gmra.mrb[104].mxu0 %vm5589_vm2, %v5708_v7 }
 0x8ad   :  { %13983 = vmatpush3.bf16.msra.mxu0 %v17096_v33  ;;  %13990 = vmatprep.mubr.msk.bf16.mxu0 %vm180_vm0, %v15285_v5 }
 0x8ae   :  { %13984 = vmatprep.subr.bf16.mxu0 %v17090_v52 }
 0x8b1   :  { %13985 = vmatpush3.bf16.msra.mxu0 %v17090_v52 }
 0x8b2   :  { %13986 = vmatprep.subr.bf16.mxu0 %v17124_v3 }
 0x8b5   :  { %13987 = vmatpush3.bf16.msra.mxu0 %v17124_v3 }
 0x8b6   :  { %13988 = vmatprep.subr.bf16.mxu0 %v17117_v25 }
 0x8b9   :  { %13989 = vmatpush3.bf16.msra.mxu0 %v17117_v25 }
 0x8ba   :  { %15072 = vmatprep.subr.msk.bf16.mxu0 %vm5819_vm3, %v12256_v0 }
 0x8bc   :  { %13991 = vmatmul.mubr.msk.bf16.vlgmr.msra.gmra.mrb[108].mxu0 %vm180_vm0, %v15286_v46 }
 0x8bd   :  { %13995 = vmatpush3.bf16.msra.mxu0 %v6040_v47 }
 0x8be   :  { %14000 = vmatprep.subr.bf16.mxu0 %v17096_v33 }
 0x98f   :  { %v13992_v54 = vpop.f32.mrb[108].mxu0 }
 0x990   :  { %v6019_v4 = vadd.f32 %v13992_v54, %v16916_v41  ;;  %v6010_v28 = vpop.f32.mrb[109].mxu0 }
 0x991   :  { %v6011_v2 = vadd.f32 %v6010_v28, %v16905_v60  ;;  %v13993_v7 = vpop.f32.mrb[110].mxu0  ;;  %v12271_v60 = vld [vmem:[%s18166_s3 + $0x3] sm:$0x1] }
 0x992   :  { %v6022_v51 = vadd.f32 %v13993_v7, %v16919_v63  ;;  %v6013_v42 = vpop.f32.mrb[111].mxu0  ;;  %v6027_v48 = vmax.f32 %v6019_v4, 0.0  ;;  %v6205_v41 = vsel %vm5819_vm3, %v12271_v60, 0  ;;  %v15289_v28 = vld [vmem:[%s18164_s10 + $0x40] sm:$0xff]  }
 0x993   :  { %v6014_v59 = vadd.f32 %v6013_v42, %v16908_v61  ;;  %v6025_v11 = vmax.f32 %v6011_v2, 0.0  ;;  %v15288_v61 = vld [vmem:[%s18164_s10 + $0x38] sm:$0xff]  }
 0x994   :  { %v6028_v62 = vmax.f32 %v6022_v51, 0.0 }
 0x995   :  { %v6026_v14 = vmax.f32 %v6014_v59, 0.0 }
 0x996   :  { %v6030_v35 = vpack.c.bf16 %v6028_v62, %v6027_v48 }
 0x997   :  { %v6029_v9 = vpack.c.bf16 %v6026_v14, %v6025_v11 }
 0x999   :  { %13996 = vmatprep.mubr.msk.bf16.mxu0 %vm5589_vm2, %v6029_v9 }
 0x99a   :  { %13997 = vmatmul.mubr.msk.bf16.vlgmr.msra.gmra.mrb[104].mxu0 %vm5589_vm2, %v6030_v35 }
 0x99b   :  { %14001 = vmatpush3.bf16.msra.mxu0 %v17096_v33  ;;  %14008 = vmatprep.mubr.msk.bf16.mxu0 %vm180_vm0, %v15287_v53 }
 0x99c   :  { %14002 = vmatprep.subr.bf16.mxu0 %v17090_v52 }
 0x99f   :  { %14003 = vmatpush3.bf16.msra.mxu0 %v17090_v52 }
 0x9a0   :  { %14004 = vmatprep.subr.bf16.mxu0 %v17124_v3 }
 0x9a3   :  { %14005 = vmatpush3.bf16.msra.mxu0 %v17124_v3 }
 0x9a4   :  { %14006 = vmatprep.subr.bf16.mxu0 %v17117_v25 }
 0x9a7   :  { %14007 = vmatpush3.bf16.msra.mxu0 %v17117_v25 }
 0x9a8   :  { %15073 = vmatprep.subr.msk.bf16.mxu0 %vm5819_vm3, %v12271_v60 }
 0x9aa   :  { %14009 = vmatmul.mubr.msk.bf16.vlgmr.msra.gmra.mrb[112].mxu0 %vm180_vm0, %v15288_v61  ;;  %v15291_v61 = vld [vmem:[%s18164_s10 + $0x50] sm:$0xff]  }
 0x9ab   :  { %14013 = vmatpush3.bf16.msra.mxu0 %v6205_v41 }
 0x9ac   :  { %14018 = vmatprep.subr.bf16.mxu0 %v17096_v33 }
 0xa7d   :  { %v14010_v63 = vpop.f32.mrb[112].mxu0 }
 0xa7e   :  { %v6184_v29 = vadd.f32 %v14010_v63, %v16934_v30  ;;  %v6175_v50 = vpop.f32.mrb[113].mxu0 }
 0xa7f   :  { %v6176_v40 = vadd.f32 %v6175_v50, %v16925_v8  ;;  %v14011_v6 = vpop.f32.mrb[114].mxu0  ;;  %v12286_v8 = vld [vmem:[%s18166_s3 + $0x4] sm:$0x1] }
 0xa80   :  { %v6187_v1 = vadd.f32 %v14011_v6, %v16939_v26  ;;  %v6178_v16 = vpop.f32.mrb[115].mxu0  ;;  %v6192_v5 = vmax.f32 %v6184_v29, 0.0  ;;  %v6370_v30 = vsel %vm5819_vm3, %v12286_v8, 0 }
 0xa81   :  { %v6179_v56 = vadd.f32 %v6178_v16, %v16930_v36  ;;  %v6190_v46 = vmax.f32 %v6176_v40, 0.0  ;;  %v15290_v36 = vld [vmem:[%s18164_s10 + $0x48] sm:$0xff]  }
 0xa82   :  { %v6193_v0 = vmax.f32 %v6187_v1, 0.0 }
 0xa83   :  { %v6191_v47 = vmax.f32 %v6179_v56, 0.0 }
 0xa84   :  { %v6195_v54 = vpack.c.bf16 %v6193_v0, %v6192_v5 }
 0xa85   :  { %v6194_v4 = vpack.c.bf16 %v6191_v47, %v6190_v46 }
 0xa87   :  { %14014 = vmatprep.mubr.msk.bf16.mxu0 %vm5589_vm2, %v6194_v4 }
 0xa88   :  { %14015 = vmatmul.mubr.msk.bf16.vlgmr.msra.gmra.mrb[104].mxu0 %vm5589_vm2, %v6195_v54  ;;  %v15293_v54 = vld [vmem:[%s18164_s10 + $0x60] sm:$0xff]  }
 0xa89   :  { %14019 = vmatpush3.bf16.msra.mxu0 %v17096_v33  ;;  %14026 = vmatprep.mubr.msk.bf16.mxu0 %vm180_vm0, %v15289_v28 }
 0xa8a   :  { %14020 = vmatprep.subr.bf16.mxu0 %v17090_v52 }
 0xa8d   :  { %14021 = vmatpush3.bf16.msra.mxu0 %v17090_v52 }
 0xa8e   :  { %14022 = vmatprep.subr.bf16.mxu0 %v17124_v3 }
 0xa91   :  { %14023 = vmatpush3.bf16.msra.mxu0 %v17124_v3 }
 0xa92   :  { %14024 = vmatprep.subr.bf16.mxu0 %v17117_v25 }
 0xa95   :  { %14025 = vmatpush3.bf16.msra.mxu0 %v17117_v25 }
 0xa96   :  { %15074 = vmatprep.subr.msk.bf16.mxu0 %vm5819_vm3, %v12286_v8 }
 0xa98   :  { %14027 = vmatmul.mubr.msk.bf16.vlgmr.msra.gmra.mrb[116].mxu0 %vm180_vm0, %v15290_v36 }
 0xa99   :  { %14031 = vmatpush3.bf16.msra.mxu0 %v6370_v30 }
 0xa9a   :  { %14036 = vmatprep.subr.bf16.mxu0 %v17096_v33 }
 0xb6b   :  { %v14028_v26 = vpop.f32.mrb[116].mxu0 }
 0xb6c   :  { %v6349_v2 = vadd.f32 %v14028_v26, %v16946_v15  ;;  %v6340_v7 = vpop.f32.mrb[117].mxu0 }
 0xb6d   :  { %v6341_v51 = vadd.f32 %v6340_v7, %v16942_v10  ;;  %v14029_v42 = vpop.f32.mrb[118].mxu0  ;;  %v12301_v10 = vld [vmem:[%s18166_s3 + $0x5] sm:$0x1] }
 0xb6e   :  { %v6352_v59 = vadd.f32 %v14029_v42, %v16948_v17  ;;  %v6343_v48 = vpop.f32.mrb[119].mxu0  ;;  %v6357_v11 = vmax.f32 %v6349_v2, 0.0  ;;  %v6535_v15 = vsel %vm5819_vm3, %v12301_v10, 0 }
 0xb6f   :  { %v6344_v62 = vadd.f32 %v6343_v48, %v16944_v13  ;;  %v6355_v35 = vmax.f32 %v6341_v51, 0.0  ;;  %v15292_v13 = vld [vmem:[%s18164_s10 + $0x58] sm:$0xff]  }
 0xb70   :  { %v6358_v14 = vmax.f32 %v6352_v59, 0.0 }
 0xb71   :  { %v6356_v9 = vmax.f32 %v6344_v62, 0.0 }
 0xb72   :  { %v6360_v53 = vpack.c.bf16 %v6358_v14, %v6357_v11  ;;  %v15295_v11 = vld [vmem:[%s18164_s10 + $0x70] sm:$0xff]  }
 0xb73   :  { %v6359_v60 = vpack.c.bf16 %v6356_v9, %v6355_v35 }
 0xb75   :  { %14032 = vmatprep.mubr.msk.bf16.mxu0 %vm5589_vm2, %v6359_v60 }
 0xb76   :  { %14033 = vmatmul.mubr.msk.bf16.vlgmr.msra.gmra.mrb[104].mxu0 %vm5589_vm2, %v6360_v53 }
 0xb77   :  { %14037 = vmatpush3.bf16.msra.mxu0 %v17096_v33  ;;  %14044 = vmatprep.mubr.msk.bf16.mxu0 %vm180_vm0, %v15291_v61 }
 0xb78   :  { %14038 = vmatprep.subr.bf16.mxu0 %v17090_v52 }
 0xb7b   :  { %14039 = vmatpush3.bf16.msra.mxu0 %v17090_v52 }
 0xb7c   :  { %14040 = vmatprep.subr.bf16.mxu0 %v17124_v3 }
 0xb7f   :  { %14041 = vmatpush3.bf16.msra.mxu0 %v17124_v3 }
 0xb80   :  { %14042 = vmatprep.subr.bf16.mxu0 %v17117_v25 }
 0xb83   :  { %14043 = vmatpush3.bf16.msra.mxu0 %v17117_v25 }
 0xb84   :  { %15075 = vmatprep.subr.msk.bf16.mxu0 %vm5819_vm3, %v12301_v10 }
 0xb86   :  { %14045 = vmatmul.mubr.msk.bf16.vlgmr.msra.gmra.mrb[120].mxu0 %vm180_vm0, %v15292_v13 }
 0xb87   :  { %14049 = vmatpush3.bf16.msra.mxu0 %v6535_v15 }
 0xb88   :  { %14054 = vmatprep.subr.bf16.mxu0 %v17096_v33 }
 0xc59   :  { %v14046_v17 = vpop.f32.mrb[120].mxu0 }
 0xc5a   :  { %v6514_v41 = vadd.f32 %v14046_v17, %v16954_v43  ;;  %v6505_v63 = vpop.f32.mrb[121].mxu0 }
 0xc5b   :  { %v6506_v29 = vadd.f32 %v6505_v63, %v16950_v18  ;;  %v14047_v50 = vpop.f32.mrb[122].mxu0  ;;  %v12316_v18 = vld [vmem:[%s18166_s3 + $0x6] sm:$0x1] }
 0xc5c   :  { %v6517_v40 = vadd.f32 %v14047_v50, %v16956_v37  ;;  %v6508_v6 = vpop.f32.mrb[123].mxu0  ;;  %v6522_v16 = vmax.f32 %v6514_v41, 0.0  ;;  %v6700_v43 = vsel %vm5819_vm3, %v12316_v18, 0  ;;  %v15297_v50 = vld [vmem:[%s18164_s10 + $0x80] sm:$0xff]  }
 0xc5d   :  { %v6509_v1 = vadd.f32 %v6508_v6, %v16952_v45  ;;  %v6520_v5 = vmax.f32 %v6506_v29, 0.0  ;;  %v15294_v45 = vld [vmem:[%s18164_s10 + $0x68] sm:$0xff]  }
 0xc5e   :  { %v6523_v56 = vmax.f32 %v6517_v40, 0.0 }
 0xc5f   :  { %v6521_v0 = vmax.f32 %v6509_v1, 0.0 }
 0xc60   :  { %v6525_v46 = vpack.c.bf16 %v6523_v56, %v6522_v16 }
 0xc61   :  { %v6524_v47 = vpack.c.bf16 %v6521_v0, %v6520_v5 }
 0xc63   :  { %14050 = vmatprep.mubr.msk.bf16.mxu0 %vm5589_vm2, %v6524_v47 }
 0xc64   :  { %14051 = vmatmul.mubr.msk.bf16.vlgmr.msra.gmra.mrb[104].mxu0 %vm5589_vm2, %v6525_v46 }
 0xc65   :  { %14055 = vmatpush3.bf16.msra.mxu0 %v17096_v33  ;;  %14062 = vmatprep.mubr.msk.bf16.mxu0 %vm180_vm0, %v15293_v54 }
 0xc66   :  { %14056 = vmatprep.subr.bf16.mxu0 %v17090_v52 }
 0xc69   :  { %14057 = vmatpush3.bf16.msra.mxu0 %v17090_v52 }
 0xc6a   :  { %14058 = vmatprep.subr.bf16.mxu0 %v17124_v3 }
 0xc6d   :  { %14059 = vmatpush3.bf16.msra.mxu0 %v17124_v3 }
 0xc6e   :  { %14060 = vmatprep.subr.bf16.mxu0 %v17117_v25 }
 0xc71   :  { %14061 = vmatpush3.bf16.msra.mxu0 %v17117_v25 }
 0xc72   :  { %15076 = vmatprep.subr.msk.bf16.mxu0 %vm5819_vm3, %v12316_v18 }
 0xc74   :  { %14063 = vmatmul.mubr.msk.bf16.vlgmr.msra.gmra.mrb[124].mxu0 %vm180_vm0, %v15294_v45 }
 0xc75   :  { %14067 = vmatpush3.bf16.msra.mxu0 %v6700_v43 }
 0xc76   :  { %14072 = vmatprep.subr.bf16.mxu0 %v17096_v33 }
 0xd47   :  { %v14064_v37 = vpop.f32.mrb[124].mxu0 }
 0xd48   :  { %v6679_v4 = vadd.f32 %v14064_v37, %v16962_v34  ;;  %v6670_v28 = vpop.f32.mrb[125].mxu0  ;;  %v15299_v37 = vld [vmem:[%s18164_s10 + $0x90] sm:$0xff]  }
 0xd49   :  { %v6671_v8 = vadd.f32 %v6670_v28, %v16958_v12  ;;  %v14065_v36 = vpop.f32.mrb[126].mxu0  ;;  %v12331_v12 = vld [vmem:[%s18166_s3 + $0x7] sm:$0x1] }
 0xd4a   :  { %v6682_v30 = vadd.f32 %v14065_v36, %v16964_v55  ;;  %v6673_v26 = vpop.f32.mrb[127].mxu0  ;;  %v6687_v7 = vmax.f32 %v6679_v4, 0.0  ;;  %v6865_v34 = vsel %vm5819_vm3, %v12331_v12, 0 }
 0xd4b   :  { %v6674_v2 = vadd.f32 %v6673_v26, %v16960_v21  ;;  %v6685_v42 = vmax.f32 %v6671_v8, 0.0  ;;  %v15296_v21 = vld [vmem:[%s18164_s10 + $0x78] sm:$0xff]  }
 0xd4c   :  { %v6688_v51 = vmax.f32 %v6682_v30, 0.0 }
 0xd4d   :  { %v6686_v59 = vmax.f32 %v6674_v2, 0.0 }
 0xd4e   :  { %v6690_v48 = vpack.c.bf16 %v6688_v51, %v6687_v7 }
 0xd4f   :  { %v6689_v62 = vpack.c.bf16 %v6686_v59, %v6685_v42 }
 0xd51   :  { %14068 = vmatprep.mubr.msk.bf16.mxu0 %vm5589_vm2, %v6689_v62 }
 0xd52   :  { %14069 = vmatmul.mubr.msk.bf16.vlgmr.msra.gmra.mrb[104].mxu0 %vm5589_vm2, %v6690_v48 }
 0xd53   :  { %14073 = vmatpush3.bf16.msra.mxu0 %v17096_v33  ;;  %14080 = vmatprep.mubr.msk.bf16.mxu0 %vm180_vm0, %v15295_v11  ;;  %v15301_v11 = vld [vmem:[%s18164_s10 + $0xa0] sm:$0xff]  }
 0xd54   :  { %14074 = vmatprep.subr.bf16.mxu0 %v17090_v52 }
 0xd57   :  { %14075 = vmatpush3.bf16.msra.mxu0 %v17090_v52 }
 0xd58   :  { %14076 = vmatprep.subr.bf16.mxu0 %v17124_v3 }
 0xd5b   :  { %14077 = vmatpush3.bf16.msra.mxu0 %v17124_v3 }
 0xd5c   :  { %14078 = vmatprep.subr.bf16.mxu0 %v17117_v25 }
 0xd5f   :  { %14079 = vmatpush3.bf16.msra.mxu0 %v17117_v25 }
 0xd60   :  { %15077 = vmatprep.subr.msk.bf16.mxu0 %vm5819_vm3, %v12331_v12 }
 0xd62   :  { %14081 = vmatmul.mubr.msk.bf16.vlgmr.msra.gmra.mrb[128].mxu0 %vm180_vm0, %v15296_v21 }
 0xd63   :  { %14085 = vmatpush3.bf16.msra.mxu0 %v6865_v34 }
 0xd64   :  { %14090 = vmatprep.subr.bf16.mxu0 %v17096_v33 }
 0xe35   :  { %v14082_v55 = vpop.f32.mrb[128].mxu0 }
 0xe36   :  { %v6844_v14 = vadd.f32 %v14082_v55, %v16970_v19  ;;  %v6835_v35 = vpop.f32.mrb[129].mxu0 }
 0xe37   :  { %v6836_v9 = vadd.f32 %v6835_v35, %v16966_v58  ;;  %v14083_v53 = vpop.f32.mrb[130].mxu0  ;;  %v12346_v58 = vld [vmem:[%s18166_s3 + $0x8] sm:$0x1] }
 0xe38   :  { %v6847_v60 = vadd.f32 %v14083_v53, %v16972_v44  ;;  %v6838_v61 = vpop.f32.mrb[131].mxu0  ;;  %v6852_v13 = vmax.f32 %v6844_v14, 0.0  ;;  %v7030_v19 = vsel %vm5819_vm3, %v12346_v58, 0  ;;  %v18214_v14 = vld [vmem:[#allocation3_spill] sm:$0xff]  ;;  %v18215_v53 = vld [vmem:[#allocation2_spill] sm:$0xff] }
 0xe39   :  { %v6839_v10 = vadd.f32 %v6838_v61, %v16968_v49  ;;  %v6850_v17 = vmax.f32 %v6836_v9, 0.0  ;;  %v15298_v49 = vld [vmem:[%s18164_s10 + $0x88] sm:$0xff]  }
 0xe3a   :  { %v6853_v15 = vmax.f32 %v6847_v60, 0.0 }
 0xe3b   :  { %v6851_v41 = vmax.f32 %v6839_v10, 0.0 }
 0xe3c   :  { %v6855_v63 = vpack.c.bf16 %v6853_v15, %v6852_v13 }
 0xe3d   :  { %v6854_v29 = vpack.c.bf16 %v6851_v41, %v6850_v17 }
 0xe3f   :  { %14086 = vmatprep.mubr.msk.bf16.mxu0 %vm5589_vm2, %v6854_v29 }
 0xe40   :  { %14087 = vmatmul.mubr.msk.bf16.vlgmr.msra.gmra.mrb[104].mxu0 %vm5589_vm2, %v6855_v63  ;;  %v15303_v63 = vld [vmem:[%s18164_s10 + $0xb0] sm:$0xff]  }
 0xe41   :  { %14091 = vmatpush3.bf16.msra.mxu0 %v17096_v33  ;;  %14098 = vmatprep.mubr.msk.bf16.mxu0 %vm180_vm0, %v15297_v50 }
 0xe42   :  { %14092 = vmatprep.subr.bf16.mxu0 %v17090_v52 }
 0xe45   :  { %14093 = vmatpush3.bf16.msra.mxu0 %v17090_v52 }
 0xe46   :  { %14094 = vmatprep.subr.bf16.mxu0 %v17124_v3 }
 0xe49   :  { %14095 = vmatpush3.bf16.msra.mxu0 %v17124_v3 }
 0xe4a   :  { %14096 = vmatprep.subr.bf16.mxu0 %v17117_v25 }
 0xe4d   :  { %14097 = vmatpush3.bf16.msra.mxu0 %v17117_v25 }
 0xe4e   :  { %15078 = vmatprep.subr.msk.bf16.mxu0 %vm5819_vm3, %v12346_v58  ;;  %v18216_v58 = vld [vmem:[#allocation6_spill] sm:$0xff] }
 0xe50   :  { %14099 = vmatmul.mubr.msk.bf16.vlgmr.msra.gmra.mrb[132].mxu0 %vm180_vm0, %v15298_v49 }
 0xe51   :  { %14103 = vmatpush3.bf16.msra.mxu0 %v7030_v19 }
 0xe52   :  { %14108 = vmatprep.subr.bf16.mxu0 %v17096_v33 }
 0xf23   :  { %v14100_v44 = vpop.f32.mrb[132].mxu0 }
 0xf24   :  { %v7009_v40 = vadd.f32 %v14100_v44, %v16978_v23  ;;  %v7000_v6 = vpop.f32.mrb[133].mxu0  ;;  %v18217_v44 = vld [vmem:[#allocation4_spill] sm:$0xff] }
 0xf25   :  { %v7001_v1 = vadd.f32 %v7000_v6, %v16974_v20  ;;  %v14101_v16 = vpop.f32.mrb[134].mxu0  ;;  %v12361_v20 = vld [vmem:[%s18166_s3 + $0x9] sm:$0x1] }
 0xf26   :  { %v7012_v56 = vadd.f32 %v14101_v16, %v16980_v22  ;;  %v7003_v5 = vpop.f32.mrb[135].mxu0  ;;  %v7017_v46 = vmax.f32 %v7009_v40, 0.0  ;;  %v7195_v23 = vsel %vm5819_vm3, %v12361_v20, 0 }
 0xf27   :  { %v7004_v0 = vadd.f32 %v7003_v5, %v16976_v38  ;;  %v7015_v54 = vmax.f32 %v7001_v1, 0.0  ;;  %v15300_v38 = vld [vmem:[%s18164_s10 + $0x98] sm:$0xff]   ;;  %v18218_v1 = vld [vmem:[#allocation7_spill] sm:$0xff] }
 0xf28   :  { %v7018_v47 = vmax.f32 %v7012_v56, 0.0  ;;  %v18219_v5 = vld [vmem:[#allocation5_spill] sm:$0xff] }
 0xf29   :  { %v7016_v18 = vmax.f32 %v7004_v0, 0.0 }
 0xf2a   :  { %v7020_v45 = vpack.c.bf16 %v7018_v47, %v7017_v46 }
 0xf2b   :  { %v7019_v43 = vpack.c.bf16 %v7016_v18, %v7015_v54 }
 0xf2d   :  { %14104 = vmatprep.mubr.msk.bf16.mxu0 %vm5589_vm2, %v7019_v43 }
 0xf2e   :  { %14105 = vmatmul.mubr.msk.bf16.vlgmr.msra.gmra.mrb[104].mxu0 %vm5589_vm2, %v7020_v45 }
 0xf2f   :  { %14109 = vmatpush3.bf16.msra.mxu0 %v17096_v33  ;;  %14116 = vmatprep.mubr.msk.bf16.mxu0 %vm180_vm0, %v15299_v37  ;;  %v15305_v37 = vld [vmem:[%s18164_s10 + $0xc0] sm:$0xff]  }
 0xf30   :  { %14110 = vmatprep.subr.bf16.mxu0 %v17090_v52 }
 0xf33   :  { %14111 = vmatpush3.bf16.msra.mxu0 %v17090_v52 }
 0xf34   :  { %14112 = vmatprep.subr.bf16.mxu0 %v17124_v3 }
 0xf37   :  { %14113 = vmatpush3.bf16.msra.mxu0 %v17124_v3 }
 0xf38   :  { %14114 = vmatprep.subr.bf16.mxu0 %v17117_v25 }
 0xf3b   :  { %14115 = vmatpush3.bf16.msra.mxu0 %v17117_v25 }
 0xf3c   :  { %15079 = vmatprep.subr.msk.bf16.mxu0 %vm5819_vm3, %v12361_v20  ;;  %v12406_v20 = vld [vmem:[%s18166_s3 + $0xc] sm:$0x1] }
 0xf3e   :  { %14117 = vmatmul.mubr.msk.bf16.vlgmr.msra.gmra.mrb[136].mxu0 %vm180_vm0, %v15300_v38  ;;  %v15306_v38 = vld [vmem:[%s18164_s10 + $0xc8] sm:$0xff]  }
 0xf3f   :  { %14121 = vmatpush3.bf16.msra.mxu0 %v7195_v23  ;;  %v7690_v23 = vsel %vm5819_vm3, %v12406_v20, 0 }
 0xf40   :  { %14126 = vmatprep.subr.bf16.mxu0 %v17096_v33 }
0x1011   :  { %v14118_v22 = vpop.f32.mrb[136].mxu0 }
0x1012   :  { %v7174_v4 = vadd.f32 %v14118_v22, %v16986_v27  ;;  %v7165_v28 = vpop.f32.mrb[137].mxu0 }
0x1013   :  { %v7166_v8 = vadd.f32 %v7165_v28, %v16982_v24  ;;  %v14119_v36 = vpop.f32.mrb[138].mxu0  ;;  %v12376_v24 = vld [vmem:[%s18166_s3 + $0xa] sm:$0x1] }
0x1014   :  { %v7177_v30 = vadd.f32 %v14119_v36, %v16988_v31  ;;  %v7168_v26 = vpop.f32.mrb[139].mxu0  ;;  %v7182_v7 = vmax.f32 %v7174_v4, 0.0  ;;  %v7360_v27 = vsel %vm5819_vm3, %v12376_v24, 0  ;;  %v18220_v4 = vld [vmem:[#allocation10_spill] sm:$0xff]  ;;  %v18221_v36 = vld [vmem:[#allocation8_spill] sm:$0xff] }
0x1015   :  { %v7169_v2 = vadd.f32 %v7168_v26, %v16984_v57  ;;  %v7180_v42 = vmax.f32 %v7166_v8, 0.0  ;;  %v15302_v57 = vld [vmem:[%s18164_s10 + $0xa8] sm:$0xff]  }
0x1016   :  { %v7183_v51 = vmax.f32 %v7177_v30, 0.0 }
0x1017   :  { %v7181_v59 = vmax.f32 %v7169_v2, 0.0  ;;  %v18222_v2 = vld [vmem:[#allocation11_spill] sm:$0xff] }
0x1018   :  { %v7185_v48 = vpack.c.bf16 %v7183_v51, %v7182_v7 }
0x1019   :  { %v7184_v62 = vpack.c.bf16 %v7181_v59, %v7180_v42  ;;  %v18223_v42 = vld [vmem:[#allocation9_spill] sm:$0xff] }
0x101b   :  { %14122 = vmatprep.mubr.msk.bf16.mxu0 %vm5589_vm2, %v7184_v62 }
0x101c   :  { %14123 = vmatmul.mubr.msk.bf16.vlgmr.msra.gmra.mrb[104].mxu0 %vm5589_vm2, %v7185_v48 }
0x101d   :  { %14127 = vmatpush3.bf16.msra.mxu0 %v17096_v33  ;;  %14134 = vmatprep.mubr.msk.bf16.mxu0 %vm180_vm0, %v15301_v11 }
0x101e   :  { %14128 = vmatprep.subr.bf16.mxu0 %v17090_v52 }
0x1021   :  { %14129 = vmatpush3.bf16.msra.mxu0 %v17090_v52 }
0x1022   :  { %14130 = vmatprep.subr.bf16.mxu0 %v17124_v3 }
0x1025   :  { %14131 = vmatpush3.bf16.msra.mxu0 %v17124_v3 }
0x1026   :  { %14132 = vmatprep.subr.bf16.mxu0 %v17117_v25 }
0x1029   :  { %14133 = vmatpush3.bf16.msra.mxu0 %v17117_v25 }
0x102a   :  { %15080 = vmatprep.subr.msk.bf16.mxu0 %vm5819_vm3, %v12376_v24 }
0x102c   :  { %14135 = vmatmul.mubr.msk.bf16.vlgmr.msra.gmra.mrb[140].mxu0 %vm180_vm0, %v15302_v57 }
0x102d   :  { %14139 = vmatpush3.bf16.msra.mxu0 %v7360_v27 }
0x102e   :  { %14144 = vmatprep.subr.bf16.mxu0 %v17096_v33 }
0x10ff   :  { %v14136_v31 = vpop.f32.mrb[140].mxu0 }
0x1100   :  { %v7339_v12 = vadd.f32 %v14136_v31, %v16994_v39  ;;  %v7330_v21 = vpop.f32.mrb[141].mxu0  ;;  %v15304_v39 = vld [vmem:[%s18164_s10 + $0xb8] sm:$0xff]   ;;  %v15307_v31 = vld [vmem:[%s18164_s10 + $0xd0] sm:$0xff]  }
0x1101   :  { %v7331_v34 = vadd.f32 %v7330_v21, %v16990_v32  ;;  %v14137_v55 = vpop.f32.mrb[142].mxu0  ;;  %v12391_v32 = vld [vmem:[%s18166_s3 + $0xb] sm:$0x1]  ;;  %v15308_v21 = vld [vmem:[%s18164_s10 + $0xd8] sm:$0xff]  }
0x1102   :  { %v7342_v35 = vadd.f32 %v14137_v55, %v18214_v14  ;;  %v7333_v9 = vpop.f32.mrb[143].mxu0  ;;  %v7347_v61 = vmax.f32 %v7339_v12, 0.0  ;;  %v7525_v29 = vsel %vm5819_vm3, %v12391_v32, 0  ;;  %v12421_v12 = vld [vmem:[%s18166_s3 + $0xd] sm:$0x1]  ;;  %v18224_v14 = vld [vmem:[#allocation14_spill] sm:$0xff] }
0x1103   :  { %v7334_v60 = vadd.f32 %v7333_v9, %v18215_v53  ;;  %v7345_v13 = vmax.f32 %v7331_v34, 0.0  ;;  %v7855_v34 = vsel %vm5819_vm3, %v12421_v12, 0  ;;  %v18225_v53 = vld [vmem:[#allocation12_spill] sm:$0xff] }
0x1104   :  { %v7348_v10 = vmax.f32 %v7342_v35, 0.0 }
0x1105   :  { %v7346_v15 = vmax.f32 %v7334_v60, 0.0 }
0x1106   :  { %v7350_v17 = vpack.c.bf16 %v7348_v10, %v7347_v61  ;;  %v18226_v10 = vld [vmem:[#allocation15_spill] sm:$0xff] }
0x1107   :  { %v7349_v41 = vpack.c.bf16 %v7346_v15, %v7345_v13 }
0x1109   :  { %14140 = vmatprep.mubr.msk.bf16.mxu0 %vm5589_vm2, %v7349_v41 }
0x110a   :  { %14141 = vmatmul.mubr.msk.bf16.vlgmr.msra.gmra.mrb[104].mxu0 %vm5589_vm2, %v7350_v17  ;;  %v18227_v17 = vld [vmem:[#allocation13_spill] sm:$0xff] }
0x110b   :  { %14145 = vmatpush3.bf16.msra.mxu0 %v17096_v33  ;;  %14152 = vmatprep.mubr.msk.bf16.mxu0 %vm180_vm0, %v15303_v63 }
0x110c   :  { %14146 = vmatprep.subr.bf16.mxu0 %v17090_v52 }
0x110f   :  { %14147 = vmatpush3.bf16.msra.mxu0 %v17090_v52 }
0x1110   :  { %14148 = vmatprep.subr.bf16.mxu0 %v17124_v3 }
0x1113   :  { %14149 = vmatpush3.bf16.msra.mxu0 %v17124_v3 }
0x1114   :  { %14150 = vmatprep.subr.bf16.mxu0 %v17117_v25 }
0x1117   :  { %14151 = vmatpush3.bf16.msra.mxu0 %v17117_v25 }
0x1118   :  { %15081 = vmatprep.subr.msk.bf16.mxu0 %vm5819_vm3, %v12391_v32 }
0x111a   :  { %14153 = vmatmul.mubr.msk.bf16.vlgmr.msra.gmra.mrb[144].mxu0 %vm180_vm0, %v15304_v39 }
0x111b   :  { %14157 = vmatpush3.bf16.msra.mxu0 %v7525_v29 }
0x111c   :  { %14162 = vmatprep.subr.bf16.mxu0 %v17096_v33 }
0x11ed   :  { %v14154_v50 = vpop.f32.mrb[144].mxu0 }
0x11ee   :  { %v7504_v49 = vadd.f32 %v14154_v50, %v18216_v58  ;;  %v7495_v19 = vpop.f32.mrb[145].mxu0 }
0x11ef   :  { %v7496_v40 = vadd.f32 %v7495_v19, %v18217_v44  ;;  %v14155_v6 = vpop.f32.mrb[146].mxu0  ;;  %v12436_v19 = vld [vmem:[%s18166_s3 + $0xe] sm:$0x1] }
0x11f0   :  { %v7507_v16 = vadd.f32 %v14155_v6, %v18218_v1  ;;  %v7498_v56 = vpop.f32.mrb[147].mxu0  ;;  %v7512_v46 = vmax.f32 %v7504_v49, 0.0  ;;  %v15309_v49 = vld [vmem:[%s18164_s10 + $0xe0] sm:$0xff]   ;;  %v15310_v44 = vld [vmem:[%s18164_s10 + $0xe8] sm:$0xff]  }
0x11f1   :  { %v7499_v0 = vadd.f32 %v7498_v56, %v18219_v5  ;;  %v7510_v54 = vmax.f32 %v7496_v40, 0.0  ;;  %v8020_v40 = vsel %vm5819_vm3, %v12436_v19, 0  ;;  %v18228_v1 = vld [vmem:[#allocation18_spill] sm:$0xff]  ;;  %v18229_v5 = vld [vmem:[#allocation16_spill] sm:$0xff] }
0x11f2   :  { %v7513_v47 = vmax.f32 %v7507_v16, 0.0 }
0x11f3   :  { %v7511_v18 = vmax.f32 %v7499_v0, 0.0 }
0x11f4   :  { %v7515_v45 = vpack.c.bf16 %v7513_v47, %v7512_v46  ;;  %v18230_v47 = vld [vmem:[#allocation19_spill] sm:$0xff] }
0x11f5   :  { %v7514_v43 = vpack.c.bf16 %v7511_v18, %v7510_v54 }
0x11f7   :  { %14158 = vmatprep.mubr.msk.bf16.mxu0 %vm5589_vm2, %v7514_v43 }
0x11f8   :  { %14159 = vmatmul.mubr.msk.bf16.vlgmr.msra.gmra.mrb[104].mxu0 %vm5589_vm2, %v7515_v45  ;;  %v18231_v45 = vld [vmem:[#allocation17_spill] sm:$0xff] }
0x11f9   :  { %14163 = vmatpush3.bf16.msra.mxu0 %v17096_v33  ;;  %14170 = vmatprep.mubr.msk.bf16.mxu0 %vm180_vm0, %v15305_v37 }
0x11fa   :  { %14164 = vmatprep.subr.bf16.mxu0 %v17090_v52 }
0x11fd   :  { %14165 = vmatpush3.bf16.msra.mxu0 %v17090_v52 }
0x11fe   :  { %14166 = vmatprep.subr.bf16.mxu0 %v17124_v3 }
0x1201   :  { %14167 = vmatpush3.bf16.msra.mxu0 %v17124_v3 }
0x1202   :  { %14168 = vmatprep.subr.bf16.mxu0 %v17117_v25 }
0x1205   :  { %14169 = vmatpush3.bf16.msra.mxu0 %v17117_v25 }
0x1206   :  { %15082 = vmatprep.subr.msk.bf16.mxu0 %vm5819_vm3, %v12406_v20 }
0x1208   :  { %14171 = vmatmul.mubr.msk.bf16.vlgmr.msra.gmra.mrb[148].mxu0 %vm180_vm0, %v15306_v38 }
0x1209   :  { %14175 = vmatpush3.bf16.msra.mxu0 %v7690_v23 }
0x120a   :  { %14180 = vmatprep.subr.bf16.mxu0 %v17096_v33 }
0x12db   :  { %v14172_v22 = vpop.f32.mrb[148].mxu0 }
0x12dc   :  { %v7669_v28 = vadd.f32 %v14172_v22, %v18220_v4  ;;  %v7660_v8 = vpop.f32.mrb[149].mxu0 }
0x12dd   :  { %v7661_v30 = vadd.f32 %v7660_v8, %v18221_v36  ;;  %v14173_v26 = vpop.f32.mrb[150].mxu0  ;;  %v15312_v8 = vld [vmem:[%s18164_s10 + $0xf8] sm:$0xff]   ;;  %v18232_v36 = vld [vmem:[#allocation22_spill] sm:$0xff] }
0x12de   :  { %v7672_v7 = vadd.f32 %v14173_v26, %v18222_v2  ;;  %v7663_v51 = vpop.f32.mrb[151].mxu0  ;;  %v7677_v48 = vmax.f32 %v7669_v28, 0.0  ;;  %v15311_v28 = vld [vmem:[%s18164_s10 + $0xf0] sm:$0xff]  }
0x12df   :  { %v7664_v59 = vadd.f32 %v7663_v51, %v18223_v42  ;;  %v7675_v11 = vmax.f32 %v7661_v30, 0.0  ;;  %v18233_v2 = vld [vmem:[#allocation20_spill] sm:$0xff]  ;;  %v18234_v42 = vld [vmem:[#allocation23_spill] sm:$0xff] }
0x12e0   :  { %v7678_v62 = vmax.f32 %v7672_v7, 0.0 }
0x12e1   :  { %v7676_v24 = vmax.f32 %v7664_v59, 0.0 }
0x12e2   :  { %v7680_v57 = vpack.c.bf16 %v7678_v62, %v7677_v48  ;;  %v18235_v48 = vld [vmem:[#allocation21_spill] sm:$0xff] }
0x12e3   :  { %v7679_v27 = vpack.c.bf16 %v7676_v24, %v7675_v11 }
0x12e5   :  { %14176 = vmatprep.mubr.msk.bf16.mxu0 %vm5589_vm2, %v7679_v27 }
0x12e6   :  { %14177 = vmatmul.mubr.msk.bf16.vlgmr.msra.gmra.mrb[104].mxu0 %vm5589_vm2, %v7680_v57 }
0x12e7   :  { %14181 = vmatpush3.bf16.msra.mxu0 %v17096_v33  ;;  %14188 = vmatprep.mubr.msk.bf16.mxu0 %vm180_vm0, %v15307_v31 }
0x12e8   :  { %14182 = vmatprep.subr.bf16.mxu0 %v17090_v52 }
0x12eb   :  { %14183 = vmatpush3.bf16.msra.mxu0 %v17090_v52 }
0x12ec   :  { %14184 = vmatprep.subr.bf16.mxu0 %v17124_v3 }
0x12ef   :  { %14185 = vmatpush3.bf16.msra.mxu0 %v17124_v3 }
0x12f0   :  { %14186 = vmatprep.subr.bf16.mxu0 %v17117_v25 }
0x12f3   :  { %14187 = vmatpush3.bf16.msra.mxu0 %v17117_v25 }
0x12f4   :  { %15083 = vmatprep.subr.msk.bf16.mxu0 %vm5819_vm3, %v12421_v12 }
0x12f6   :  { %14189 = vmatmul.mubr.msk.bf16.vlgmr.msra.gmra.mrb[152].mxu0 %vm180_vm0, %v15308_v21  ;;  %v15313_v21 = vld [vmem:[%s18167_s12] sm:$0xff]  }
0x12f7   :  { %14193 = vmatpush3.bf16.msra.mxu0 %v7855_v34 }
0x12f8   :  { %14198 = vmatprep.subr.bf16.mxu0 %v17096_v33 }
0x13c9   :  { %v14190_v55 = vpop.f32.mrb[152].mxu0 }
0x13ca   :  { %v7834_v35 = vadd.f32 %v14190_v55, %v18224_v14  ;;  %v7825_v9 = vpop.f32.mrb[153].mxu0 }
0x13cb   :  { %v7826_v60 = vadd.f32 %v7825_v9, %v18225_v53  ;;  %v14191_v61 = vpop.f32.mrb[154].mxu0 }
0x13cc   :  { %v7837_v13 = vadd.f32 %v14191_v61, %v18226_v10  ;;  %v7828_v15 = vpop.f32.mrb[155].mxu0  ;;  %v7842_v63 = vmax.f32 %v7834_v35, 0.0  ;;  %v15315_v61 = vld [vmem:[%s18167_s12 + $0x10] sm:$0xff]   ;;  %v15316_v10 = vld [vmem:[%s18167_s12 + $0x18] sm:$0xff]  }
0x13cd   :  { %v7829_v41 = vadd.f32 %v7828_v15, %v18227_v17  ;;  %v7840_v39 = vmax.f32 %v7826_v60, 0.0  ;;  %v15314_v60 = vld [vmem:[%s18167_s12 + $0x8] sm:$0xff]   ;;  %v15319_v17 = vld [vmem:[%s18167_s12 + $0x30] sm:$0xff]  }
0x13ce   :  { %v7843_v32 = vmax.f32 %v7837_v13, 0.0  ;;  %v15317_v13 = vld [vmem:[%s18167_s12 + $0x20] sm:$0xff]   ;;  %v15318_v15 = vld [vmem:[%s18167_s12 + $0x28] sm:$0xff]  }
0x13cf   :  { %v7841_v29 = vmax.f32 %v7829_v41, 0.0  ;;  %v15320_v41 = vld [vmem:[%s18167_s12 + $0x38] sm:$0xff]  }
0x13d0   :  { %v7845_v50 = vpack.c.bf16 %v7843_v32, %v7842_v63  ;;  %v15321_v63 = vld [vmem:[%s18167_s12 + $0x40] sm:$0xff]   ;;  %v15322_v32 = vld [vmem:[%s18167_s12 + $0x48] sm:$0xff]  }
0x13d1   :  { %v7844_v58 = vpack.c.bf16 %v7841_v29, %v7840_v39  ;;  %v15323_v39 = vld [vmem:[%s18167_s12 + $0x50] sm:$0xff]   ;;  %v15324_v29 = vld [vmem:[%s18167_s12 + $0x58] sm:$0xff]  }
0x13d3   :  { %14194 = vmatprep.mubr.msk.bf16.mxu0 %vm5589_vm2, %v7844_v58  ;;  %v15326_v58 = vld [vmem:[%s18167_s12 + $0x68] sm:$0xff]  }
0x13d4   :  { %14195 = vmatmul.mubr.msk.bf16.vlgmr.msra.gmra.mrb[104].mxu0 %vm5589_vm2, %v7845_v50  ;;  %v15325_v50 = vld [vmem:[%s18167_s12 + $0x60] sm:$0xff]  }
0x13d5   :  { %14199 = vmatpush3.bf16.msra.mxu0 %v17096_v33  ;;  %14206 = vmatprep.mubr.msk.bf16.mxu0 %vm180_vm0, %v15309_v49  ;;  %v15327_v49 = vld [vmem:[%s18167_s12 + $0x70] sm:$0xff]  }
0x13d6   :  { %14200 = vmatprep.subr.bf16.mxu0 %v17090_v52 }
0x13d9   :  { %14201 = vmatpush3.bf16.msra.mxu0 %v17090_v52 }
0x13da   :  { %14202 = vmatprep.subr.bf16.mxu0 %v17124_v3 }
0x13dd   :  { %14203 = vmatpush3.bf16.msra.mxu0 %v17124_v3 }
0x13de   :  { %14204 = vmatprep.subr.bf16.mxu0 %v17117_v25 }
0x13e1   :  { %14205 = vmatpush3.bf16.msra.mxu0 %v17117_v25 }
0x13e2   :  { %15084 = vmatprep.subr.msk.bf16.mxu0 %vm5819_vm3, %v12436_v19  ;;  %v15328_v19 = vld [vmem:[%s18167_s12 + $0x78] sm:$0xff]  }
0x13e4   :  { %14207 = vmatmul.mubr.msk.bf16.vlgmr.msra.gmra.mrb[156].mxu0 %vm180_vm0, %v15310_v44  ;;  %v15329_v44 = vld [vmem:[%s18167_s12 + $0x80] sm:$0xff]  }
0x13e5   :  { %14211 = vmatpush3.bf16.msra.mxu0 %v8020_v40  ;;  %v15330_v40 = vld [vmem:[%s18167_s12 + $0x88] sm:$0xff]  }
0x13e6   :  { %14216 = vmatprep.subr.bf16.mxu0 %v17096_v33 }
0x14b7   :  { %v14208_v6 = vpop.f32.mrb[156].mxu0 }
0x14b8   :  { %v7999_v16 = vadd.f32 %v14208_v6, %v18228_v1  ;;  %v7990_v56 = vpop.f32.mrb[157].mxu0  ;;  %v15331_v6 = vld [vmem:[%s18167_s12 + $0x90] sm:$0xff]   ;;  %v15332_v1 = vld [vmem:[%s18167_s12 + $0x98] sm:$0xff]  }
0x14b9   :  { %v7991_v0 = vadd.f32 %v7990_v56, %v18229_v5  ;;  %v14209_v46 = vpop.f32.mrb[158].mxu0  ;;  %v15334_v56 = vld [vmem:[%s18167_s12 + $0xa8] sm:$0xff]   ;;  %v15335_v5 = vld [vmem:[%s18167_s12 + $0xb0] sm:$0xff]  }
0x14ba   :  { %v8002_v54 = vadd.f32 %v14209_v46, %v18230_v47  ;;  %v7993_v18 = vpop.f32.mrb[159].mxu0  ;;  %v8007_v37 = vmax.f32 %v7999_v16, 0.0  ;;  %v15333_v16 = vld [vmem:[%s18167_s12 + $0xa0] sm:$0xff]   ;;  %v15338_v47 = vld [vmem:[%s18167_s12 + $0xc8] sm:$0xff]  }
0x14bb   :  { %v7994_v43 = vadd.f32 %v7993_v18, %v18231_v45  ;;  %v8005_v38 = vmax.f32 %v7991_v0, 0.0  ;;  %v15336_v0 = vld [vmem:[%s18167_s12 + $0xb8] sm:$0xff]   ;;  %v15337_v46 = vld [vmem:[%s18167_s12 + $0xc0] sm:$0xff]   ;;  %v17691_v18 = vld [vmem:[%s18158_s1 + $0x10] sm:$0xff]  }
0x14bc   :  { %v8008_v20 = vmax.f32 %v8002_v54, 0.0  ;;  %v15339_v54 = vld [vmem:[%s18167_s12 + $0xd0] sm:$0xff]   ;;  %14310 = vmatprep.subr.bf16.mxu1 %v17691_v18  ;;  %v15340_v45 = vld [vmem:[%s18167_s12 + $0xd8] sm:$0xff]  }
0x14bd   :  { %v8006_v23 = vmax.f32 %v7994_v43, 0.0  ;;  %14311 = vmatpush3.bf16.msra.mxu1 %v17691_v18  ;;  %v17703_v43 = vld [vmem:[%s18158_s1 + $0x18] sm:$0xff]  }
0x14be   :  { %v8010_v22 = vpack.c.bf16 %v8008_v20, %v8007_v37  ;;  %v15341_v37 = vld [vmem:[%s18167_s12 + $0xe0] sm:$0xff]   ;;  %14312 = vmatprep.subr.bf16.mxu1 %v17703_v43  ;;  %v15342_v20 = vld [vmem:[%s18167_s12 + $0xe8] sm:$0xff]  }
0x14bf   :  { %v8009_v4 = vpack.c.bf16 %v8006_v23, %v8005_v38  ;;  %v15343_v38 = vld [vmem:[%s18167_s12 + $0xf0] sm:$0xff]   ;;  %v17722_v23 = vld [vmem:[%s18158_s1] sm:$0xff]  }
0x14c1   :  { %14212 = vmatprep.mubr.msk.bf16.mxu0 %vm5589_vm2, %v8009_v4  ;;  %14313 = vmatpush3.bf16.msra.mxu1 %v17703_v43  ;;  %v15345_v4 = vld [vmem:[%s18167_s12 + $0x100] sm:$0xff]  }
0x14c2   :  { %14213 = vmatmul.mubr.msk.bf16.vlgmr.msra.gmra.mrb[104].mxu0 %vm5589_vm2, %v8010_v22  ;;  %14322 = vmatprep.subr.bf16.mxu1 %v17722_v23  ;;  %v15344_v22 = vld [vmem:[%s18167_s12 + $0xf8] sm:$0xff]  }
0x14c3   :  { %14217 = vmatpush3.bf16.msra.mxu0 %v17096_v33  ;;  %14224 = vmatprep.mubr.msk.bf16.mxu0 %vm180_vm0, %v15311_v28  ;;  %v12451_v33 = vld [vmem:[%s18166_s3 + $0xf] sm:$0x1] }
0x14c4   :  { %14218 = vmatprep.subr.bf16.mxu0 %v17090_v52  ;;  %v15346_v28 = vld [vmem:[%s18167_s12 + $0x108] sm:$0xff]  }
0x14c7   :  { %14219 = vmatpush3.bf16.msra.mxu0 %v17090_v52  ;;  %v8185_v52 = vsel %vm5819_vm3, %v12451_v33, 0 }
0x14c8   :  { %14220 = vmatprep.subr.bf16.mxu0 %v17124_v3 }
0x14cb   :  { %14221 = vmatpush3.bf16.msra.mxu0 %v17124_v3 }
0x14cc   :  { %14222 = vmatprep.subr.bf16.mxu0 %v17117_v25 }
0x14cf   :  { %14223 = vmatpush3.bf16.msra.mxu0 %v17117_v25 }
0x14d0   :  { %15085 = vmatprep.subr.msk.bf16.mxu0 %vm5819_vm3, %v12451_v33  ;;  %v15348_v33 = vld [vmem:[%s18167_s12 + $0x118] sm:$0xff]  }
0x14d2   :  { %14225 = vmatmul.mubr.msk.bf16.vlgmr.msra.gmra.mrb[160].mxu0 %vm180_vm0, %v15312_v8  ;;  %v15347_v8 = vld [vmem:[%s18167_s12 + $0x110] sm:$0xff]  }
0x14d3   :  { %14229 = vmatpush3.bf16.msra.mxu0 %v8185_v52 }
0x15a5   :  { %v14226_v3 = vpop.f32.mrb[160].mxu0 }
0x15a6   :  { %v8164_v30 = vadd.f32 %v14226_v3, %v18232_v36  ;;  %v8155_v26 = vpop.f32.mrb[161].mxu0 }
0x15a7   :  { %v8156_v7 = vadd.f32 %v8155_v26, %v18233_v2  ;;  %v14227_v51 = vpop.f32.mrb[162].mxu0 }
0x15a8   :  { %v8167_v25 = vadd.f32 %v14227_v51, %v18234_v42  ;;  %v8158_v59 = vpop.f32.mrb[163].mxu0  ;;  %v8172_v11 = vmax.f32 %v8164_v30, 0.0 }
0x15a9   :  { %v8159_v62 = vadd.f32 %v8158_v59, %v18235_v48  ;;  %v8170_v57 = vmax.f32 %v8156_v7, 0.0 }
0x15aa   :  { %v8173_v24 = vmax.f32 %v8167_v25, 0.0 }
0x15ab   :  { %v8171_v27 = vmax.f32 %v8159_v62, 0.0 }
0x15ac   :  { %v8175_v31 = vpack.c.bf16 %v8173_v24, %v8172_v11 }
0x15ad   :  { %v8174_v12 = vpack.c.bf16 %v8171_v27, %v8170_v57 }
0x15af   :  { %14230 = vmatprep.mubr.msk.bf16.mxu0 %vm5589_vm2, %v8174_v12  ;;  %v17749_v12 = vld [vmem:[%s18158_s1 + $0x8] sm:$0xff]  }
0x15b0   :  { %14231 = vmatmul.mubr.msk.bf16.vlgmr.msra.gmra.mrb[104].mxu0 %vm5589_vm2, %v8175_v31 }
0x15b1   :  { %14238 = vmatprep.mubr.msk.bf16.mxu0 %vm427_vm1, %v15313_v21 }
0x1683   :  { %v14232_v34 = vpop.f32.mrb[104].mxu0 }
0x1684   :  { %v8221_v55 = vpop.f32.mrb[105].mxu0 }
0x1685   :  { %v14233_v14 = vpop.f32.mrb[106].mxu0 }
0x1686   :  { %v8241_v35 = vpack.c.bf16 %v14233_v14, %v14232_v34  ;;  %v8224_v9 = vpop.f32.mrb[107].mxu0 }
0x1687   :  { %v8240_v53 = vpack.c.bf16 %v8224_v9, %v8221_v55  ;;  %v17758_v55 = vld [vmem:[%s18158_s1 + $0x20] sm:$0xff]  }
0x1689   :  { %14234 = vmatprep.subr.bf16.mxu0 %v8240_v53 }
0x168a   :  { %14235 = vmatpush3.bf16.msra.mxu0 %v8240_v53 }
0x168b   :  { %14236 = vmatprep.subr.bf16.mxu0 %v8241_v35 }
0x168e   :  { %14237 = vmatpush3.bf16.msra.mxu0 %v8241_v35 }
0x1691   :  { %14239 = vmatmul.mubr.msk.bf16.vlgmr.msra.gmra.mrb[164].mxu0 %vm427_vm1, %v15314_v60 }
0x1692   :  { %14242 = vmatprep.mubr.msk.bf16.mxu0 %vm427_vm1, %v15315_v61 }
0x1699   :  { %14243 = vmatmul.mubr.msk.bf16.gmra.mrb[168].mxu0 %vm427_vm1, %v15316_v10 }
0x169a   :  { %14246 = vmatprep.mubr.msk.bf16.mxu0 %vm427_vm1, %v15317_v13 }
0x16a1   :  { %14247 = vmatmul.mubr.msk.bf16.gmra.mrb[172].mxu0 %vm427_vm1, %v15318_v15 }
0x16a2   :  { %14250 = vmatprep.mubr.msk.bf16.mxu0 %vm427_vm1, %v15319_v17 }
0x16a9   :  { %14251 = vmatmul.mubr.msk.bf16.gmra.mrb[176].mxu0 %vm427_vm1, %v15320_v41  ;;  %v17768_v41 = vld [vmem:[%s18158_s1 + $0x28] sm:$0xff]  }
0x16aa   :  { %14254 = vmatprep.mubr.msk.bf16.mxu0 %vm427_vm1, %v15321_v63 }
0x16b1   :  { %14255 = vmatmul.mubr.msk.bf16.gmra.mrb[180].mxu0 %vm427_vm1, %v15322_v32 }
0x16b2   :  { %14258 = vmatprep.mubr.msk.bf16.mxu0 %vm427_vm1, %v15323_v39  ;;  %v17777_v39 = vld [vmem:[%s18158_s1 + $0x30] sm:$0xff]  }
0x16b9   :  { %14259 = vmatmul.mubr.msk.bf16.gmra.mrb[184].mxu0 %vm427_vm1, %v15324_v29 }
0x16ba   :  { %14262 = vmatprep.mubr.msk.bf16.mxu0 %vm427_vm1, %v15325_v50 }
0x16c1   :  { %14263 = vmatmul.mubr.msk.bf16.gmra.mrb[188].mxu0 %vm427_vm1, %v15326_v58 }
0x16c2   :  { %14266 = vmatprep.mubr.msk.bf16.mxu0 %vm427_vm1, %v15327_v49 }
0x16c9   :  { %14267 = vmatmul.mubr.msk.bf16.gmra.mrb[192].mxu0 %vm427_vm1, %v15328_v19 }
0x16ca   :  { %14270 = vmatprep.mubr.msk.bf16.mxu0 %vm427_vm1, %v15329_v44 }
0x16d1   :  { %14271 = vmatmul.mubr.msk.bf16.gmra.mrb[196].mxu0 %vm427_vm1, %v15330_v40 }
0x16d2   :  { %14274 = vmatprep.mubr.msk.bf16.mxu0 %vm427_vm1, %v15331_v6 }
0x16d9   :  { %14275 = vmatmul.mubr.msk.bf16.gmra.mrb[200].mxu0 %vm427_vm1, %v15332_v1 }
0x16da   :  { %14278 = vmatprep.mubr.msk.bf16.mxu0 %vm427_vm1, %v15333_v16 }
0x16e1   :  { %14279 = vmatmul.mubr.msk.bf16.gmra.mrb[204].mxu0 %vm427_vm1, %v15334_v56  ;;  %v17786_v56 = vld [vmem:[%s18158_s1 + $0x38] sm:$0xff]  }
0x16e2   :  { %14282 = vmatprep.mubr.msk.bf16.mxu0 %vm427_vm1, %v15335_v5 }
0x16e9   :  { %14283 = vmatmul.mubr.msk.bf16.gmra.mrb[208].mxu0 %vm427_vm1, %v15336_v0 }
0x16ea   :  { %14286 = vmatprep.mubr.msk.bf16.mxu0 %vm427_vm1, %v15337_v46  ;;  %v17795_v46 = vld [vmem:[%s18158_s1 + $0x40] sm:$0xff]  }
0x16f1   :  { %14287 = vmatmul.mubr.msk.bf16.gmra.mrb[212].mxu0 %vm427_vm1, %v15338_v47 }
0x16f2   :  { %14290 = vmatprep.mubr.msk.bf16.mxu0 %vm427_vm1, %v15339_v54 }
0x16f9   :  { %14291 = vmatmul.mubr.msk.bf16.gmra.mrb[216].mxu0 %vm427_vm1, %v15340_v45 }
0x16fa   :  { %14294 = vmatprep.mubr.msk.bf16.mxu0 %vm427_vm1, %v15341_v37 }
0x1701   :  { %14295 = vmatmul.mubr.msk.bf16.gmra.mrb[220].mxu0 %vm427_vm1, %v15342_v20 }
0x1702   :  { %14298 = vmatprep.mubr.msk.bf16.mxu0 %vm427_vm1, %v15343_v38 }
0x1709   :  { %14299 = vmatmul.mubr.msk.bf16.gmra.mrb[224].mxu0 %vm427_vm1, %v15344_v22 }
0x170a   :  { %14302 = vmatprep.mubr.msk.bf16.mxu0 %vm427_vm1, %v15345_v4 }
0x1711   :  { %14303 = vmatmul.mubr.msk.bf16.gmra.mrb[228].mxu0 %vm427_vm1, %v15346_v28 }
0x1712   :  { %14306 = vmatprep.mubr.msk.bf16.mxu0 %vm427_vm1, %v15347_v8 }
0x1719   :  { %14307 = vmatmul.mubr.msk.bf16.gmra.mrb[232].mxu0 %vm427_vm1, %v15348_v33  ;;  %v17804_v33 = vld [vmem:[%s18158_s1 + $0x48] sm:$0xff]  }
0x1764   :  { %v14240_v52 = vpop.f32.mrb[164].mxu0 }
0x1765   :  { %v8636_v3 = vpop.f32.mrb[165].mxu0 }
0x1766   :  { %v14241_v36 = vpop.f32.mrb[166].mxu0 }
0x1767   :  { %v8924_v30 = vpack.c.bf16 %v14241_v36, %v14240_v52  ;;  %v8639_v26 = vpop.f32.mrb[167].mxu0  ;;  %v17813_v36 = vld [vmem:[%s18158_s1 + $0x50] sm:$0xff]  }
0x1768   :  { %v8923_v2 = vpack.c.bf16 %v8639_v26, %v8636_v3 }
0x176c   :  { %v14244_v7 = vpop.f32.mrb[168].mxu0 }
0x176d   :  { %v8652_v51 = vpop.f32.mrb[169].mxu0 }
0x176e   :  { %v14245_v42 = vpop.f32.mrb[170].mxu0 }
0x176f   :  { %v8926_v25 = vpack.c.bf16 %v14245_v42, %v14244_v7  ;;  %v8655_v59 = vpop.f32.mrb[171].mxu0 }
0x1770   :  { %v8925_v48 = vpack.c.bf16 %v8655_v59, %v8652_v51 }
0x1774   :  { %v14248_v62 = vpop.f32.mrb[172].mxu0 }
0x1775   :  { %v8668_v11 = vpop.f32.mrb[173].mxu0 }
0x1776   :  { %v14249_v24 = vpop.f32.mrb[174].mxu0 }
0x1777   :  { %v8928_v57 = vpack.c.bf16 %v14249_v24, %v14248_v62  ;;  %v8671_v27 = vpop.f32.mrb[175].mxu0 }
0x1778   :  { %v8927_v31 = vpack.c.bf16 %v8671_v27, %v8668_v11  ;;  %v17822_v11 = vld [vmem:[%s18158_s1 + $0x58] sm:$0xff]   ;;  %v17831_v27 = vld [vmem:[%s18158_s1 + $0x60] sm:$0xff]  }
0x177a   :  { %14314 = vmatprep.mubr.msk.bf16.mxu1 %vm427_vm1, %v8927_v31 }
0x177b   :  { %14315 = vmatmul.mubr.msk.bf16.vlgmr.msra.gmra.mrb[44].mxu1 %vm427_vm1, %v8928_v57 }
0x177c   :  { %v14252_v21 = vpop.f32.mrb[176].mxu0  ;;  %14323 = vmatpush3.bf16.msra.mxu1 %v17722_v23 }
0x177d   :  { %v8684_v34 = vpop.f32.mrb[177].mxu0  ;;  %14324 = vmatprep.subr.bf16.mxu1 %v17749_v12 }
0x177e   :  { %v14253_v14 = vpop.f32.mrb[178].mxu0 }
0x177f   :  { %v8930_v35 = vpack.c.bf16 %v14253_v14, %v14252_v21  ;;  %v8687_v9 = vpop.f32.mrb[179].mxu0 }
0x1780   :  { %v8929_v53 = vpack.c.bf16 %v8687_v9, %v8684_v34  ;;  %14325 = vmatpush3.bf16.msra.mxu1 %v17749_v12 }
0x1781   :  { %14334 = vmatprep.subr.bf16.mxu1 %v17758_v55 }
0x1782   :  { %14318 = vmatprep.mubr.msk.bf16.mxu1 %vm427_vm1, %v8929_v53 }
0x1783   :  { %14319 = vmatmul.mubr.msk.bf16.gmra.mrb[48].mxu1 %vm427_vm1, %v8930_v35 }
0x1784   :  { %14326 = vmatprep.mubr.msk.bf16.mxu1 %vm427_vm1, %v8923_v2  ;;  %v14256_v60 = vpop.f32.mrb[180].mxu0 }
0x1785   :  { %v8700_v61 = vpop.f32.mrb[181].mxu0 }
0x1786   :  { %v14257_v10 = vpop.f32.mrb[182].mxu0 }
0x1787   :  { %v8932_v13 = vpack.c.bf16 %v14257_v10, %v14256_v60  ;;  %v8703_v15 = vpop.f32.mrb[183].mxu0 }
0x1788   :  { %v8931_v17 = vpack.c.bf16 %v8703_v15, %v8700_v61 }
0x178b   :  { %14327 = vmatmul.mubr.msk.bf16.vlgmr.msra.gmra.mrb[44].mxu1 %vm427_vm1, %v8924_v30 }
0x178c   :  { %14330 = vmatprep.mubr.msk.bf16.mxu1 %vm427_vm1, %v8925_v48  ;;  %14335 = vmatpush3.bf16.msra.mxu1 %v17758_v55  ;;  %v14260_v63 = vpop.f32.mrb[184].mxu0 }
0x178d   :  { %14336 = vmatprep.subr.bf16.mxu1 %v17768_v41  ;;  %v8716_v32 = vpop.f32.mrb[185].mxu0 }
0x178e   :  { %v14261_v29 = vpop.f32.mrb[186].mxu0 }
0x178f   :  { %v8934_v50 = vpack.c.bf16 %v14261_v29, %v14260_v63  ;;  %v8719_v58 = vpop.f32.mrb[187].mxu0  ;;  %v17849_v63 = vld [vmem:[%s18158_s1 + $0x70] sm:$0xff]  }
0x1790   :  { %14337 = vmatpush3.bf16.msra.mxu1 %v17768_v41  ;;  %v8933_v49 = vpack.c.bf16 %v8719_v58, %v8716_v32 }
0x1791   :  { %14346 = vmatprep.subr.bf16.mxu1 %v17777_v39 }
0x1793   :  { %14331 = vmatmul.mubr.msk.bf16.gmra.mrb[48].mxu1 %vm427_vm1, %v8926_v25 }
0x1794   :  { %14338 = vmatprep.mubr.msk.bf16.mxu1 %vm427_vm1, %v8931_v17  ;;  %v14264_v19 = vpop.f32.mrb[188].mxu0 }
0x1795   :  { %v8732_v44 = vpop.f32.mrb[189].mxu0 }
0x1796   :  { %v14265_v40 = vpop.f32.mrb[190].mxu0 }
0x1797   :  { %v8936_v6 = vpack.c.bf16 %v14265_v40, %v14264_v19  ;;  %v8735_v1 = vpop.f32.mrb[191].mxu0 }
0x1798   :  { %v8935_v16 = vpack.c.bf16 %v8735_v1, %v8732_v44 }
0x179b   :  { %14339 = vmatmul.mubr.msk.bf16.vlgmr.msra.gmra.mrb[44].mxu1 %vm427_vm1, %v8932_v13  ;;  %v17840_v13 = vld [vmem:[%s18158_s1 + $0x68] sm:$0xff]  }
0x179c   :  { %14342 = vmatprep.mubr.msk.bf16.mxu1 %vm427_vm1, %v8933_v49  ;;  %14347 = vmatpush3.bf16.msra.mxu1 %v17777_v39  ;;  %v14268_v5 = vpop.f32.mrb[192].mxu0 }
0x179d   :  { %14348 = vmatprep.subr.bf16.mxu1 %v17786_v56  ;;  %v8748_v0 = vpop.f32.mrb[193].mxu0 }
0x179e   :  { %v14269_v47 = vpop.f32.mrb[194].mxu0 }
0x179f   :  { %v8938_v54 = vpack.c.bf16 %v14269_v47, %v14268_v5  ;;  %v8751_v45 = vpop.f32.mrb[195].mxu0  ;;  %v17867_v47 = vld [vmem:[%s18158_s1 + $0x80] sm:$0xff]  }
0x17a0   :  { %14349 = vmatpush3.bf16.msra.mxu1 %v17786_v56  ;;  %v8937_v37 = vpack.c.bf16 %v8751_v45, %v8748_v0 }
0x17a1   :  { %14358 = vmatprep.subr.bf16.mxu1 %v17795_v46 }
0x17a3   :  { %14343 = vmatmul.mubr.msk.bf16.gmra.mrb[48].mxu1 %vm427_vm1, %v8934_v50 }
0x17a4   :  { %14350 = vmatprep.mubr.msk.bf16.mxu1 %vm427_vm1, %v8935_v16  ;;  %v14272_v20 = vpop.f32.mrb[196].mxu0  ;;  %v17858_v16 = vld [vmem:[%s18158_s1 + $0x78] sm:$0xff]  }
0x17a5   :  { %v8764_v38 = vpop.f32.mrb[197].mxu0 }
0x17a6   :  { %v14273_v22 = vpop.f32.mrb[198].mxu0 }
0x17a7   :  { %v8940_v4 = vpack.c.bf16 %v14273_v22, %v14272_v20  ;;  %v8767_v28 = vpop.f32.mrb[199].mxu0 }
0x17a8   :  { %v8939_v8 = vpack.c.bf16 %v8767_v28, %v8764_v38 }
0x17ab   :  { %14351 = vmatmul.mubr.msk.bf16.vlgmr.msra.gmra.mrb[44].mxu1 %vm427_vm1, %v8936_v6 }
0x17ac   :  { %14354 = vmatprep.mubr.msk.bf16.mxu1 %vm427_vm1, %v8937_v37  ;;  %14359 = vmatpush3.bf16.msra.mxu1 %v17795_v46  ;;  %v14276_v52 = vpop.f32.mrb[200].mxu0 }
0x17ad   :  { %14360 = vmatprep.subr.bf16.mxu1 %v17804_v33  ;;  %v8780_v3 = vpop.f32.mrb[201].mxu0 }
0x17ae   :  { %v14277_v30 = vpop.f32.mrb[202].mxu0 }
0x17af   :  { %v8942_v26 = vpack.c.bf16 %v14277_v30, %v14276_v52  ;;  %v8783_v2 = vpop.f32.mrb[203].mxu0 }
0x17b0   :  { %14361 = vmatpush3.bf16.msra.mxu1 %v17804_v33  ;;  %v8941_v7 = vpack.c.bf16 %v8783_v2, %v8780_v3  ;;  %v17876_v3 = vld [vmem:[%s18158_s1 + $0x88] sm:$0xff]  }
0x17b1   :  { %14370 = vmatprep.subr.bf16.mxu1 %v17813_v36 }
0x17b3   :  { %14355 = vmatmul.mubr.msk.bf16.gmra.mrb[48].mxu1 %vm427_vm1, %v8938_v54 }
0x17b4   :  { %14362 = vmatprep.mubr.msk.bf16.mxu1 %vm427_vm1, %v8939_v8  ;;  %v14280_v51 = vpop.f32.mrb[204].mxu0 }
0x17b5   :  { %v8796_v42 = vpop.f32.mrb[205].mxu0 }
0x17b6   :  { %v14281_v25 = vpop.f32.mrb[206].mxu0 }
0x17b7   :  { %v8944_v59 = vpack.c.bf16 %v14281_v25, %v14280_v51  ;;  %v8799_v48 = vpop.f32.mrb[207].mxu0  ;;  %v15367_v25 = vld [vmem:[%s18168_s14] sm:$0xff]  }
0x17b8   :  { %v8943_v62 = vpack.c.bf16 %v8799_v48, %v8796_v42  ;;  %14426 = vmatprep.mubr.msk.bf16.mxu0 %vm180_vm0, %v15367_v25  ;;  %v18236_v48 = vld [vmem:[#allocation26_spill] sm:$0xff] }
0x17b9   :  { %v15379_v25 = vld [vmem:[%s18168_s14 + $0x60] sm:$0xff]  }
0x17bb   :  { %14363 = vmatmul.mubr.msk.bf16.vlgmr.msra.gmra.mrb[44].mxu1 %vm427_vm1, %v8940_v4 }
0x17bc   :  { %14366 = vmatprep.mubr.msk.bf16.mxu1 %vm427_vm1, %v8941_v7  ;;  %14371 = vmatpush3.bf16.msra.mxu1 %v17813_v36  ;;  %v14284_v24 = vpop.f32.mrb[208].mxu0 }
0x17bd   :  { %14372 = vmatprep.subr.bf16.mxu1 %v17822_v11  ;;  %v8812_v57 = vpop.f32.mrb[209].mxu0 }
0x17be   :  { %v14285_v31 = vpop.f32.mrb[210].mxu0 }
0x17bf   :  { %v8946_v21 = vpack.c.bf16 %v14285_v31, %v14284_v24  ;;  %v8815_v34 = vpop.f32.mrb[211].mxu0 }
0x17c0   :  { %14373 = vmatpush3.bf16.msra.mxu1 %v17822_v11  ;;  %v8945_v14 = vpack.c.bf16 %v8815_v34, %v8812_v57  ;;  %v18237_v57 = vld [vmem:[#allocation24_spill] sm:$0xff] }
0x17c1   :  { %14382 = vmatprep.subr.bf16.mxu1 %v17831_v27 }
0x17c3   :  { %14367 = vmatmul.mubr.msk.bf16.gmra.mrb[48].mxu1 %vm427_vm1, %v8942_v26 }
0x17c4   :  { %14374 = vmatprep.mubr.msk.bf16.mxu1 %vm427_vm1, %v8943_v62  ;;  %v14288_v35 = vpop.f32.mrb[212].mxu0 }
0x17c5   :  { %v8828_v9 = vpop.f32.mrb[213].mxu0 }
0x17c6   :  { %v14289_v53 = vpop.f32.mrb[214].mxu0 }
0x17c7   :  { %v8948_v60 = vpack.c.bf16 %v14289_v53, %v14288_v35  ;;  %v8831_v61 = vpop.f32.mrb[215].mxu0 }
0x17c8   :  { %v8947_v10 = vpack.c.bf16 %v8831_v61, %v8828_v9 }
0x17cb   :  { %14375 = vmatmul.mubr.msk.bf16.vlgmr.msra.gmra.mrb[44].mxu1 %vm427_vm1, %v8944_v59 }
0x17cc   :  { %14378 = vmatprep.mubr.msk.bf16.mxu1 %vm427_vm1, %v8945_v14  ;;  %14383 = vmatpush3.bf16.msra.mxu1 %v17831_v27  ;;  %v14292_v15 = vpop.f32.mrb[216].mxu0  ;;  %v18239_v14 = vld [vmem:[#allocation25_spill] sm:$0xff] }
0x17cd   :  { %14384 = vmatprep.subr.bf16.mxu1 %v17840_v13  ;;  %v8844_v17 = vpop.f32.mrb[217].mxu0 }
0x17ce   :  { %v14293_v32 = vpop.f32.mrb[218].mxu0 }
0x17cf   :  { %v8950_v29 = vpack.c.bf16 %v14293_v32, %v14292_v15  ;;  %v8847_v50 = vpop.f32.mrb[219].mxu0  ;;  %v18240_v32 = vld [vmem:[#allocation30_spill] sm:$0xff] }
0x17d0   :  { %14385 = vmatpush3.bf16.msra.mxu1 %v17840_v13  ;;  %v8949_v58 = vpack.c.bf16 %v8847_v50, %v8844_v17 }
0x17d1   :  { %14394 = vmatprep.subr.bf16.mxu1 %v17849_v63 }
0x17d3   :  { %14379 = vmatmul.mubr.msk.bf16.gmra.mrb[48].mxu1 %vm427_vm1, %v8946_v21  ;;  %v18238_v21 = vld [vmem:[#allocation27_spill] sm:$0xff] }
0x17d4   :  { %14386 = vmatprep.mubr.msk.bf16.mxu1 %vm427_vm1, %v8947_v10  ;;  %v14296_v49 = vpop.f32.mrb[220].mxu0 }
0x17d5   :  { %v8860_v19 = vpop.f32.mrb[221].mxu0 }
0x17d6   :  { %v14297_v44 = vpop.f32.mrb[222].mxu0 }
0x17d7   :  { %v8952_v40 = vpack.c.bf16 %v14297_v44, %v14296_v49  ;;  %v8863_v6 = vpop.f32.mrb[223].mxu0  ;;  %v18242_v44 = vld [vmem:[#allocation31_spill] sm:$0xff] }
0x17d8   :  { %v8951_v1 = vpack.c.bf16 %v8863_v6, %v8860_v19 }
0x17db   :  { %14387 = vmatmul.mubr.msk.bf16.vlgmr.msra.gmra.mrb[44].mxu1 %vm427_vm1, %v8948_v60 }
0x17dc   :  { %14390 = vmatprep.mubr.msk.bf16.mxu1 %vm427_vm1, %v8949_v58  ;;  %14395 = vmatpush3.bf16.msra.mxu1 %v17849_v63  ;;  %v14300_v5 = vpop.f32.mrb[224].mxu0  ;;  %v18241_v58 = vld [vmem:[#allocation28_spill] sm:$0xff] }
0x17dd   :  { %14396 = vmatprep.subr.bf16.mxu1 %v17858_v16  ;;  %v8876_v0 = vpop.f32.mrb[225].mxu0 }
0x17de   :  { %v14301_v54 = vpop.f32.mrb[226].mxu0 }
0x17df   :  { %v8954_v45 = vpack.c.bf16 %v14301_v54, %v14300_v5  ;;  %v8879_v37 = vpop.f32.mrb[227].mxu0 }
0x17e0   :  { %14397 = vmatpush3.bf16.msra.mxu1 %v17858_v16  ;;  %v8953_v20 = vpack.c.bf16 %v8879_v37, %v8876_v0 }
0x17e1   :  { %14406 = vmatprep.subr.bf16.mxu1 %v17867_v47 }
0x17e3   :  { %14391 = vmatmul.mubr.msk.bf16.gmra.mrb[48].mxu1 %vm427_vm1, %v8950_v29 }
0x17e4   :  { %14398 = vmatprep.mubr.msk.bf16.mxu1 %vm427_vm1, %v8951_v1  ;;  %v14304_v38 = vpop.f32.mrb[228].mxu0  ;;  %v18243_v1 = vld [vmem:[#allocation29_spill] sm:$0xff] }
0x17e5   :  { %v8892_v22 = vpop.f32.mrb[229].mxu0 }
0x17e6   :  { %v14305_v4 = vpop.f32.mrb[230].mxu0 }
0x17e7   :  { %v8956_v28 = vpack.c.bf16 %v14305_v4, %v14304_v38  ;;  %v8895_v8 = vpop.f32.mrb[231].mxu0  ;;  %v15369_v4 = vld [vmem:[%s18168_s14 + $0x10] sm:$0xff]  }
0x17e8   :  { %v8955_v52 = vpack.c.bf16 %v8895_v8, %v8892_v22  ;;  %v15368_v22 = vld [vmem:[%s18168_s14 + $0x8] sm:$0xff]   ;;  %v15371_v8 = vld [vmem:[%s18168_s14 + $0x20] sm:$0xff]  }
0x17eb   :  { %14399 = vmatmul.mubr.msk.bf16.vlgmr.msra.gmra.mrb[44].mxu1 %vm427_vm1, %v8952_v40 }
0x17ec   :  { %14402 = vmatprep.mubr.msk.bf16.mxu1 %vm427_vm1, %v8953_v20  ;;  %14407 = vmatpush3.bf16.msra.mxu1 %v17867_v47  ;;  %v14308_v30 = vpop.f32.mrb[232].mxu0 }
0x17ed   :  { %14408 = vmatprep.subr.bf16.mxu1 %v17876_v3  ;;  %v8908_v26 = vpop.f32.mrb[233].mxu0 }
0x17ee   :  { %v14309_v2 = vpop.f32.mrb[234].mxu0 }
0x17ef   :  { %v8958_v7 = vpack.c.bf16 %v14309_v2, %v14308_v30  ;;  %v8911_v51 = vpop.f32.mrb[235].mxu0  ;;  %v15373_v30 = vld [vmem:[%s18168_s14 + $0x30] sm:$0xff]   ;;  %v15375_v2 = vld [vmem:[%s18168_s14 + $0x40] sm:$0xff]  }
0x17f0   :  { %14409 = vmatpush3.bf16.msra.mxu1 %v17876_v3  ;;  %v8957_v42 = vpack.c.bf16 %v8911_v51, %v8908_v26  ;;  %v15374_v26 = vld [vmem:[%s18168_s14 + $0x38] sm:$0xff]   ;;  %v15377_v51 = vld [vmem:[%s18168_s14 + $0x50] sm:$0xff]  }
0x17f1   :  { %14498 = vmatprep.subr.bf16.mxu1 %v17691_v18 }
0x17f3   :  { %14403 = vmatmul.mubr.msk.bf16.gmra.mrb[48].mxu1 %vm427_vm1, %v8954_v45 }
0x17f4   :  { %14410 = vmatprep.mubr.msk.bf16.mxu1 %vm427_vm1, %v8955_v52  ;;  %v15372_v52 = vld [vmem:[%s18168_s14 + $0x28] sm:$0xff]  }
0x17fb   :  { %14411 = vmatmul.mubr.msk.bf16.vlgmr.msra.gmra.mrb[44].mxu1 %vm427_vm1, %v8956_v28  ;;  %v15370_v28 = vld [vmem:[%s18168_s14 + $0x18] sm:$0xff]  }
0x17fc   :  { %14414 = vmatprep.mubr.msk.bf16.mxu1 %vm427_vm1, %v8957_v42  ;;  %14499 = vmatpush3.bf16.msra.mxu1 %v17691_v18  ;;  %v15378_v42 = vld [vmem:[%s18168_s14 + $0x58] sm:$0xff]  }
0x17fd   :  { %14500 = vmatprep.subr.bf16.mxu1 %v17703_v43 }
0x1800   :  { %14501 = vmatpush3.bf16.msra.mxu1 %v17703_v43 }
0x1801   :  { %14510 = vmatprep.subr.bf16.mxu1 %v17722_v23 }
0x1803   :  { %14415 = vmatmul.mubr.msk.bf16.gmra.mrb[48].mxu1 %vm427_vm1, %v8958_v7  ;;  %v15376_v7 = vld [vmem:[%s18168_s14 + $0x48] sm:$0xff]  }
0x18ce   :  { %v14412_v59 = vpop.f32.mrb[44].mxu1 }
0x18cf   :  { %v9907_v62 = vadd.f32 %v14412_v59, %v18236_v48  ;;  %v9818_v24 = vpop.f32.mrb[45].mxu1  ;;  %v15380_v59 = vld [vmem:[%s18168_s14 + $0x68] sm:$0xff]   ;;  %v15381_v48 = vld [vmem:[%s18168_s14 + $0x70] sm:$0xff]  }
0x18d0   :  { %v9905_v18 = vadd.f32 %v18237_v57, %v9818_v24  ;;  %v14413_v31 = vpop.f32.mrb[46].mxu1  ;;  %v15383_v24 = vld [vmem:[%s18168_s14 + $0x80] sm:$0xff]   ;;  %v15384_v57 = vld [vmem:[%s18168_s14 + $0x88] sm:$0xff]  }
0x18d1   :  { %v9908_v34 = vadd.f32 %v14413_v31, %v18238_v21  ;;  %v9821_v43 = vpop.f32.mrb[47].mxu1  ;;  %v9915_v9 = vmax.f32 %v9907_v62, 0.0  ;;  %v15382_v62 = vld [vmem:[%s18168_s14 + $0x78] sm:$0xff]   ;;  %v15387_v21 = vld [vmem:[%s18168_s14 + $0xa0] sm:$0xff]  }
0x18d2   :  { %v9906_v35 = vadd.f32 %v18239_v14, %v9821_v43  ;;  %v9913_v60 = vmax.f32 %v9905_v18, 0.0  ;;  %v15385_v18 = vld [vmem:[%s18168_s14 + $0x90] sm:$0xff]   ;;  %v15386_v31 = vld [vmem:[%s18168_s14 + $0x98] sm:$0xff]  }
0x18d3   :  { %v9916_v53 = vmax.f32 %v9908_v34, 0.0  ;;  %v15388_v34 = vld [vmem:[%s18168_s14 + $0xa8] sm:$0xff]   ;;  %v15389_v43 = vld [vmem:[%s18168_s14 + $0xb0] sm:$0xff]   ;;  %v15390_v14 = vld [vmem:[%s18168_s14 + $0xb8] sm:$0xff]  }
0x18d4   :  { %v9914_v61 = vmax.f32 %v9906_v35, 0.0  ;;  %v15391_v35 = vld [vmem:[%s18168_s14 + $0xc0] sm:$0xff]  }
0x18d5   :  { %v9922_v10 = vpack.c.bf16 %v9916_v53, %v9915_v9  ;;  %v15392_v9 = vld [vmem:[%s18168_s14 + $0xc8] sm:$0xff]   ;;  %v15393_v53 = vld [vmem:[%s18168_s14 + $0xd0] sm:$0xff]  }
0x18d6   :  { %v9921_v15 = vpack.c.bf16 %v9914_v61, %v9913_v60  ;;  %v14416_v17 = vpop.f32.mrb[48].mxu1  ;;  %v15394_v60 = vld [vmem:[%s18168_s14 + $0xd8] sm:$0xff]   ;;  %v15395_v61 = vld [vmem:[%s18168_s14 + $0xe0] sm:$0xff]  }
0x18d7   :  { %v9911_v29 = vadd.f32 %v14416_v17, %v18240_v32  ;;  %v9834_v50 = vpop.f32.mrb[49].mxu1  ;;  %v15398_v17 = vld [vmem:[%s18168_s14 + $0xf8] sm:$0xff]   ;;  %v15399_v32 = vld [vmem:[%s18168_s14 + $0x100] sm:$0xff]  }
0x18d8   :  { %v9909_v49 = vadd.f32 %v18241_v58, %v9834_v50  ;;  %v14417_v19 = vpop.f32.mrb[50].mxu1  ;;  %14418 = vmatprep.subr.bf16.mxu0 %v9921_v15  ;;  %v15401_v50 = vld [vmem:[%s18168_s14 + $0x110] sm:$0xff]   ;;  %v15402_v58 = vld [vmem:[%s18168_s14 + $0x118] sm:$0xff]  }
0x18d9   :  { %v9912_v40 = vadd.f32 %v14417_v19, %v18242_v44  ;;  %v9837_v6 = vpop.f32.mrb[51].mxu1  ;;  %14419 = vmatpush3.bf16.msra.mxu0 %v9921_v15  ;;  %v9919_v0 = vmax.f32 %v9911_v29, 0.0  ;;  %v15397_v15 = vld [vmem:[%s18168_s14 + $0xf0] sm:$0xff]   ;;  %v15400_v29 = vld [vmem:[%s18168_s14 + $0x108] sm:$0xff]  }
0x18da   :  { %v9910_v5 = vadd.f32 %v18243_v1, %v9837_v6  ;;  %14420 = vmatprep.subr.bf16.mxu0 %v9922_v10  ;;  %v9917_v45 = vmax.f32 %v9909_v49, 0.0 }
0x18db   :  { %v9920_v54 = vmax.f32 %v9912_v40, 0.0 }
0x18dc   :  { %v9918_v37 = vmax.f32 %v9910_v5, 0.0 }
0x18dd   :  { %v9924_v20 = vpack.c.bf16 %v9920_v54, %v9919_v0  ;;  %14421 = vmatpush3.bf16.msra.mxu0 %v9922_v10  ;;  %v15396_v10 = vld [vmem:[%s18168_s14 + $0xe8] sm:$0xff]  }
0x18de   :  { %v9923_v38 = vpack.c.bf16 %v9918_v37, %v9917_v45 }
0x18e0   :  { %14422 = vmatprep.subr.bf16.mxu0 %v9923_v38 }
0x18e1   :  { %14423 = vmatpush3.bf16.msra.mxu0 %v9923_v38 }
0x18e2   :  { %14424 = vmatprep.subr.bf16.mxu0 %v9924_v20 }
0x18e5   :  { %14425 = vmatpush3.bf16.msra.mxu0 %v9924_v20 }
0x18e8   :  { %14427 = vmatmul.mubr.msk.bf16.vlgmr.msra.gmra.mrb[236].mxu0 %vm180_vm0, %v15368_v22 }
0x18e9   :  { %14430 = vmatprep.mubr.msk.bf16.mxu0 %vm180_vm0, %v15369_v4 }
0x18f0   :  { %14431 = vmatmul.mubr.msk.bf16.gmra.mrb[240].mxu0 %vm180_vm0, %v15370_v28 }
0x18f1   :  { %14434 = vmatprep.mubr.msk.bf16.mxu0 %vm180_vm0, %v15371_v8 }
0x18f8   :  { %14435 = vmatmul.mubr.msk.bf16.gmra.mrb[244].mxu0 %vm180_vm0, %v15372_v52 }
0x18f9   :  { %14438 = vmatprep.mubr.msk.bf16.mxu0 %vm180_vm0, %v15373_v30 }
0x1900   :  { %14439 = vmatmul.mubr.msk.bf16.gmra.mrb[248].mxu0 %vm180_vm0, %v15374_v26 }
0x1901   :  { %14442 = vmatprep.mubr.msk.bf16.mxu0 %vm180_vm0, %v15375_v2 }
0x1908   :  { %14443 = vmatmul.mubr.msk.bf16.gmra.mrb[252].mxu0 %vm180_vm0, %v15376_v7 }
0x1909   :  { %14446 = vmatprep.mubr.msk.bf16.mxu0 %vm180_vm0, %v15377_v51 }
0x1910   :  { %14447 = vmatmul.mubr.msk.bf16.gmra.mrb[0].mxu0 %vm180_vm0, %v15378_v42 }
0x1911   :  { %14450 = vmatprep.mubr.msk.bf16.mxu0 %vm180_vm0, %v15379_v25 }
0x1918   :  { %14451 = vmatmul.mubr.msk.bf16.gmra.mrb[4].mxu0 %vm180_vm0, %v15380_v59 }
0x1919   :  { %14454 = vmatprep.mubr.msk.bf16.mxu0 %vm180_vm0, %v15381_v48 }
0x1920   :  { %14455 = vmatmul.mubr.msk.bf16.gmra.mrb[8].mxu0 %vm180_vm0, %v15382_v62 }
0x1921   :  { %14458 = vmatprep.mubr.msk.bf16.mxu0 %vm180_vm0, %v15383_v24 }
0x1928   :  { %14459 = vmatmul.mubr.msk.bf16.gmra.mrb[12].mxu0 %vm180_vm0, %v15384_v57 }
0x1929   :  { %14462 = vmatprep.mubr.msk.bf16.mxu0 %vm180_vm0, %v15385_v18 }
0x1930   :  { %14463 = vmatmul.mubr.msk.bf16.gmra.mrb[16].mxu0 %vm180_vm0, %v15386_v31 }
0x1931   :  { %14466 = vmatprep.mubr.msk.bf16.mxu0 %vm180_vm0, %v15387_v21 }
0x1938   :  { %14467 = vmatmul.mubr.msk.bf16.gmra.mrb[20].mxu0 %vm180_vm0, %v15388_v34 }
0x1939   :  { %14470 = vmatprep.mubr.msk.bf16.mxu0 %vm180_vm0, %v15389_v43 }
0x1940   :  { %14471 = vmatmul.mubr.msk.bf16.gmra.mrb[24].mxu0 %vm180_vm0, %v15390_v14 }
0x1941   :  { %14474 = vmatprep.mubr.msk.bf16.mxu0 %vm180_vm0, %v15391_v35 }
0x1948   :  { %14475 = vmatmul.mubr.msk.bf16.gmra.mrb[28].mxu0 %vm180_vm0, %v15392_v9 }
0x1949   :  { %14478 = vmatprep.mubr.msk.bf16.mxu0 %vm180_vm0, %v15393_v53 }
0x1950   :  { %14479 = vmatmul.mubr.msk.bf16.gmra.mrb[32].mxu0 %vm180_vm0, %v15394_v60 }
0x1951   :  { %14482 = vmatprep.mubr.msk.bf16.mxu0 %vm180_vm0, %v15395_v61 }
0x1958   :  { %14483 = vmatmul.mubr.msk.bf16.gmra.mrb[36].mxu0 %vm180_vm0, %v15396_v10 }
0x1959   :  { %14486 = vmatprep.mubr.msk.bf16.mxu0 %vm180_vm0, %v15397_v15 }
0x1960   :  { %14487 = vmatmul.mubr.msk.bf16.gmra.mrb[40].mxu0 %vm180_vm0, %v15398_v17 }
0x1961   :  { %14490 = vmatprep.mubr.msk.bf16.mxu0 %vm180_vm0, %v15399_v32 }
0x1968   :  { %14491 = vmatmul.mubr.msk.bf16.gmra.mrb[44].mxu0 %vm180_vm0, %v15400_v29 }
0x1969   :  { %14494 = vmatprep.mubr.msk.bf16.mxu0 %vm180_vm0, %v15401_v50 }
0x1970   :  { %14495 = vmatmul.mubr.msk.bf16.gmra.mrb[48].mxu0 %vm180_vm0, %v15402_v58 }
0x19bb   :  { %v14428_v49 = vpop.f32.mrb[236].mxu0 }
0x19bc   :  { %v10319_v19 = vpop.f32.mrb[237].mxu0 }
0x19bd   :  { %v14429_v44 = vpop.f32.mrb[238].mxu0 }
0x19be   :  { %v10607_v40 = vpack.c.bf16 %v14429_v44, %v14428_v49  ;;  %v10322_v6 = vpop.f32.mrb[239].mxu0 }
0x19bf   :  { %v10606_v1 = vpack.c.bf16 %v10322_v6, %v10319_v19 }
0x19c3   :  { %v14432_v5 = vpop.f32.mrb[240].mxu0 }
0x19c4   :  { %v10335_v0 = vpop.f32.mrb[241].mxu0 }
0x19c5   :  { %v14433_v54 = vpop.f32.mrb[242].mxu0 }
0x19c6   :  { %v10609_v45 = vpack.c.bf16 %v14433_v54, %v14432_v5  ;;  %v10338_v37 = vpop.f32.mrb[243].mxu0 }
0x19c7   :  { %v10608_v20 = vpack.c.bf16 %v10338_v37, %v10335_v0 }
0x19cb   :  { %v14436_v38 = vpop.f32.mrb[244].mxu0 }
0x19cc   :  { %v10351_v22 = vpop.f32.mrb[245].mxu0 }
0x19cd   :  { %v14437_v4 = vpop.f32.mrb[246].mxu0 }
0x19ce   :  { %v10611_v28 = vpack.c.bf16 %v14437_v4, %v14436_v38  ;;  %v10354_v8 = vpop.f32.mrb[247].mxu0 }
0x19cf   :  { %v10610_v52 = vpack.c.bf16 %v10354_v8, %v10351_v22 }
0x19d1   :  { %14502 = vmatprep.mubr.msk.bf16.mxu1 %vm427_vm1, %v10610_v52 }
0x19d2   :  { %14503 = vmatmul.mubr.msk.bf16.vlgmr.msra.gmra.mrb[52].mxu1 %vm427_vm1, %v10611_v28 }
0x19d3   :  { %v14440_v30 = vpop.f32.mrb[248].mxu0  ;;  %14511 = vmatpush3.bf16.msra.mxu1 %v17722_v23 }
0x19d4   :  { %v10367_v26 = vpop.f32.mrb[249].mxu0  ;;  %14512 = vmatprep.subr.bf16.mxu1 %v17749_v12 }
0x19d5   :  { %v14441_v2 = vpop.f32.mrb[250].mxu0 }
0x19d6   :  { %v10613_v7 = vpack.c.bf16 %v14441_v2, %v14440_v30  ;;  %v10370_v51 = vpop.f32.mrb[251].mxu0 }
0x19d7   :  { %v10612_v42 = vpack.c.bf16 %v10370_v51, %v10367_v26  ;;  %14513 = vmatpush3.bf16.msra.mxu1 %v17749_v12 }
0x19d8   :  { %14522 = vmatprep.subr.bf16.mxu1 %v17758_v55 }
0x19d9   :  { %14506 = vmatprep.mubr.msk.bf16.mxu1 %vm427_vm1, %v10612_v42 }
0x19da   :  { %14507 = vmatmul.mubr.msk.bf16.gmra.mrb[56].mxu1 %vm427_vm1, %v10613_v7 }
0x19db   :  { %14514 = vmatprep.mubr.msk.bf16.mxu1 %vm427_vm1, %v10606_v1  ;;  %v14444_v25 = vpop.f32.mrb[252].mxu0 }
0x19dc   :  { %v10383_v59 = vpop.f32.mrb[253].mxu0 }
0x19dd   :  { %v14445_v23 = vpop.f32.mrb[254].mxu0 }
0x19de   :  { %v10615_v48 = vpack.c.bf16 %v14445_v23, %v14444_v25  ;;  %v10386_v62 = vpop.f32.mrb[255].mxu0 }
0x19df   :  { %v10614_v24 = vpack.c.bf16 %v10386_v62, %v10383_v59 }
0x19e2   :  { %14515 = vmatmul.mubr.msk.bf16.vlgmr.msra.gmra.mrb[52].mxu1 %vm427_vm1, %v10607_v40 }
0x19e3   :  { %14518 = vmatprep.mubr.msk.bf16.mxu1 %vm427_vm1, %v10608_v20  ;;  %14523 = vmatpush3.bf16.msra.mxu1 %v17758_v55  ;;  %v14448_v12 = vpop.f32.mrb[0].mxu0 }
0x19e4   :  { %14524 = vmatprep.subr.bf16.mxu1 %v17768_v41  ;;  %v10399_v57 = vpop.f32.mrb[1].mxu0 }
0x19e5   :  { %v14449_v18 = vpop.f32.mrb[2].mxu0 }
0x19e6   :  { %v10617_v31 = vpack.c.bf16 %v14449_v18, %v14448_v12  ;;  %v10402_v21 = vpop.f32.mrb[3].mxu0 }
0x19e7   :  { %14525 = vmatpush3.bf16.msra.mxu1 %v17768_v41  ;;  %v10616_v34 = vpack.c.bf16 %v10402_v21, %v10399_v57 }
0x19e8   :  { %14534 = vmatprep.subr.bf16.mxu1 %v17777_v39 }
0x19ea   :  { %14519 = vmatmul.mubr.msk.bf16.gmra.mrb[56].mxu1 %vm427_vm1, %v10609_v45 }
0x19eb   :  { %14526 = vmatprep.mubr.msk.bf16.mxu1 %vm427_vm1, %v10614_v24  ;;  %v14452_v43 = vpop.f32.mrb[4].mxu0 }
0x19ec   :  { %v10415_v14 = vpop.f32.mrb[5].mxu0 }
0x19ed   :  { %v14453_v35 = vpop.f32.mrb[6].mxu0 }
0x19ee   :  { %v10619_v55 = vpack.c.bf16 %v14453_v35, %v14452_v43  ;;  %v10418_v9 = vpop.f32.mrb[7].mxu0 }
0x19ef   :  { %v10618_v53 = vpack.c.bf16 %v10418_v9, %v10415_v14 }
0x19f2   :  { %14527 = vmatmul.mubr.msk.bf16.vlgmr.msra.gmra.mrb[52].mxu1 %vm427_vm1, %v10615_v48 }
0x19f3   :  { %14530 = vmatprep.mubr.msk.bf16.mxu1 %vm427_vm1, %v10616_v34  ;;  %14535 = vmatpush3.bf16.msra.mxu1 %v17777_v39  ;;  %v14456_v41 = vpop.f32.mrb[8].mxu0 }
0x19f4   :  { %14536 = vmatprep.subr.bf16.mxu1 %v17786_v56  ;;  %v10431_v60 = vpop.f32.mrb[9].mxu0 }
0x19f5   :  { %v14457_v61 = vpop.f32.mrb[10].mxu0 }
0x19f6   :  { %v10621_v10 = vpack.c.bf16 %v14457_v61, %v14456_v41  ;;  %v10434_v15 = vpop.f32.mrb[11].mxu0 }
0x19f7   :  { %14537 = vmatpush3.bf16.msra.mxu1 %v17786_v56  ;;  %v10620_v17 = vpack.c.bf16 %v10434_v15, %v10431_v60  ;;  %v18244_v15 = vld [vmem:[#allocation34_spill] sm:$0xff] }
0x19f8   :  { %14546 = vmatprep.subr.bf16.mxu1 %v17795_v46 }
0x19fa   :  { %14531 = vmatmul.mubr.msk.bf16.gmra.mrb[56].mxu1 %vm427_vm1, %v10617_v31 }
0x19fb   :  { %14538 = vmatprep.mubr.msk.bf16.mxu1 %vm427_vm1, %v10618_v53  ;;  %v14460_v32 = vpop.f32.mrb[12].mxu0 }
0x19fc   :  { %v10447_v29 = vpop.f32.mrb[13].mxu0 }
0x19fd   :  { %v14461_v50 = vpop.f32.mrb[14].mxu0 }
0x19fe   :  { %v10623_v39 = vpack.c.bf16 %v14461_v50, %v14460_v32  ;;  %v10450_v58 = vpop.f32.mrb[15].mxu0 }
0x19ff   :  { %v10622_v49 = vpack.c.bf16 %v10450_v58, %v10447_v29  ;;  %v18245_v29 = vld [vmem:[#allocation32_spill] sm:$0xff] }
0x1a02   :  { %14539 = vmatmul.mubr.msk.bf16.vlgmr.msra.gmra.mrb[52].mxu1 %vm427_vm1, %v10619_v55 }
0x1a03   :  { %14542 = vmatprep.mubr.msk.bf16.mxu1 %vm427_vm1, %v10620_v17  ;;  %14547 = vmatpush3.bf16.msra.mxu1 %v17795_v46  ;;  %v14464_v56 = vpop.f32.mrb[16].mxu0 }
0x1a04   :  { %14548 = vmatprep.subr.bf16.mxu1 %v17804_v33  ;;  %v10463_v19 = vpop.f32.mrb[17].mxu0 }
0x1a05   :  { %v14465_v44 = vpop.f32.mrb[18].mxu0 }
0x1a06   :  { %v10625_v40 = vpack.c.bf16 %v14465_v44, %v14464_v56  ;;  %v10466_v6 = vpop.f32.mrb[19].mxu0  ;;  %v18247_v44 = vld [vmem:[#allocation33_spill] sm:$0xff] }
0x1a07   :  { %14549 = vmatpush3.bf16.msra.mxu1 %v17804_v33  ;;  %v10624_v1 = vpack.c.bf16 %v10466_v6, %v10463_v19 }
0x1a08   :  { %14558 = vmatprep.subr.bf16.mxu1 %v17813_v36 }
0x1a0a   :  { %14543 = vmatmul.mubr.msk.bf16.gmra.mrb[56].mxu1 %vm427_vm1, %v10621_v10 }
0x1a0b   :  { %14550 = vmatprep.mubr.msk.bf16.mxu1 %vm427_vm1, %v10622_v49  ;;  %v14468_v5 = vpop.f32.mrb[20].mxu0 }
0x1a0c   :  { %v10479_v0 = vpop.f32.mrb[21].mxu0 }
0x1a0d   :  { %v14469_v54 = vpop.f32.mrb[22].mxu0 }
0x1a0e   :  { %v10627_v46 = vpack.c.bf16 %v14469_v54, %v14468_v5  ;;  %v10482_v45 = vpop.f32.mrb[23].mxu0 }
0x1a0f   :  { %v10626_v37 = vpack.c.bf16 %v10482_v45, %v10479_v0  ;;  %v18248_v0 = vld [vmem:[#allocation38_spill] sm:$0xff]  ;;  %v18249_v45 = vld [vmem:[#allocation36_spill] sm:$0xff] }
0x1a12   :  { %14551 = vmatmul.mubr.msk.bf16.vlgmr.msra.gmra.mrb[52].mxu1 %vm427_vm1, %v10623_v39 }
0x1a13   :  { %14554 = vmatprep.mubr.msk.bf16.mxu1 %vm427_vm1, %v10624_v1  ;;  %14559 = vmatpush3.bf16.msra.mxu1 %v17813_v36  ;;  %v14472_v33 = vpop.f32.mrb[24].mxu0 }
0x1a14   :  { %14560 = vmatprep.subr.bf16.mxu1 %v17822_v11  ;;  %v10495_v20 = vpop.f32.mrb[25].mxu0 }
0x1a15   :  { %v14473_v38 = vpop.f32.mrb[26].mxu0 }
0x1a16   :  { %v10629_v22 = vpack.c.bf16 %v14473_v38, %v14472_v33  ;;  %v10498_v4 = vpop.f32.mrb[27].mxu0  ;;  %v18250_v38 = vld [vmem:[#allocation39_spill] sm:$0xff] }
0x1a17   :  { %14561 = vmatpush3.bf16.msra.mxu1 %v17822_v11  ;;  %v10628_v28 = vpack.c.bf16 %v10498_v4, %v10495_v20 }
0x1a18   :  { %14570 = vmatprep.subr.bf16.mxu1 %v17831_v27 }
0x1a1a   :  { %14555 = vmatmul.mubr.msk.bf16.gmra.mrb[56].mxu1 %vm427_vm1, %v10625_v40 }
0x1a1b   :  { %14562 = vmatprep.mubr.msk.bf16.mxu1 %vm427_vm1, %v10626_v37  ;;  %v14476_v8 = vpop.f32.mrb[28].mxu0 }
0x1a1c   :  { %v10511_v52 = vpop.f32.mrb[29].mxu0 }
0x1a1d   :  { %v14477_v30 = vpop.f32.mrb[30].mxu0 }
0x1a1e   :  { %v10631_v36 = vpack.c.bf16 %v14477_v30, %v14476_v8  ;;  %v10514_v26 = vpop.f32.mrb[31].mxu0  ;;  %v18251_v8 = vld [vmem:[#allocation37_spill] sm:$0xff] }
0x1a1f   :  { %v10630_v2 = vpack.c.bf16 %v10514_v26, %v10511_v52 }
0x1a22   :  { %14563 = vmatmul.mubr.msk.bf16.vlgmr.msra.gmra.mrb[52].mxu1 %vm427_vm1, %v10627_v46 }
0x1a23   :  { %14566 = vmatprep.mubr.msk.bf16.mxu1 %vm427_vm1, %v10628_v28  ;;  %14571 = vmatpush3.bf16.msra.mxu1 %v17831_v27  ;;  %v14480_v11 = vpop.f32.mrb[32].mxu0 }
0x1a24   :  { %14572 = vmatprep.subr.bf16.mxu1 %v17840_v13  ;;  %v10527_v7 = vpop.f32.mrb[33].mxu0 }
0x1a25   :  { %v14481_v51 = vpop.f32.mrb[34].mxu0 }
0x1a26   :  { %v10633_v42 = vpack.c.bf16 %v14481_v51, %v14480_v11  ;;  %v10530_v25 = vpop.f32.mrb[35].mxu0 }
0x1a27   :  { %14573 = vmatpush3.bf16.msra.mxu1 %v17840_v13  ;;  %v10632_v59 = vpack.c.bf16 %v10530_v25, %v10527_v7 }
0x1a28   :  { %14582 = vmatprep.subr.bf16.mxu1 %v17849_v63 }
0x1a2a   :  { %14567 = vmatmul.mubr.msk.bf16.gmra.mrb[56].mxu1 %vm427_vm1, %v10629_v22 }
0x1a2b   :  { %14574 = vmatprep.mubr.msk.bf16.mxu1 %vm427_vm1, %v10630_v2  ;;  %v14484_v23 = vpop.f32.mrb[36].mxu0 }
0x1a2c   :  { %v10543_v48 = vpop.f32.mrb[37].mxu0 }
0x1a2d   :  { %v14485_v62 = vpop.f32.mrb[38].mxu0 }
0x1a2e   :  { %v10635_v27 = vpack.c.bf16 %v14485_v62, %v14484_v23  ;;  %v10546_v24 = vpop.f32.mrb[39].mxu0 }
0x1a2f   :  { %v10634_v12 = vpack.c.bf16 %v10546_v24, %v10543_v48 }
0x1a32   :  { %14575 = vmatmul.mubr.msk.bf16.vlgmr.msra.gmra.mrb[52].mxu1 %vm427_vm1, %v10631_v36 }
0x1a33   :  { %14578 = vmatprep.mubr.msk.bf16.mxu1 %vm427_vm1, %v10632_v59  ;;  %14583 = vmatpush3.bf16.msra.mxu1 %v17849_v63  ;;  %v14488_v13 = vpop.f32.mrb[40].mxu0 }
0x1a34   :  { %14584 = vmatprep.subr.bf16.mxu1 %v17858_v16  ;;  %v10559_v57 = vpop.f32.mrb[41].mxu0 }
0x1a35   :  { %v14489_v18 = vpop.f32.mrb[42].mxu0 }
0x1a36   :  { %v10637_v31 = vpack.c.bf16 %v14489_v18, %v14488_v13  ;;  %v10562_v21 = vpop.f32.mrb[43].mxu0 }
0x1a37   :  { %14585 = vmatpush3.bf16.msra.mxu1 %v17858_v16  ;;  %v10636_v34 = vpack.c.bf16 %v10562_v21, %v10559_v57 }
0x1a38   :  { %14594 = vmatprep.subr.bf16.mxu1 %v17867_v47 }
0x1a3a   :  { %14579 = vmatmul.mubr.msk.bf16.gmra.mrb[56].mxu1 %vm427_vm1, %v10633_v42 }
0x1a3b   :  { %14586 = vmatprep.mubr.msk.bf16.mxu1 %vm427_vm1, %v10634_v12  ;;  %v14492_v43 = vpop.f32.mrb[44].mxu0 }
0x1a3c   :  { %v10575_v14 = vpop.f32.mrb[45].mxu0 }
0x1a3d   :  { %v14493_v35 = vpop.f32.mrb[46].mxu0 }
0x1a3e   :  { %v10639_v63 = vpack.c.bf16 %v14493_v35, %v14492_v43  ;;  %v10578_v55 = vpop.f32.mrb[47].mxu0 }
0x1a3f   :  { %v10638_v9 = vpack.c.bf16 %v10578_v55, %v10575_v14 }
0x1a42   :  { %14587 = vmatmul.mubr.msk.bf16.vlgmr.msra.gmra.mrb[52].mxu1 %vm427_vm1, %v10635_v27 }
0x1a43   :  { %14590 = vmatprep.mubr.msk.bf16.mxu1 %vm427_vm1, %v10636_v34  ;;  %14595 = vmatpush3.bf16.msra.mxu1 %v17867_v47  ;;  %v14496_v16 = vpop.f32.mrb[48].mxu0 }
0x1a44   :  { %14596 = vmatprep.subr.bf16.mxu1 %v17876_v3  ;;  %v10591_v53 = vpop.f32.mrb[49].mxu0 }
0x1a45   :  { %v14497_v41 = vpop.f32.mrb[50].mxu0 }
0x1a46   :  { %v10641_v60 = vpack.c.bf16 %v14497_v41, %v14496_v16  ;;  %v10594_v61 = vpop.f32.mrb[51].mxu0 }
0x1a47   :  { %14597 = vmatpush3.bf16.msra.mxu1 %v17876_v3  ;;  %v10640_v10 = vpack.c.bf16 %v10594_v61, %v10591_v53  ;;  %v18246_v3 = vld [vmem:[#allocation35_spill] sm:$0xff] }
0x1a4a   :  { %14591 = vmatmul.mubr.msk.bf16.gmra.mrb[56].mxu1 %vm427_vm1, %v10637_v31 }
0x1a4b   :  { %14598 = vmatprep.mubr.msk.bf16.mxu1 %vm427_vm1, %v10638_v9 }
0x1a52   :  { %14599 = vmatmul.mubr.msk.bf16.vlgmr.msra.gmra.mrb[52].mxu1 %vm427_vm1, %v10639_v63 }
0x1a53   :  { %14602 = vmatprep.mubr.msk.bf16.mxu1 %vm427_vm1, %v10640_v10 }
0x1a5a   :  { %14603 = vmatmul.mubr.msk.bf16.gmra.mrb[56].mxu1 %vm427_vm1, %v10641_v60 }
0x1b25   :  { %v14600_v47 = vpop.f32.mrb[52].mxu1 }
0x1b26   :  { %v11441_v17 = vadd.f32 %v14600_v47, %v18244_v15  ;;  %v11352_v32 = vpop.f32.mrb[53].mxu1 }
0x1b27   :  { %v11439_v50 = vadd.f32 %v18245_v29, %v11352_v32  ;;  %v14601_v39 = vpop.f32.mrb[54].mxu1 }
0x1b28   :  { %v12722_v58 = vmul.f32 -1.442695, %v11441_v17  ;;  %v11442_v49 = vadd.f32 %v14601_v39, %v18246_v3  ;;  %v11355_v56 = vpop.f32.mrb[55].mxu1 }
0x1b29   :  { %v12720_v19 = vmul.f32 -1.442695, %v11439_v50  ;;  %v11440_v40 = vadd.f32 %v18247_v44, %v11355_v56 }
0x1b2a   :  { %15403 = vpow2.f32 %v12722_v58  ;;  %v12723_v6 = vmul.f32 -1.442695, %v11442_v49 }
0x1b2b   :  { %15405 = vpow2.f32 %v12720_v19  ;;  %v12721_v1 = vmul.f32 -1.442695, %v11440_v40 }
0x1b2c   :  { %15407 = vpow2.f32 %v12723_v6 }
0x1b2d   :  { %15409 = vpow2.f32 %v12721_v1  ;;  %v14604_v5 = vpop.f32.mrb[56].mxu1 }
0x1b2e   :  { %v11445_v54 = vadd.f32 %v14604_v5, %v18248_v0  ;;  %v11368_v46 = vpop.f32.mrb[57].mxu1 }
0x1b2f   :  { %v11443_v37 = vadd.f32 %v18249_v45, %v11368_v46  ;;  %v14605_v33 = vpop.f32.mrb[58].mxu1 }
0x1b30   :  { %v12726_v20 = vmul.f32 -1.442695, %v11445_v54  ;;  %v11446_v22 = vadd.f32 %v14605_v33, %v18250_v38  ;;  %v11371_v4 = vpop.f32.mrb[59].mxu1 }
0x1b31   :  { %v12724_v28 = vmul.f32 -1.442695, %v11443_v37  ;;  %v11444_v52 = vadd.f32 %v18251_v8, %v11371_v4 }
0x1b32   :  { %15411 = vpow2.f32 %v12726_v20  ;;  %v12727_v30 = vmul.f32 -1.442695, %v11446_v22 }
0x1b33   :  { %15413 = vpow2.f32 %v12724_v28  ;;  %v12725_v36 = vmul.f32 -1.442695, %v11444_v52 }
0x1b34   :  { %v15404_v26 = vpop.eup %15403  ;;  %15415 = vpow2.f32 %v12727_v30 }
0x1b35   :  { %v15406_v2 = vpop.eup %15405  ;;  %v11473_v11 = vadd.f32 1.0, %v15404_v26  ;;  %15417 = vpow2.f32 %v12725_v36 }
0x1b36   :  { %v15408_v7 = vpop.eup %15407  ;;  %v11471_v51 = vadd.f32 1.0, %v15406_v2 }
0x1b37   :  { %v15410_v42 = vpop.eup %15409  ;;  %15419 = vrcp.f32 %v11473_v11  ;;  %v11474_v25 = vadd.f32 1.0, %v15408_v7 }
0x1b38   :  { %15421 = vrcp.f32 %v11471_v51  ;;  %v11472_v59 = vadd.f32 1.0, %v15410_v42 }
0x1b39   :  { %15423 = vrcp.f32 %v11474_v25 }
0x1b3a   :  { %15425 = vrcp.f32 %v11472_v59 }
0x1b3c   :  { %v15412_v23 = vpop.eup %15411 }
0x1b3d   :  { %v15414_v48 = vpop.eup %15413  ;;  %v11477_v62 = vadd.f32 1.0, %v15412_v23 }
0x1b3e   :  { %v15416_v27 = vpop.eup %15415  ;;  %v11475_v24 = vadd.f32 1.0, %v15414_v48 }
0x1b3f   :  { %v15418_v12 = vpop.eup %15417  ;;  %15427 = vrcp.f32 %v11477_v62  ;;  %v11478_v13 = vadd.f32 1.0, %v15416_v27 }
0x1b40   :  { %15429 = vrcp.f32 %v11475_v24  ;;  %v11476_v57 = vadd.f32 1.0, %v15418_v12 }
0x1b41   :  { %v15420_v18 = vpop.eup %15419  ;;  %15431 = vrcp.f32 %v11478_v13 }
0x1b42   :  { %v15422_v31 = vpop.eup %15421  ;;  %11497 = vst.msk [vmem:[%s18169_s17 + $0x10] sm:$0xff] %vm427_vm1, %v15420_v18  ;;  %15433 = vrcp.f32 %v11476_v57 }
0x1b43   :  { %v15424_v21 = vpop.eup %15423  ;;  %11495 = vst.msk [vmem:[%s18169_s17] sm:$0xff] %vm427_vm1, %v15422_v31 }
0x1b44   :  { %v15426_v34 = vpop.eup %15425  ;;  %11498 = vst.msk [vmem:[%s18169_s17 + $0x18] sm:$0xff] %vm427_vm1, %v15424_v21 }
0x1b45   :  { %11496 = vst.msk [vmem:[%s18169_s17 + $0x8] sm:$0xff] %vm427_vm1, %v15426_v34 }
0x1b49   :  { %v15428_v43 = vpop.eup %15427 }
0x1b4a   :  { %v15430_v14 = vpop.eup %15429  ;;  %11501 = vst.msk [vmem:[%s18169_s17 + $0x30] sm:$0xff] %vm427_vm1, %v15428_v43 }
0x1b4b   :  { %v15432_v35 = vpop.eup %15431  ;;  %11499 = vst.msk [vmem:[%s18169_s17 + $0x20] sm:$0xff] %vm427_vm1, %v15430_v14 }
0x1b4c   :  { %v15434_v63 = vpop.eup %15433  ;;  %11502 = vst.msk [vmem:[%s18169_s17 + $0x38] sm:$0xff] %vm427_vm1, %v15432_v35 }
0x1b4d   :  { %11500 = vst.msk [vmem:[%s18169_s17 + $0x28] sm:$0xff] %vm427_vm1, %v15434_v63 }

</bundles_post_ra>
